<compile_context>
chip_gen: v5e
topology: v5e:2x2
jax: 0.10.0
libtpu: 0.0.40
codegen_flags: <defaults>
</compile_context>

<pallas_src>
import jax
import jax.numpy as jnp
from jax.experimental import pallas as pl
from jax.experimental.pallas import tpu as pltpu

EPS = 1e-5
NEG_SLOPE = 0.2  # LeakyReLU(0.2)


def _pick_tile(n, cap):
    """Largest divisor of n that is a multiple of 8 and <= cap; else n."""
    start = (min(cap, n) // 8) * 8
    for cand in range(start, 7, -8):
        if n % cand == 0:
            return cand
    # TODO(synk): pad the row dimension (with masked BN stats) instead of
    # falling back to one unpipelined block for awkward sizes.
    return n


# ---------------------------------------------------------------------------
# Pallas kernels
# ---------------------------------------------------------------------------

def _pdist_kernel(xt_ref, xft_ref, sq_ref, out_ref):
    # scores[b, i, j] = 2 * x_i . x_j - ||x_j||^2
    # (the row-constant -||x_i||^2 of torch knn() is dropped: per-row top_k
    #  is invariant to it).  xft is pre-transposed (C, N) so this is a plain
    #  matmul with no in-kernel XLU transpose.
    inner = jnp.dot(xt_ref[0], xft_ref[0], preferred_element_type=jnp.float32)
    out_ref[0] = 2.0 * inner - sq_ref[0]


def pairwise_scores(x_bnc, x_bcn):
    B, N, C = x_bnc.shape
    TN = _pick_tile(N, 256)
    sq = jnp.sum(x_bnc * x_bnc, axis=-1)[:, None, :]                  # (B,1,N)
    return pl.pallas_call(
        _pdist_kernel,
        grid=(B, N // TN),
        out_shape=jax.ShapeDtypeStruct((B, N, N), jnp.float32),
        in_specs=[pl.BlockSpec((1, TN, C), lambda b, i: (b, i, 0)),
                  pl.BlockSpec((1, C, N), lambda b, i: (b, 0, 0)),
                  pl.BlockSpec((1, 1, N), lambda b, i: (b, 0, 0))],
        out_specs=pl.BlockSpec((1, TN, N), lambda b, i: (b, i, 0)),
        compiler_params=pltpu.CompilerParams(
            dimension_semantics=("parallel", "parallel")),
    )(x_bnc, x_bcn, sq)


def _edge_kernel(xb_ref, idx_ref, wt_ref, wd_ref,
                 ymax_ref, ymin_ref, esum_ref, esq_ref):
    # xb_ref : (1, N, C)  bf16  full point cloud of this batch (resident)
    # idx_ref: (1, TN, K) int32 neighbor indices (within-batch) of this tile
    # wt_ref : (C, Cout)  bf16  W_top ; wd_ref: W_bot - W_top
    # Edge feature [nbr-ctr, ctr] @ W  ==  nbr @ W_top + ctr @ (W_bot-W_top).
    # Per-neighbor gather is a one-hot MXU matmul; running max/min + sum/sq
    # stats accumulated on the fly (no (K*TN, Cout) intermediate).
    N, C = xb_ref.shape[1], xb_ref.shape[2]
    TN, K = idx_ref.shape[1], idx_ref.shape[2]
    i = pl.program_id(1)

    xb = xb_ref[0]                                                    # (N, C)
    row0 = pl.multiple_of(i * TN, TN)
    ctr = xb_ref[0, pl.ds(row0, TN), :]                               # (TN, C)
    wt = wt_ref[...]
    wd = wd_ref[...]
    ct_term = jnp.dot(ctr, wd, preferred_element_type=jnp.float32)    # (TN,Cout)

    idx_all = idx_ref[0]                                              # (TN, K)
    iota = jax.lax.broadcasted_iota(jnp.int32, (TN, N), 1)

    def neighbor_y(k):
        col = idx_all[:, k:k + 1]                                     # (TN, 1)
        oh = jnp.where(col == iota, 1.0, 0.0).astype(jnp.bfloat16)    # (TN, N)
        nbr = jnp.dot(oh, xb, preferred_element_type=jnp.float32)     # (TN, C)
        return jnp.dot(nbr.astype(jnp.bfloat16), wt,
                       preferred_element_type=jnp.float32) + ct_term

    y0 = neighbor_y(0)
    ymax, ymin = y0, y0
    s, sq = y0, y0 * y0
    for k in range(1, K):                                             # static unroll
        yk = neighbor_y(k)
        ymax = jnp.maximum(ymax, yk)
        ymin = jnp.minimum(ymin, yk)
        s = s + yk
        sq = sq + yk * yk

    ymax_ref[0] = ymax.astype(ymax_ref.dtype)
    ymin_ref[0] = ymin.astype(ymin_ref.dtype)
    esum_ref[0, 0] = jnp.sum(s, axis=0, keepdims=True)                # (1, Cout)
    esq_ref[0, 0] = jnp.sum(sq, axis=0, keepdims=True)


def edge_conv(x_bf, idx, w_top, w_diff):
    B, N, C = x_bf.shape
    K = idx.shape[2]
    Cout = w_top.shape[1]
    TN = _pick_tile(N, 128)          # keep <=128 rows (v5e scoped VMEM / v7x)
    nt = N // TN
    return pl.pallas_call(
        _edge_kernel,
        grid=(B, nt),
        out_shape=(jax.ShapeDtypeStruct((B, N, Cout), jnp.bfloat16),
                   jax.ShapeDtypeStruct((B, N, Cout), jnp.bfloat16),
                   jax.ShapeDtypeStruct((B, nt, 1, Cout), jnp.float32),
                   jax.ShapeDtypeStruct((B, nt, 1, Cout), jnp.float32)),
        in_specs=[pl.BlockSpec((1, N, C), lambda b, i: (b, 0, 0)),
                  pl.BlockSpec((1, TN, K), lambda b, i: (b, i, 0)),
                  pl.BlockSpec((C, Cout), lambda b, i: (0, 0)),
                  pl.BlockSpec((C, Cout), lambda b, i: (0, 0))],
        out_specs=(pl.BlockSpec((1, TN, Cout), lambda b, i: (b, i, 0)),
                   pl.BlockSpec((1, TN, Cout), lambda b, i: (b, i, 0)),
                   pl.BlockSpec((1, 1, 1, Cout), lambda b, i: (b, i, 0, 0)),
                   pl.BlockSpec((1, 1, 1, Cout), lambda b, i: (b, i, 0, 0))),
        compiler_params=pltpu.CompilerParams(
            dimension_semantics=("parallel", "parallel")),
    )(x_bf, idx, w_top, w_diff)


def _cat_mlp_kernel(ymaxd_ref, ymind_ref, ymaxg_ref, yming_ref,
                    scd_ref, shd_ref, scg_ref, shg_ref,
                    mwd_ref, mwg_ref, z_ref, ps_ref, psq_ref):
    # Edge BN-affine + LeakyReLU applied to the running max (min branch when
    # the per-channel BN scale is negative -- the composed map is monotone),
    # then the channel concat + 1x1 point conv as two matmuls, plus point-BN
    # partial stats.
    scd = scd_ref[...]
    ad = jnp.where(scd >= 0.0, ymaxd_ref[...].astype(jnp.float32),
                   ymind_ref[...].astype(jnp.float32)) * scd + shd_ref[...]
    ad = jnp.where(ad > 0, ad, NEG_SLOPE * ad)
    scg = scg_ref[...]
    ag = jnp.where(scg >= 0.0, ymaxg_ref[...].astype(jnp.float32),
                   yming_ref[...].astype(jnp.float32)) * scg + shg_ref[...]
    ag = jnp.where(ag > 0, ag, NEG_SLOPE * ag)

    z = (jnp.dot(ad.astype(jnp.bfloat16), mwd_ref[...],
                 preferred_element_type=jnp.float32)
         + jnp.dot(ag.astype(jnp.bfloat16), mwg_ref[...],
                   preferred_element_type=jnp.float32))
    z_ref[...] = z.astype(z_ref.dtype)
    ps_ref[0] = jnp.sum(z, axis=0, keepdims=True)
    psq_ref[0] = jnp.sum(z * z, axis=0, keepdims=True)


def cat_mlp(ymax_d, ymin_d, ymax_g, ymin_g, sc_d, sh_d, sc_g, sh_g, mwd, mwg):
    P, Cout = ymax_d.shape
    Cm = mwd.shape[1]
    TP = _pick_tile(P, 256)
    nt = P // TP
    row = lambda i: (i, 0)
    const = lambda i: (0, 0)
    return pl.pallas_call(
        _cat_mlp_kernel,
        grid=(nt,),
        out_shape=(jax.ShapeDtypeStruct((P, Cm), jnp.bfloat16),
                   jax.ShapeDtypeStruct((nt, 1, Cm), jnp.float32),
                   jax.ShapeDtypeStruct((nt, 1, Cm), jnp.float32)),
        in_specs=[pl.BlockSpec((TP, Cout), row)] * 4
                 + [pl.BlockSpec((1, Cout), const)] * 4
                 + [pl.BlockSpec((Cout, Cm), const)] * 2,
        out_specs=(pl.BlockSpec((TP, Cm), row),
                   pl.BlockSpec((1, 1, Cm), lambda i: (i, 0, 0)),
                   pl.BlockSpec((1, 1, Cm), lambda i: (i, 0, 0))),
        compiler_params=pltpu.CompilerParams(
            dimension_semantics=("parallel",)),
    )(ymax_d, ymin_d, ymax_g, ymin_g, sc_d, sh_d, sc_g, sh_g, mwd, mwg)


def _bn_leaky_kernel(z_ref, sc_ref, sh_ref, out_ref):
    a = z_ref[...].astype(jnp.float32) * sc_ref[...] + sh_ref[...]
    out_ref[...] = jnp.where(a > 0, a, NEG_SLOPE * a)


def bn_leaky_apply(z, scale, shift):
    P, Cm = z.shape
    TP = _pick_tile(P, 1024)        # big tile: pure mem-bound elementwise
    return pl.pallas_call(
        _bn_leaky_kernel,
        grid=(P // TP,),
        out_shape=jax.ShapeDtypeStruct((P, Cm), jnp.float32),
        in_specs=[pl.BlockSpec((TP, Cm), lambda i: (i, 0)),
                  pl.BlockSpec((1, Cm), lambda i: (0, 0)),
                  pl.BlockSpec((1, Cm), lambda i: (0, 0))],
        out_specs=pl.BlockSpec((TP, Cm), lambda i: (i, 0)),
        compiler_params=pltpu.CompilerParams(
            dimension_semantics=("parallel",)),
    )(z, scale, shift)


# ---------------------------------------------------------------------------
# Plain-JAX glue (top_k selection, BN scale/shift from partial sums)
# ---------------------------------------------------------------------------

def knn_indices(x_bnc, x_bcn, k):
    # TODO(synk): top_k has no clean Pallas TPU primitive; the distance matmul
    # runs in Pallas, the selection stays in jax.lax.top_k.
    scores = pairwise_scores(x_bnc, x_bcn)                            # (B,N,N)
    _, idx = jax.lax.top_k(scores, k)                                 # (B,N,k)
    return idx.astype(jnp.int32)


def _bn_scale_shift(psum, psq, count, gamma, beta):
    # Batch-stats BN (training mode), biased variance, eps=1e-5.
    cols = psum.shape[-1]
    s = jnp.sum(psum.reshape(-1, cols), axis=0)
    q = jnp.sum(psq.reshape(-1, cols), axis=0)
    mean = s / count
    var = jnp.maximum(q / count - mean * mean, 0.0)
    scale = gamma.reshape(-1) * jax.lax.rsqrt(var + EPS)
    shift = beta.reshape(-1) - mean * scale
    return scale[None, :].astype(jnp.float32), shift[None, :].astype(jnp.float32)


def dgcnn_cat_layer(x_bnc, g_idx, p, knn_k):
    B, N, C = x_bnc.shape
    P = B * N
    Cout = p["dw"].shape[1]

    x_bcn = jnp.transpose(x_bnc, (0, 2, 1))          # for the distance matmul
    x_bf = x_bnc.astype(jnp.bfloat16)                 # features for edge conv

    # DLayer: knn on current features; GLayer: externally supplied gIdx
    d_idx = knn_indices(x_bnc, x_bcn, knn_k)
    g_idx = g_idx.astype(jnp.int32)
    g_k = g_idx.shape[2]

    # W-split identity: [nbr-ctr, ctr] @ W = nbr @ W_top + ctr @ (W_bot-W_top)
    # Weights pre-split and pre-cast to bf16 once per layer.
    dwt = p["dw"][:C].astype(jnp.bfloat16)
    dwd = (p["dw"][C:] - p["dw"][:C]).astype(jnp.bfloat16)
    gwt = p["gw"][:C].astype(jnp.bfloat16)
    gwd = (p["gw"][C:] - p["gw"][:C]).astype(jnp.bfloat16)

    ymax_d, ymin_d, es_d, eq_d = edge_conv(x_bf, d_idx, dwt, dwd)
    ymax_g, ymin_g, es_g, eq_g = edge_conv(x_bf, g_idx, gwt, gwd)

    sc_d, sh_d = _bn_scale_shift(es_d, eq_d, knn_k * P, p["dg"], p["db"])
    sc_g, sh_g = _bn_scale_shift(es_g, eq_g, g_k * P, p["gg"], p["gb"])

    mwd = p["mw"][:Cout].astype(jnp.bfloat16)
    mwg = p["mw"][Cout:].astype(jnp.bfloat16)

    z, ps, psq = cat_mlp(ymax_d.reshape(P, Cout), ymin_d.reshape(P, Cout),
                         ymax_g.reshape(P, Cout), ymin_g.reshape(P, Cout),
                         sc_d, sh_d, sc_g, sh_g, mwd, mwg)
    sc_m, sh_m = _bn_scale_shift(ps, psq, P, p["mg"], p["mb"])
    y = bn_leaky_apply(z, sc_m, sh_m)                                 # (P, Cout)
    return y.reshape(B, N, Cout)


def dgcnn_forward(x_bcn, g_idx, params_list, knn_k):
    # x_bcn: (B, C, N) like PyTorch; transform=False path of DGCNN.forward
    x_bnc = jnp.transpose(x_bcn, (0, 2, 1)).astype(jnp.float32)
    outs = [x_bnc]
    cur = x_bnc
    for p in params_list:
        cur = dgcnn_cat_layer(cur, g_idx, p, knn_k)
        outs.append(cur)
    out = jnp.concatenate(outs, axis=-1)                              # (B,N,Ctot)
    return jnp.transpose(out, (0, 2, 1))                              # (B,Ctot,N)


def init_params(key, in_c, layers):
    # Conv weights ~ N(0, 0.1); BatchNorm affine init matches torch (1, 0).
    params = []
    c = in_c
    for out_c in layers:
        key, k1, k2, k3 = jax.random.split(key, 4)
        params.append({
            "dw": 0.1 * jax.random.normal(k1, (2 * c, out_c), jnp.float32),
            "dg": jnp.ones((1, out_c), jnp.float32),
            "db": jnp.zeros((1, out_c), jnp.float32),
            "gw": 0.1 * jax.random.normal(k2, (2 * c, out_c), jnp.float32),
            "gg": jnp.ones((1, out_c), jnp.float32),
            "gb": jnp.zeros((1, out_c), jnp.float32),
            "mw": 0.1 * jax.random.normal(k3, (2 * out_c, out_c), jnp.float32),
            "mg": jnp.ones((1, out_c), jnp.float32),
            "mb": jnp.zeros((1, out_c), jnp.float32),
        })
        c = out_c
    return params


if __name__ == "__main__":
    B, C_IN, N = 2, 3, 16          # batch, input channels, num points
    KNN_K, G_K = 4, 4              # knnNum (<= N) and gIdx neighbor count
    LAYERS = [8, 16, 32]           # small version of default [64, 128, 256]

    key = jax.random.PRNGKey(0)
    kx, kg, kp = jax.random.split(key, 3)
    x = jax.random.normal(kx, (B, C_IN, N), jnp.float32)
    g_idx = jax.random.randint(kg, (B, N, G_K), 0, N, jnp.int32)
    params = init_params(kp, C_IN, LAYERS)

    fwd = jax.jit(dgcnn_forward, static_argnums=(3,))
    out = fwd(x, g_idx, params, KNN_K)
    out = jax.block_until_ready(out)

    assert out.shape == (B, C_IN + sum(LAYERS), N), out.shape
    assert bool(jnp.all(jnp.isfinite(out)))
    print("KERNEL_OK")
</pallas_src>

<mosaic_0001>
module attributes {stable_mosaic.version = 11 : i64} {
  func.func @_pdist_kernel(%arg0: i32, %arg1: i32, %arg2: memref<1x16x3xf32, #tpu.memory_space<vmem>>, %arg3: memref<1x3x16xf32, #tpu.memory_space<vmem>>, %arg4: memref<1x1x16xf32, #tpu.memory_space<vmem>>, %arg5: memref<1x16x16xf32, #tpu.memory_space<vmem>>) attributes {dimension_semantics = [#tpu.dimension_semantics<parallel>, #tpu.dimension_semantics<parallel>], iteration_bounds = array<i64: 2, 1>, scalar_prefetch = 0 : i64, scratch_operands = 0 : i64, tpu.core_type = #tpu.core_type<tc>, window_params = [{transform_indices = @transform_0, window_bounds = array<i64: 1, 16, 3>}, {transform_indices = @transform_1, window_bounds = array<i64: 1, 3, 16>}, {transform_indices = @transform_2, window_bounds = array<i64: 1, 1, 16>}, {transform_indices = @transform_3, window_bounds = array<i64: 1, 16, 16>}]} {
    %c0 = arith.constant 0 : index
    %c0_0 = arith.constant 0 : index
    %c0_1 = arith.constant 0 : index
    %0 = vector.load %arg2[%c0, %c0_0, %c0_1] : memref<1x16x3xf32, #tpu.memory_space<vmem>>, vector<1x16x3xf32>
    %1 = vector.shape_cast %0 : vector<1x16x3xf32> to vector<16x3xf32>
    %c0_2 = arith.constant 0 : index
    %c0_3 = arith.constant 0 : index
    %c0_4 = arith.constant 0 : index
    %2 = vector.load %arg3[%c0_2, %c0_3, %c0_4] : memref<1x3x16xf32, #tpu.memory_space<vmem>>, vector<1x3x16xf32>
    %3 = vector.shape_cast %2 : vector<1x3x16xf32> to vector<3x16xf32>
    %cst = arith.constant dense<0.000000e+00> : vector<16x16xf32>
    %4 = tpu.matmul %1, %3, %cst {dimension_numbers = #tpu.dot_dimension_numbers<[1], [0], [0], [1], [0, 0, 1, 1], [], []>} : vector<16x3xf32>, vector<3x16xf32>, vector<16x16xf32> -> vector<16x16xf32>
    %cst_5 = arith.constant 2.000000e+00 : f32
    %5 = vector.broadcast %cst_5 : f32 to vector<16x16xf32>
    %6 = arith.mulf %5, %4 : vector<16x16xf32>
    %c0_6 = arith.constant 0 : index
    %c0_7 = arith.constant 0 : index
    %c0_8 = arith.constant 0 : index
    %7 = vector.load %arg4[%c0_6, %c0_7, %c0_8] : memref<1x1x16xf32, #tpu.memory_space<vmem>>, vector<1x1x16xf32>
    %8 = vector.shape_cast %7 : vector<1x1x16xf32> to vector<1x16xf32>
    %9 = vector.broadcast %8 : vector<1x16xf32> to vector<16x16xf32>
    %10 = arith.subf %6, %9 : vector<16x16xf32>
    %c0_9 = arith.constant 0 : index
    %c0_10 = arith.constant 0 : index
    %c0_11 = arith.constant 0 : index
    %11 = vector.load %arg5[%c0_9, %c0_10, %c0_11] : memref<1x16x16xf32, #tpu.memory_space<vmem>>, vector<1x16x16xf32>
    %12 = vector.shape_cast %11 : vector<1x16x16xf32> to vector<16x16xf32>
    %13 = vector.shape_cast %10 : vector<16x16xf32> to vector<1x16x16xf32>
    tpu.vector_store %arg5[%c0_9, %c0_10, %c0_11], %13 {strides = array<i32>} : memref<1x16x16xf32, #tpu.memory_space<vmem>>, vector<1x16x16xf32>,
    return
  }
  func.func @transform_0(%arg0: i32, %arg1: i32) -> (i32, i32, i32) {
    %c0_i32 = arith.constant 0 : i32
    %c0_i32_0 = arith.constant 0 : i32
    return %arg0, %arg1, %c0_i32 : i32, i32, i32
  }
  func.func @transform_1(%arg0: i32, %arg1: i32) -> (i32, i32, i32) {
    %c0_i32 = arith.constant 0 : i32
    %c0_i32_0 = arith.constant 0 : i32
    %c0_i32_1 = arith.constant 0 : i32
    return %arg0, %c0_i32, %c0_i32_0 : i32, i32, i32
  }
  func.func @transform_2(%arg0: i32, %arg1: i32) -> (i32, i32, i32) {
    %c0_i32 = arith.constant 0 : i32
    %c0_i32_0 = arith.constant 0 : i32
    %c0_i32_1 = arith.constant 0 : i32
    return %arg0, %c0_i32, %c0_i32_0 : i32, i32, i32
  }
  func.func @transform_3(%arg0: i32, %arg1: i32) -> (i32, i32, i32) {
    %c0_i32 = arith.constant 0 : i32
    %c0_i32_0 = arith.constant 0 : i32
    return %arg0, %arg1, %c0_i32 : i32, i32, i32
  }
}

module attributes {stable_mosaic.version = 11 : i64} {
  func.func @_edge_kernel(%arg0: i32, %arg1: i32, %arg2: memref<1x16x3xbf16, #tpu.memory_space<vmem>>, %arg3: memref<1x16x4xi32, #tpu.memory_space<vmem>>, %arg4: memref<3x8xbf16, #tpu.memory_space<vmem>>, %arg5: memref<3x8xbf16, #tpu.memory_space<vmem>>, %arg6: memref<1x16x8xbf16, #tpu.memory_space<vmem>>, %arg7: memref<1x16x8xbf16, #tpu.memory_space<vmem>>, %arg8: memref<1x1x1x8xf32, #tpu.memory_space<vmem>>, %arg9: memref<1x1x1x8xf32, #tpu.memory_space<vmem>>) attributes {dimension_semantics = [#tpu.dimension_semantics<parallel>, #tpu.dimension_semantics<parallel>], iteration_bounds = array<i64: 2, 1>, scalar_prefetch = 0 : i64, scratch_operands = 0 : i64, tpu.core_type = #tpu.core_type<tc>, window_params = [{transform_indices = @transform_0, window_bounds = array<i64: 1, 16, 3>}, {transform_indices = @transform_1, window_bounds = array<i64: 1, 16, 4>}, {pipeline_mode = #tpu.pipeline_mode<synchronous>, transform_indices = @transform_2, window_bounds = array<i64: 3, 8>}, {pipeline_mode = #tpu.pipeline_mode<synchronous>, transform_indices = @transform_3, window_bounds = array<i64: 3, 8>}, {transform_indices = @transform_4, window_bounds = array<i64: 1, 16, 8>}, {transform_indices = @transform_5, window_bounds = array<i64: 1, 16, 8>}, {transform_indices = @transform_6, window_bounds = array<i64: 1, 1, 1, 8>}, {transform_indices = @transform_7, window_bounds = array<i64: 1, 1, 1, 8>}]} {
    %c0 = arith.constant 0 : index
    %c0_0 = arith.constant 0 : index
    %c0_1 = arith.constant 0 : index
    %0 = vector.load %arg2[%c0, %c0_0, %c0_1] : memref<1x16x3xbf16, #tpu.memory_space<vmem>>, vector<1x16x3xbf16>
    %1 = vector.shape_cast %0 : vector<1x16x3xbf16> to vector<16x3xbf16>
    %c16_i32 = arith.constant 16 : i32
    %2 = arith.muli %arg1, %c16_i32 : i32
    %3 = tpu.assume_multiple %2, 16 : i32
    %c0_2 = arith.constant 0 : index
    %4 = arith.index_cast %3 : i32 to index
    %c0_3 = arith.constant 0 : index
    %5 = vector.load %arg2[%c0_2, %4, %c0_3] : memref<1x16x3xbf16, #tpu.memory_space<vmem>>, vector<1x16x3xbf16>
    %6 = vector.shape_cast %5 : vector<1x16x3xbf16> to vector<16x3xbf16>
    %c0_4 = arith.constant 0 : index
    %c0_5 = arith.constant 0 : index
    %7 = vector.load %arg4[%c0_4, %c0_5] : memref<3x8xbf16, #tpu.memory_space<vmem>>, vector<3x8xbf16>
    %c0_6 = arith.constant 0 : index
    %c0_7 = arith.constant 0 : index
    %8 = vector.load %arg5[%c0_6, %c0_7] : memref<3x8xbf16, #tpu.memory_space<vmem>>, vector<3x8xbf16>
    %cst = arith.constant dense<0.000000e+00> : vector<16x8xf32>
    %9 = tpu.matmul %6, %8, %cst {dimension_numbers = #tpu.dot_dimension_numbers<[1], [0], [0], [1], [0, 0, 1, 1], [], []>} : vector<16x3xbf16>, vector<3x8xbf16>, vector<16x8xf32> -> vector<16x8xf32>
    %c0_8 = arith.constant 0 : index
    %c0_9 = arith.constant 0 : index
    %c0_10 = arith.constant 0 : index
    %10 = vector.load %arg3[%c0_8, %c0_9, %c0_10] : memref<1x16x4xi32, #tpu.memory_space<vmem>>, vector<1x16x4xi32>
    %11 = vector.shape_cast %10 : vector<1x16x4xi32> to vector<16x4xi32>
    %12 = tpu.iota {dimensions = array<i32: 1>} : vector<16x16xi32>
    %13 = vector.extract_strided_slice %11 {offsets = [0, 0], sizes = [16, 1], strides = [1, 1]} : vector<16x4xi32> to vector<16x1xi32>
    %14 = vector.broadcast %13 : vector<16x1xi32> to vector<16x16xi32>
    %15 = arith.cmpi eq, %14, %12 : vector<16x16xi32>
    %cst_11 = arith.constant 1.000000e+00 : f32
    %cst_12 = arith.constant 0.000000e+00 : f32
    %16 = vector.broadcast %cst_11 : f32 to vector<16x16xf32>
    %17 = vector.broadcast %cst_12 : f32 to vector<16x16xf32>
    %18 = arith.select %15, %16, %17 : vector<16x16xi1>, vector<16x16xf32>
    %19 = arith.truncf %18 : vector<16x16xf32> to vector<16x16xbf16>
    %cst_13 = arith.constant dense<0.000000e+00> : vector<16x3xf32>
    %20 = tpu.matmul %19, %1, %cst_13 {dimension_numbers = #tpu.dot_dimension_numbers<[1], [0], [0], [1], [0, 0, 1, 1], [], []>} : vector<16x16xbf16>, vector<16x3xbf16>, vector<16x3xf32> -> vector<16x3xf32>
    %21 = arith.truncf %20 : vector<16x3xf32> to vector<16x3xbf16>
    %cst_14 = arith.constant dense<0.000000e+00> : vector<16x8xf32>
    %22 = tpu.matmul %21, %7, %cst_14 {dimension_numbers = #tpu.dot_dimension_numbers<[1], [0], [0], [1], [0, 0, 1, 1], [], []>} : vector<16x3xbf16>, vector<3x8xbf16>, vector<16x8xf32> -> vector<16x8xf32>
    %23 = arith.addf %22, %9 : vector<16x8xf32>
    %24 = arith.mulf %23, %23 : vector<16x8xf32>
    %25 = vector.extract_strided_slice %11 {offsets = [0, 1], sizes = [16, 1], strides = [1, 1]} : vector<16x4xi32> to vector<16x1xi32>
    %26 = vector.broadcast %25 : vector<16x1xi32> to vector<16x16xi32>
    %27 = arith.cmpi eq, %26, %12 : vector<16x16xi32>
    %cst_15 = arith.constant 1.000000e+00 : f32
    %cst_16 = arith.constant 0.000000e+00 : f32
    %28 = vector.broadcast %cst_15 : f32 to vector<16x16xf32>
    %29 = vector.broadcast %cst_16 : f32 to vector<16x16xf32>
    %30 = arith.select %27, %28, %29 : vector<16x16xi1>, vector<16x16xf32>
    %31 = arith.truncf %30 : vector<16x16xf32> to vector<16x16xbf16>
    %cst_17 = arith.constant dense<0.000000e+00> : vector<16x3xf32>
    %32 = tpu.matmul %31, %1, %cst_17 {dimension_numbers = #tpu.dot_dimension_numbers<[1], [0], [0], [1], [0, 0, 1, 1], [], []>} : vector<16x16xbf16>, vector<16x3xbf16>, vector<16x3xf32> -> vector<16x3xf32>
    %33 = arith.truncf %32 : vector<16x3xf32> to vector<16x3xbf16>
    %cst_18 = arith.constant dense<0.000000e+00> : vector<16x8xf32>
    %34 = tpu.matmul %33, %7, %cst_18 {dimension_numbers = #tpu.dot_dimension_numbers<[1], [0], [0], [1], [0, 0, 1, 1], [], []>} : vector<16x3xbf16>, vector<3x8xbf16>, vector<16x8xf32> -> vector<16x8xf32>
    %35 = arith.addf %34, %9 : vector<16x8xf32>
    %36 = arith.maximumf %23, %35 : vector<16x8xf32>
    %37 = arith.minimumf %23, %35 : vector<16x8xf32>
    %38 = arith.addf %23, %35 : vector<16x8xf32>
    %39 = arith.mulf %35, %35 : vector<16x8xf32>
    %40 = arith.addf %24, %39 : vector<16x8xf32>
    %41 = vector.extract_strided_slice %11 {offsets = [0, 2], sizes = [16, 1], strides = [1, 1]} : vector<16x4xi32> to vector<16x1xi32>
    %42 = vector.broadcast %41 : vector<16x1xi32> to vector<16x16xi32>
    %43 = arith.cmpi eq, %42, %12 : vector<16x16xi32>
    %cst_19 = arith.constant 1.000000e+00 : f32
    %cst_20 = arith.constant 0.000000e+00 : f32
    %44 = vector.broadcast %cst_19 : f32 to vector<16x16xf32>
    %45 = vector.broadcast %cst_20 : f32 to vector<16x16xf32>
    %46 = arith.select %43, %44, %45 : vector<16x16xi1>, vector<16x16xf32>
    %47 = arith.truncf %46 : vector<16x16xf32> to vector<16x16xbf16>
    %cst_21 = arith.constant dense<0.000000e+00> : vector<16x3xf32>
    %48 = tpu.matmul %47, %1, %cst_21 {dimension_numbers = #tpu.dot_dimension_numbers<[1], [0], [0], [1], [0, 0, 1, 1], [], []>} : vector<16x16xbf16>, vector<16x3xbf16>, vector<16x3xf32> -> vector<16x3xf32>
    %49 = arith.truncf %48 : vector<16x3xf32> to vector<16x3xbf16>
    %cst_22 = arith.constant dense<0.000000e+00> : vector<16x8xf32>
    %50 = tpu.matmul %49, %7, %cst_22 {dimension_numbers = #tpu.dot_dimension_numbers<[1], [0], [0], [1], [0, 0, 1, 1], [], []>} : vector<16x3xbf16>, vector<3x8xbf16>, vector<16x8xf32> -> vector<16x8xf32>
    %51 = arith.addf %50, %9 : vector<16x8xf32>
    %52 = arith.maximumf %36, %51 : vector<16x8xf32>
    %53 = arith.minimumf %37, %51 : vector<16x8xf32>
    %54 = arith.addf %38, %51 : vector<16x8xf32>
    %55 = arith.mulf %51, %51 : vector<16x8xf32>
    %56 = arith.addf %40, %55 : vector<16x8xf32>
    %57 = vector.extract_strided_slice %11 {offsets = [0, 3], sizes = [16, 1], strides = [1, 1]} : vector<16x4xi32> to vector<16x1xi32>
    %58 = vector.broadcast %57 : vector<16x1xi32> to vector<16x16xi32>
    %59 = arith.cmpi eq, %58, %12 : vector<16x16xi32>
    %cst_23 = arith.constant 1.000000e+00 : f32
    %cst_24 = arith.constant 0.000000e+00 : f32
    %60 = vector.broadcast %cst_23 : f32 to vector<16x16xf32>
    %61 = vector.broadcast %cst_24 : f32 to vector<16x16xf32>
    %62 = arith.select %59, %60, %61 : vector<16x16xi1>, vector<16x16xf32>
    %63 = arith.truncf %62 : vector<16x16xf32> to vector<16x16xbf16>
    %cst_25 = arith.constant dense<0.000000e+00> : vector<16x3xf32>
    %64 = tpu.matmul %63, %1, %cst_25 {dimension_numbers = #tpu.dot_dimension_numbers<[1], [0], [0], [1], [0, 0, 1, 1], [], []>} : vector<16x16xbf16>, vector<16x3xbf16>, vector<16x3xf32> -> vector<16x3xf32>
    %65 = arith.truncf %64 : vector<16x3xf32> to vector<16x3xbf16>
    %cst_26 = arith.constant dense<0.000000e+00> : vector<16x8xf32>
    %66 = tpu.matmul %65, %7, %cst_26 {dimension_numbers = #tpu.dot_dimension_numbers<[1], [0], [0], [1], [0, 0, 1, 1], [], []>} : vector<16x3xbf16>, vector<3x8xbf16>, vector<16x8xf32> -> vector<16x8xf32>
    %67 = arith.addf %66, %9 : vector<16x8xf32>
    %68 = arith.maximumf %52, %67 : vector<16x8xf32>
    %69 = arith.minimumf %53, %67 : vector<16x8xf32>
    %70 = arith.addf %54, %67 : vector<16x8xf32>
    %71 = arith.mulf %67, %67 : vector<16x8xf32>
    %72 = arith.addf %56, %71 : vector<16x8xf32>
    %73 = arith.truncf %68 : vector<16x8xf32> to vector<16x8xbf16>
    %c0_27 = arith.constant 0 : index
    %c0_28 = arith.constant 0 : index
    %c0_29 = arith.constant 0 : index
    %74 = vector.load %arg6[%c0_27, %c0_28, %c0_29] : memref<1x16x8xbf16, #tpu.memory_space<vmem>>, vector<1x16x8xbf16>
    %75 = vector.shape_cast %74 : vector<1x16x8xbf16> to vector<16x8xbf16>
    %76 = vector.shape_cast %73 : vector<16x8xbf16> to vector<1x16x8xbf16>
    tpu.vector_store %arg6[%c0_27, %c0_28, %c0_29], %76 {strides = array<i32>} : memref<1x16x8xbf16, #tpu.memory_space<vmem>>, vector<1x16x8xbf16>,
    %77 = arith.truncf %69 : vector<16x8xf32> to vector<16x8xbf16>
    %c0_30 = arith.constant 0 : index
    %c0_31 = arith.constant 0 : index
    %c0_32 = arith.constant 0 : index
    %78 = vector.load %arg7[%c0_30, %c0_31, %c0_32] : memref<1x16x8xbf16, #tpu.memory_space<vmem>>, vector<1x16x8xbf16>
    %79 = vector.shape_cast %78 : vector<1x16x8xbf16> to vector<16x8xbf16>
    %80 = vector.shape_cast %77 : vector<16x8xbf16> to vector<1x16x8xbf16>
    tpu.vector_store %arg7[%c0_30, %c0_31, %c0_32], %80 {strides = array<i32>} : memref<1x16x8xbf16, #tpu.memory_space<vmem>>, vector<1x16x8xbf16>,
    %cst_33 = arith.constant dense<0.000000e+00> : vector<8xf32>
    %81 = vector.multi_reduction <add>, %70, %cst_33 [0] : vector<16x8xf32> to vector<8xf32>
    %82 = vector.shape_cast %81 : vector<8xf32> to vector<1x8xf32>
    %c0_34 = arith.constant 0 : index
    %c0_35 = arith.constant 0 : index
    %c0_36 = arith.constant 0 : index
    %c0_37 = arith.constant 0 : index
    %83 = vector.load %arg8[%c0_34, %c0_35, %c0_36, %c0_37] : memref<1x1x1x8xf32, #tpu.memory_space<vmem>>, vector<1x1x1x8xf32>
    %84 = vector.shape_cast %83 : vector<1x1x1x8xf32> to vector<1x8xf32>
    %85 = vector.shape_cast %82 : vector<1x8xf32> to vector<1x1x1x8xf32>
    tpu.vector_store %arg8[%c0_34, %c0_35, %c0_36, %c0_37], %85 {strides = array<i32>} : memref<1x1x1x8xf32, #tpu.memory_space<vmem>>, vector<1x1x1x8xf32>,
    %cst_38 = arith.constant dense<0.000000e+00> : vector<8xf32>
    %86 = vector.multi_reduction <add>, %72, %cst_38 [0] : vector<16x8xf32> to vector<8xf32>
    %87 = vector.shape_cast %86 : vector<8xf32> to vector<1x8xf32>
    %c0_39 = arith.constant 0 : index
    %c0_40 = arith.constant 0 : index
    %c0_41 = arith.constant 0 : index
    %c0_42 = arith.constant 0 : index
    %88 = vector.load %arg9[%c0_39, %c0_40, %c0_41, %c0_42] : memref<1x1x1x8xf32, #tpu.memory_space<vmem>>, vector<1x1x1x8xf32>
    %89 = vector.shape_cast %88 : vector<1x1x1x8xf32> to vector<1x8xf32>
    %90 = vector.shape_cast %87 : vector<1x8xf32> to vector<1x1x1x8xf32>
    tpu.vector_store %arg9[%c0_39, %c0_40, %c0_41, %c0_42], %90 {strides = array<i32>} : memref<1x1x1x8xf32, #tpu.memory_space<vmem>>, vector<1x1x1x8xf32>,
    return
  }
  func.func @transform_0(%arg0: i32, %arg1: i32) -> (i32, i32, i32) {
    %c0_i32 = arith.constant 0 : i32
    %c0_i32_0 = arith.constant 0 : i32
    %c0_i32_1 = arith.constant 0 : i32
    return %arg0, %c0_i32, %c0_i32_0 : i32, i32, i32
  }
  func.func @transform_1(%arg0: i32, %arg1: i32) -> (i32, i32, i32) {
    %c0_i32 = arith.constant 0 : i32
    %c0_i32_0 = arith.constant 0 : i32
    return %arg0, %arg1, %c0_i32 : i32, i32, i32
  }
  func.func @transform_2(%arg0: i32, %arg1: i32) -> (i32, i32) {
    %c0_i32 = arith.constant 0 : i32
    %c0_i32_0 = arith.constant 0 : i32
    %c0_i32_1 = arith.constant 0 : i32
    return %c0_i32, %c0_i32_0 : i32, i32
  }
  func.func @transform_3(%arg0: i32, %arg1: i32) -> (i32, i32) {
    %c0_i32 = arith.constant 0 : i32
    %c0_i32_0 = arith.constant 0 : i32
    %c0_i32_1 = arith.constant 0 : i32
    return %c0_i32, %c0_i32_0 : i32, i32
  }
  func.func @transform_4(%arg0: i32, %arg1: i32) -> (i32, i32, i32) {
    %c0_i32 = arith.constant 0 : i32
    %c0_i32_0 = arith.constant 0 : i32
    return %arg0, %arg1, %c0_i32 : i32, i32, i32
  }
  func.func @transform_5(%arg0: i32, %arg1: i32) -> (i32, i32, i32) {
    %c0_i32 = arith.constant 0 : i32
    %c0_i32_0 = arith.constant 0 : i32
    return %arg0, %arg1, %c0_i32 : i32, i32, i32
  }
  func.func @transform_6(%arg0: i32, %arg1: i32) -> (i32, i32, i32, i32) {
    %c0_i32 = arith.constant 0 : i32
    %c0_i32_0 = arith.constant 0 : i32
    %c0_i32_1 = arith.constant 0 : i32
    return %arg0, %arg1, %c0_i32, %c0_i32_0 : i32, i32, i32, i32
  }
  func.func @transform_7(%arg0: i32, %arg1: i32) -> (i32, i32, i32, i32) {
    %c0_i32 = arith.constant 0 : i32
    %c0_i32_0 = arith.constant 0 : i32
    %c0_i32_1 = arith.constant 0 : i32
    return %arg0, %arg1, %c0_i32, %c0_i32_0 : i32, i32, i32, i32
  }
}

module attributes {stable_mosaic.version = 11 : i64} {
  func.func @_bn_leaky_kernel(%arg0: i32, %arg1: memref<32x8xbf16, #tpu.memory_space<vmem>>, %arg2: memref<1x8xf32, #tpu.memory_space<vmem>>, %arg3: memref<1x8xf32, #tpu.memory_space<vmem>>, %arg4: memref<32x8xf32, #tpu.memory_space<vmem>>) attributes {dimension_semantics = [#tpu.dimension_semantics<parallel>], iteration_bounds = array<i64: 1>, scalar_prefetch = 0 : i64, scratch_operands = 0 : i64, tpu.core_type = #tpu.core_type<tc>, window_params = [{transform_indices = @transform_0, window_bounds = array<i64: 32, 8>}, {pipeline_mode = #tpu.pipeline_mode<synchronous>, transform_indices = @transform_1, window_bounds = array<i64: 1, 8>}, {pipeline_mode = #tpu.pipeline_mode<synchronous>, transform_indices = @transform_2, window_bounds = array<i64: 1, 8>}, {transform_indices = @transform_3, window_bounds = array<i64: 32, 8>}]} {
    %c0 = arith.constant 0 : index
    %c0_0 = arith.constant 0 : index
    %0 = vector.load %arg1[%c0, %c0_0] : memref<32x8xbf16, #tpu.memory_space<vmem>>, vector<32x8xbf16>
    %1 = arith.extf %0 : vector<32x8xbf16> to vector<32x8xf32>
    %c0_1 = arith.constant 0 : index
    %c0_2 = arith.constant 0 : index
    %2 = vector.load %arg2[%c0_1, %c0_2] : memref<1x8xf32, #tpu.memory_space<vmem>>, vector<1x8xf32>
    %3 = vector.broadcast %2 : vector<1x8xf32> to vector<32x8xf32>
    %4 = arith.mulf %1, %3 : vector<32x8xf32>
    %c0_3 = arith.constant 0 : index
    %c0_4 = arith.constant 0 : index
    %5 = vector.load %arg3[%c0_3, %c0_4] : memref<1x8xf32, #tpu.memory_space<vmem>>, vector<1x8xf32>
    %6 = vector.broadcast %5 : vector<1x8xf32> to vector<32x8xf32>
    %7 = arith.addf %4, %6 : vector<32x8xf32>
    %cst = arith.constant 0.000000e+00 : f32
    %8 = vector.broadcast %cst : f32 to vector<32x8xf32>
    %9 = arith.cmpf ogt, %7, %8 : vector<32x8xf32>
    %cst_5 = arith.constant 2.000000e-01 : f32
    %10 = vector.broadcast %cst_5 : f32 to vector<32x8xf32>
    %11 = arith.mulf %10, %7 : vector<32x8xf32>
    %12 = arith.select %9, %7, %11 : vector<32x8xi1>, vector<32x8xf32>
    %c0_6 = arith.constant 0 : index
    %c0_7 = arith.constant 0 : index
    %13 = vector.load %arg4[%c0_6, %c0_7] : memref<32x8xf32, #tpu.memory_space<vmem>>, vector<32x8xf32>
    tpu.vector_store %arg4[%c0_6, %c0_7], %12 {strides = array<i32>} : memref<32x8xf32, #tpu.memory_space<vmem>>, vector<32x8xf32>,
    return
  }
  func.func @transform_0(%arg0: i32) -> (i32, i32) {
    %c0_i32 = arith.constant 0 : i32
    %c0_i32_0 = arith.constant 0 : i32
    return %arg0, %c0_i32 : i32, i32
  }
  func.func @transform_1(%arg0: i32) -> (i32, i32) {
    %c0_i32 = arith.constant 0 : i32
    %c0_i32_0 = arith.constant 0 : i32
    %c0_i32_1 = arith.constant 0 : i32
    return %c0_i32, %c0_i32_0 : i32, i32
  }
  func.func @transform_2(%arg0: i32) -> (i32, i32) {
    %c0_i32 = arith.constant 0 : i32
    %c0_i32_0 = arith.constant 0 : i32
    %c0_i32_1 = arith.constant 0 : i32
    return %c0_i32, %c0_i32_0 : i32, i32
  }
  func.func @transform_3(%arg0: i32) -> (i32, i32) {
    %c0_i32 = arith.constant 0 : i32
    %c0_i32_0 = arith.constant 0 : i32
    return %arg0, %c0_i32 : i32, i32
  }
}

module attributes {stable_mosaic.version = 11 : i64} {
  func.func @_cat_mlp_kernel(%arg0: i32, %arg1: memref<32x8xbf16, #tpu.memory_space<vmem>>, %arg2: memref<32x8xbf16, #tpu.memory_space<vmem>>, %arg3: memref<32x8xbf16, #tpu.memory_space<vmem>>, %arg4: memref<32x8xbf16, #tpu.memory_space<vmem>>, %arg5: memref<1x8xf32, #tpu.memory_space<vmem>>, %arg6: memref<1x8xf32, #tpu.memory_space<vmem>>, %arg7: memref<1x8xf32, #tpu.memory_space<vmem>>, %arg8: memref<1x8xf32, #tpu.memory_space<vmem>>, %arg9: memref<8x8xbf16, #tpu.memory_space<vmem>>, %arg10: memref<8x8xbf16, #tpu.memory_space<vmem>>, %arg11: memref<32x8xbf16, #tpu.memory_space<vmem>>, %arg12: memref<1x1x8xf32, #tpu.memory_space<vmem>>, %arg13: memref<1x1x8xf32, #tpu.memory_space<vmem>>) attributes {dimension_semantics = [#tpu.dimension_semantics<parallel>], iteration_bounds = array<i64: 1>, scalar_prefetch = 0 : i64, scratch_operands = 0 : i64, tpu.core_type = #tpu.core_type<tc>, window_params = [{transform_indices = @transform_0, window_bounds = array<i64: 32, 8>}, {transform_indices = @transform_1, window_bounds = array<i64: 32, 8>}, {transform_indices = @transform_2, window_bounds = array<i64: 32, 8>}, {transform_indices = @transform_3, window_bounds = array<i64: 32, 8>}, {pipeline_mode = #tpu.pipeline_mode<synchronous>, transform_indices = @transform_4, window_bounds = array<i64: 1, 8>}, {pipeline_mode = #tpu.pipeline_mode<synchronous>, transform_indices = @transform_5, window_bounds = array<i64: 1, 8>}, {pipeline_mode = #tpu.pipeline_mode<synchronous>, transform_indices = @transform_6, window_bounds = array<i64: 1, 8>}, {pipeline_mode = #tpu.pipeline_mode<synchronous>, transform_indices = @transform_7, window_bounds = array<i64: 1, 8>}, {pipeline_mode = #tpu.pipeline_mode<synchronous>, transform_indices = @transform_8, window_bounds = array<i64: 8, 8>}, {pipeline_mode = #tpu.pipeline_mode<synchronous>, transform_indices = @transform_9, window_bounds = array<i64: 8, 8>}, {transform_indices = @transform_10, window_bounds = array<i64: 32, 8>}, {transform_indices = @transform_11, window_bounds = array<i64: 1, 1, 8>}, {transform_indices = @transform_12, window_bounds = array<i64: 1, 1, 8>}]} {
    %c0 = arith.constant 0 : index
    %c0_0 = arith.constant 0 : index
    %0 = vector.load %arg5[%c0, %c0_0] : memref<1x8xf32, #tpu.memory_space<vmem>>, vector<1x8xf32>
    %cst = arith.constant 0.000000e+00 : f32
    %1 = vector.broadcast %cst : f32 to vector<1x8xf32>
    %2 = arith.cmpf oge, %0, %1 : vector<1x8xf32>
    %c0_1 = arith.constant 0 : index
    %c0_2 = arith.constant 0 : index
    %3 = vector.load %arg1[%c0_1, %c0_2] : memref<32x8xbf16, #tpu.memory_space<vmem>>, vector<32x8xbf16>
    %4 = arith.extf %3 : vector<32x8xbf16> to vector<32x8xf32>
    %c0_3 = arith.constant 0 : index
    %c0_4 = arith.constant 0 : index
    %5 = vector.load %arg2[%c0_3, %c0_4] : memref<32x8xbf16, #tpu.memory_space<vmem>>, vector<32x8xbf16>
    %6 = arith.extf %5 : vector<32x8xbf16> to vector<32x8xf32>
    %7 = vector.shape_cast %2 : vector<1x8xi1> to vector<1x8xi1>
    %8 = vector.broadcast %7 : vector<1x8xi1> to vector<32x8xi1>
    %9 = arith.select %8, %4, %6 : vector<32x8xi1>, vector<32x8xf32>
    %10 = vector.broadcast %0 : vector<1x8xf32> to vector<32x8xf32>
    %11 = arith.mulf %9, %10 : vector<32x8xf32>
    %c0_5 = arith.constant 0 : index
    %c0_6 = arith.constant 0 : index
    %12 = vector.load %arg6[%c0_5, %c0_6] : memref<1x8xf32, #tpu.memory_space<vmem>>, vector<1x8xf32>
    %13 = vector.broadcast %12 : vector<1x8xf32> to vector<32x8xf32>
    %14 = arith.addf %11, %13 : vector<32x8xf32>
    %cst_7 = arith.constant 0.000000e+00 : f32
    %15 = vector.broadcast %cst_7 : f32 to vector<32x8xf32>
    %16 = arith.cmpf ogt, %14, %15 : vector<32x8xf32>
    %cst_8 = arith.constant 2.000000e-01 : f32
    %17 = vector.broadcast %cst_8 : f32 to vector<32x8xf32>
    %18 = arith.mulf %17, %14 : vector<32x8xf32>
    %19 = arith.select %16, %14, %18 : vector<32x8xi1>, vector<32x8xf32>
    %c0_9 = arith.constant 0 : index
    %c0_10 = arith.constant 0 : index
    %20 = vector.load %arg7[%c0_9, %c0_10] : memref<1x8xf32, #tpu.memory_space<vmem>>, vector<1x8xf32>
    %cst_11 = arith.constant 0.000000e+00 : f32
    %21 = vector.broadcast %cst_11 : f32 to vector<1x8xf32>
    %22 = arith.cmpf oge, %20, %21 : vector<1x8xf32>
    %c0_12 = arith.constant 0 : index
    %c0_13 = arith.constant 0 : index
    %23 = vector.load %arg3[%c0_12, %c0_13] : memref<32x8xbf16, #tpu.memory_space<vmem>>, vector<32x8xbf16>
    %24 = arith.extf %23 : vector<32x8xbf16> to vector<32x8xf32>
    %c0_14 = arith.constant 0 : index
    %c0_15 = arith.constant 0 : index
    %25 = vector.load %arg4[%c0_14, %c0_15] : memref<32x8xbf16, #tpu.memory_space<vmem>>, vector<32x8xbf16>
    %26 = arith.extf %25 : vector<32x8xbf16> to vector<32x8xf32>
    %27 = vector.shape_cast %22 : vector<1x8xi1> to vector<1x8xi1>
    %28 = vector.broadcast %27 : vector<1x8xi1> to vector<32x8xi1>
    %29 = arith.select %28, %24, %26 : vector<32x8xi1>, vector<32x8xf32>
    %30 = vector.broadcast %20 : vector<1x8xf32> to vector<32x8xf32>
    %31 = arith.mulf %29, %30 : vector<32x8xf32>
    %c0_16 = arith.constant 0 : index
    %c0_17 = arith.constant 0 : index
    %32 = vector.load %arg8[%c0_16, %c0_17] : memref<1x8xf32, #tpu.memory_space<vmem>>, vector<1x8xf32>
    %33 = vector.broadcast %32 : vector<1x8xf32> to vector<32x8xf32>
    %34 = arith.addf %31, %33 : vector<32x8xf32>
    %cst_18 = arith.constant 0.000000e+00 : f32
    %35 = vector.broadcast %cst_18 : f32 to vector<32x8xf32>
    %36 = arith.cmpf ogt, %34, %35 : vector<32x8xf32>
    %cst_19 = arith.constant 2.000000e-01 : f32
    %37 = vector.broadcast %cst_19 : f32 to vector<32x8xf32>
    %38 = arith.mulf %37, %34 : vector<32x8xf32>
    %39 = arith.select %36, %34, %38 : vector<32x8xi1>, vector<32x8xf32>
    %40 = arith.truncf %19 : vector<32x8xf32> to vector<32x8xbf16>
    %c0_20 = arith.constant 0 : index
    %c0_21 = arith.constant 0 : index
    %41 = vector.load %arg9[%c0_20, %c0_21] : memref<8x8xbf16, #tpu.memory_space<vmem>>, vector<8x8xbf16>
    %cst_22 = arith.constant dense<0.000000e+00> : vector<32x8xf32>
    %42 = tpu.matmul %40, %41, %cst_22 {dimension_numbers = #tpu.dot_dimension_numbers<[1], [0], [0], [1], [0, 0, 1, 1], [], []>} : vector<32x8xbf16>, vector<8x8xbf16>, vector<32x8xf32> -> vector<32x8xf32>
    %43 = arith.truncf %39 : vector<32x8xf32> to vector<32x8xbf16>
    %c0_23 = arith.constant 0 : index
    %c0_24 = arith.constant 0 : index
    %44 = vector.load %arg10[%c0_23, %c0_24] : memref<8x8xbf16, #tpu.memory_space<vmem>>, vector<8x8xbf16>
    %cst_25 = arith.constant dense<0.000000e+00> : vector<32x8xf32>
    %45 = tpu.matmul %43, %44, %cst_25 {dimension_numbers = #tpu.dot_dimension_numbers<[1], [0], [0], [1], [0, 0, 1, 1], [], []>} : vector<32x8xbf16>, vector<8x8xbf16>, vector<32x8xf32> -> vector<32x8xf32>
    %46 = arith.addf %42, %45 : vector<32x8xf32>
    %47 = arith.truncf %46 : vector<32x8xf32> to vector<32x8xbf16>
    %c0_26 = arith.constant 0 : index
    %c0_27 = arith.constant 0 : index
    %48 = vector.load %arg11[%c0_26, %c0_27] : memref<32x8xbf16, #tpu.memory_space<vmem>>, vector<32x8xbf16>
    tpu.vector_store %arg11[%c0_26, %c0_27], %47 {strides = array<i32>} : memref<32x8xbf16, #tpu.memory_space<vmem>>, vector<32x8xbf16>,
    %cst_28 = arith.constant dense<0.000000e+00> : vector<8xf32>
    %49 = vector.multi_reduction <add>, %46, %cst_28 [0] : vector<32x8xf32> to vector<8xf32>
    %50 = vector.shape_cast %49 : vector<8xf32> to vector<1x8xf32>
    %c0_29 = arith.constant 0 : index
    %c0_30 = arith.constant 0 : index
    %c0_31 = arith.constant 0 : index
    %51 = vector.load %arg12[%c0_29, %c0_30, %c0_31] : memref<1x1x8xf32, #tpu.memory_space<vmem>>, vector<1x1x8xf32>
    %52 = vector.shape_cast %51 : vector<1x1x8xf32> to vector<1x8xf32>
    %53 = vector.shape_cast %50 : vector<1x8xf32> to vector<1x1x8xf32>
    tpu.vector_store %arg12[%c0_29, %c0_30, %c0_31], %53 {strides = array<i32>} : memref<1x1x8xf32, #tpu.memory_space<vmem>>, vector<1x1x8xf32>,
    %54 = arith.mulf %46, %46 : vector<32x8xf32>
    %cst_32 = arith.constant dense<0.000000e+00> : vector<8xf32>
    %55 = vector.multi_reduction <add>, %54, %cst_32 [0] : vector<32x8xf32> to vector<8xf32>
    %56 = vector.shape_cast %55 : vector<8xf32> to vector<1x8xf32>
    %c0_33 = arith.constant 0 : index
    %c0_34 = arith.constant 0 : index
    %c0_35 = arith.constant 0 : index
    %57 = vector.load %arg13[%c0_33, %c0_34, %c0_35] : memref<1x1x8xf32, #tpu.memory_space<vmem>>, vector<1x1x8xf32>
    %58 = vector.shape_cast %57 : vector<1x1x8xf32> to vector<1x8xf32>
    %59 = vector.shape_cast %56 : vector<1x8xf32> to vector<1x1x8xf32>
    tpu.vector_store %arg13[%c0_33, %c0_34, %c0_35], %59 {strides = array<i32>} : memref<1x1x8xf32, #tpu.memory_space<vmem>>, vector<1x1x8xf32>,
    return
  }
  func.func @transform_0(%arg0: i32) -> (i32, i32) {
    %c0_i32 = arith.constant 0 : i32
    %c0_i32_0 = arith.constant 0 : i32
    return %arg0, %c0_i32 : i32, i32
  }
  func.func @transform_1(%arg0: i32) -> (i32, i32) {
    %c0_i32 = arith.constant 0 : i32
    %c0_i32_0 = arith.constant 0 : i32
    return %arg0, %c0_i32 : i32, i32
  }
  func.func @transform_2(%arg0: i32) -> (i32, i32) {
    %c0_i32 = arith.constant 0 : i32
    %c0_i32_0 = arith.constant 0 : i32
    return %arg0, %c0_i32 : i32, i32
  }
  func.func @transform_3(%arg0: i32) -> (i32, i32) {
    %c0_i32 = arith.constant 0 : i32
    %c0_i32_0 = arith.constant 0 : i32
    return %arg0, %c0_i32 : i32, i32
  }
  func.func @transform_4(%arg0: i32) -> (i32, i32) {
    %c0_i32 = arith.constant 0 : i32
    %c0_i32_0 = arith.constant 0 : i32
    %c0_i32_1 = arith.constant 0 : i32
    return %c0_i32, %c0_i32_0 : i32, i32
  }
  func.func @transform_5(%arg0: i32) -> (i32, i32) {
    %c0_i32 = arith.constant 0 : i32
    %c0_i32_0 = arith.constant 0 : i32
    %c0_i32_1 = arith.constant 0 : i32
    return %c0_i32, %c0_i32_0 : i32, i32
  }
  func.func @transform_6(%arg0: i32) -> (i32, i32) {
    %c0_i32 = arith.constant 0 : i32
    %c0_i32_0 = arith.constant 0 : i32
    %c0_i32_1 = arith.constant 0 : i32
    return %c0_i32, %c0_i32_0 : i32, i32
  }
  func.func @transform_7(%arg0: i32) -> (i32, i32) {
    %c0_i32 = arith.constant 0 : i32
    %c0_i32_0 = arith.constant 0 : i32
    %c0_i32_1 = arith.constant 0 : i32
    return %c0_i32, %c0_i32_0 : i32, i32
  }
  func.func @transform_8(%arg0: i32) -> (i32, i32) {
    %c0_i32 = arith.constant 0 : i32
    %c0_i32_0 = arith.constant 0 : i32
    %c0_i32_1 = arith.constant 0 : i32
    return %c0_i32, %c0_i32_0 : i32, i32
  }
  func.func @transform_9(%arg0: i32) -> (i32, i32) {
    %c0_i32 = arith.constant 0 : i32
    %c0_i32_0 = arith.constant 0 : i32
    %c0_i32_1 = arith.constant 0 : i32
    return %c0_i32, %c0_i32_0 : i32, i32
  }
  func.func @transform_10(%arg0: i32) -> (i32, i32) {
    %c0_i32 = arith.constant 0 : i32
    %c0_i32_0 = arith.constant 0 : i32
    return %arg0, %c0_i32 : i32, i32
  }
  func.func @transform_11(%arg0: i32) -> (i32, i32, i32) {
    %c0_i32 = arith.constant 0 : i32
    %c0_i32_0 = arith.constant 0 : i32
    %c0_i32_1 = arith.constant 0 : i32
    return %arg0, %c0_i32, %c0_i32_0 : i32, i32, i32
  }
  func.func @transform_12(%arg0: i32) -> (i32, i32, i32) {
    %c0_i32 = arith.constant 0 : i32
    %c0_i32_0 = arith.constant 0 : i32
    %c0_i32_1 = arith.constant 0 : i32
    return %arg0, %c0_i32, %c0_i32_0 : i32, i32, i32
  }
}

module attributes {stable_mosaic.version = 11 : i64} {
  func.func @_pdist_kernel(%arg0: i32, %arg1: i32, %arg2: memref<1x16x8xf32, #tpu.memory_space<vmem>>, %arg3: memref<1x8x16xf32, #tpu.memory_space<vmem>>, %arg4: memref<1x1x16xf32, #tpu.memory_space<vmem>>, %arg5: memref<1x16x16xf32, #tpu.memory_space<vmem>>) attributes {dimension_semantics = [#tpu.dimension_semantics<parallel>, #tpu.dimension_semantics<parallel>], iteration_bounds = array<i64: 2, 1>, scalar_prefetch = 0 : i64, scratch_operands = 0 : i64, tpu.core_type = #tpu.core_type<tc>, window_params = [{transform_indices = @transform_0, window_bounds = array<i64: 1, 16, 8>}, {transform_indices = @transform_1, window_bounds = array<i64: 1, 8, 16>}, {transform_indices = @transform_2, window_bounds = array<i64: 1, 1, 16>}, {transform_indices = @transform_3, window_bounds = array<i64: 1, 16, 16>}]} {
    %c0 = arith.constant 0 : index
    %c0_0 = arith.constant 0 : index
    %c0_1 = arith.constant 0 : index
    %0 = vector.load %arg2[%c0, %c0_0, %c0_1] : memref<1x16x8xf32, #tpu.memory_space<vmem>>, vector<1x16x8xf32>
    %1 = vector.shape_cast %0 : vector<1x16x8xf32> to vector<16x8xf32>
    %c0_2 = arith.constant 0 : index
    %c0_3 = arith.constant 0 : index
    %c0_4 = arith.constant 0 : index
    %2 = vector.load %arg3[%c0_2, %c0_3, %c0_4] : memref<1x8x16xf32, #tpu.memory_space<vmem>>, vector<1x8x16xf32>
    %3 = vector.shape_cast %2 : vector<1x8x16xf32> to vector<8x16xf32>
    %cst = arith.constant dense<0.000000e+00> : vector<16x16xf32>
    %4 = tpu.matmul %1, %3, %cst {dimension_numbers = #tpu.dot_dimension_numbers<[1], [0], [0], [1], [0, 0, 1, 1], [], []>} : vector<16x8xf32>, vector<8x16xf32>, vector<16x16xf32> -> vector<16x16xf32>
    %cst_5 = arith.constant 2.000000e+00 : f32
    %5 = vector.broadcast %cst_5 : f32 to vector<16x16xf32>
    %6 = arith.mulf %5, %4 : vector<16x16xf32>
    %c0_6 = arith.constant 0 : index
    %c0_7 = arith.constant 0 : index
    %c0_8 = arith.constant 0 : index
    %7 = vector.load %arg4[%c0_6, %c0_7, %c0_8] : memref<1x1x16xf32, #tpu.memory_space<vmem>>, vector<1x1x16xf32>
    %8 = vector.shape_cast %7 : vector<1x1x16xf32> to vector<1x16xf32>
    %9 = vector.broadcast %8 : vector<1x16xf32> to vector<16x16xf32>
    %10 = arith.subf %6, %9 : vector<16x16xf32>
    %c0_9 = arith.constant 0 : index
    %c0_10 = arith.constant 0 : index
    %c0_11 = arith.constant 0 : index
    %11 = vector.load %arg5[%c0_9, %c0_10, %c0_11] : memref<1x16x16xf32, #tpu.memory_space<vmem>>, vector<1x16x16xf32>
    %12 = vector.shape_cast %11 : vector<1x16x16xf32> to vector<16x16xf32>
    %13 = vector.shape_cast %10 : vector<16x16xf32> to vector<1x16x16xf32>
    tpu.vector_store %arg5[%c0_9, %c0_10, %c0_11], %13 {strides = array<i32>} : memref<1x16x16xf32, #tpu.memory_space<vmem>>, vector<1x16x16xf32>,
    return
  }
  func.func @transform_0(%arg0: i32, %arg1: i32) -> (i32, i32, i32) {
    %c0_i32 = arith.constant 0 : i32
    %c0_i32_0 = arith.constant 0 : i32
    return %arg0, %arg1, %c0_i32 : i32, i32, i32
  }
  func.func @transform_1(%arg0: i32, %arg1: i32) -> (i32, i32, i32) {
    %c0_i32 = arith.constant 0 : i32
    %c0_i32_0 = arith.constant 0 : i32
    %c0_i32_1 = arith.constant 0 : i32
    return %arg0, %c0_i32, %c0_i32_0 : i32, i32, i32
  }
  func.func @transform_2(%arg0: i32, %arg1: i32) -> (i32, i32, i32) {
    %c0_i32 = arith.constant 0 : i32
    %c0_i32_0 = arith.constant 0 : i32
    %c0_i32_1 = arith.constant 0 : i32
    return %arg0, %c0_i32, %c0_i32_0 : i32, i32, i32
  }
  func.func @transform_3(%arg0: i32, %arg1: i32) -> (i32, i32, i32) {
    %c0_i32 = arith.constant 0 : i32
    %c0_i32_0 = arith.constant 0 : i32
    return %arg0, %arg1, %c0_i32 : i32, i32, i32
  }
}

module attributes {stable_mosaic.version = 11 : i64} {
  func.func @_edge_kernel(%arg0: i32, %arg1: i32, %arg2: memref<1x16x8xbf16, #tpu.memory_space<vmem>>, %arg3: memref<1x16x4xi32, #tpu.memory_space<vmem>>, %arg4: memref<8x16xbf16, #tpu.memory_space<vmem>>, %arg5: memref<8x16xbf16, #tpu.memory_space<vmem>>, %arg6: memref<1x16x16xbf16, #tpu.memory_space<vmem>>, %arg7: memref<1x16x16xbf16, #tpu.memory_space<vmem>>, %arg8: memref<1x1x1x16xf32, #tpu.memory_space<vmem>>, %arg9: memref<1x1x1x16xf32, #tpu.memory_space<vmem>>) attributes {dimension_semantics = [#tpu.dimension_semantics<parallel>, #tpu.dimension_semantics<parallel>], iteration_bounds = array<i64: 2, 1>, scalar_prefetch = 0 : i64, scratch_operands = 0 : i64, tpu.core_type = #tpu.core_type<tc>, window_params = [{transform_indices = @transform_0, window_bounds = array<i64: 1, 16, 8>}, {transform_indices = @transform_1, window_bounds = array<i64: 1, 16, 4>}, {pipeline_mode = #tpu.pipeline_mode<synchronous>, transform_indices = @transform_2, window_bounds = array<i64: 8, 16>}, {pipeline_mode = #tpu.pipeline_mode<synchronous>, transform_indices = @transform_3, window_bounds = array<i64: 8, 16>}, {transform_indices = @transform_4, window_bounds = array<i64: 1, 16, 16>}, {transform_indices = @transform_5, window_bounds = array<i64: 1, 16, 16>}, {transform_indices = @transform_6, window_bounds = array<i64: 1, 1, 1, 16>}, {transform_indices = @transform_7, window_bounds = array<i64: 1, 1, 1, 16>}]} {
    %c0 = arith.constant 0 : index
    %c0_0 = arith.constant 0 : index
    %c0_1 = arith.constant 0 : index
    %0 = vector.load %arg2[%c0, %c0_0, %c0_1] : memref<1x16x8xbf16, #tpu.memory_space<vmem>>, vector<1x16x8xbf16>
    %1 = vector.shape_cast %0 : vector<1x16x8xbf16> to vector<16x8xbf16>
    %c16_i32 = arith.constant 16 : i32
    %2 = arith.muli %arg1, %c16_i32 : i32
    %3 = tpu.assume_multiple %2, 16 : i32
    %c0_2 = arith.constant 0 : index
    %4 = arith.index_cast %3 : i32 to index
    %c0_3 = arith.constant 0 : index
    %5 = vector.load %arg2[%c0_2, %4, %c0_3] : memref<1x16x8xbf16, #tpu.memory_space<vmem>>, vector<1x16x8xbf16>
    %6 = vector.shape_cast %5 : vector<1x16x8xbf16> to vector<16x8xbf16>
    %c0_4 = arith.constant 0 : index
    %c0_5 = arith.constant 0 : index
    %7 = vector.load %arg4[%c0_4, %c0_5] : memref<8x16xbf16, #tpu.memory_space<vmem>>, vector<8x16xbf16>
    %c0_6 = arith.constant 0 : index
    %c0_7 = arith.constant 0 : index
    %8 = vector.load %arg5[%c0_6, %c0_7] : memref<8x16xbf16, #tpu.memory_space<vmem>>, vector<8x16xbf16>
    %cst = arith.constant dense<0.000000e+00> : vector<16x16xf32>
    %9 = tpu.matmul %6, %8, %cst {dimension_numbers = #tpu.dot_dimension_numbers<[1], [0], [0], [1], [0, 0, 1, 1], [], []>} : vector<16x8xbf16>, vector<8x16xbf16>, vector<16x16xf32> -> vector<16x16xf32>
    %c0_8 = arith.constant 0 : index
    %c0_9 = arith.constant 0 : index
    %c0_10 = arith.constant 0 : index
    %10 = vector.load %arg3[%c0_8, %c0_9, %c0_10] : memref<1x16x4xi32, #tpu.memory_space<vmem>>, vector<1x16x4xi32>
    %11 = vector.shape_cast %10 : vector<1x16x4xi32> to vector<16x4xi32>
    %12 = tpu.iota {dimensions = array<i32: 1>} : vector<16x16xi32>
    %13 = vector.extract_strided_slice %11 {offsets = [0, 0], sizes = [16, 1], strides = [1, 1]} : vector<16x4xi32> to vector<16x1xi32>
    %14 = vector.broadcast %13 : vector<16x1xi32> to vector<16x16xi32>
    %15 = arith.cmpi eq, %14, %12 : vector<16x16xi32>
    %cst_11 = arith.constant 1.000000e+00 : f32
    %cst_12 = arith.constant 0.000000e+00 : f32
    %16 = vector.broadcast %cst_11 : f32 to vector<16x16xf32>
    %17 = vector.broadcast %cst_12 : f32 to vector<16x16xf32>
    %18 = arith.select %15, %16, %17 : vector<16x16xi1>, vector<16x16xf32>
    %19 = arith.truncf %18 : vector<16x16xf32> to vector<16x16xbf16>
    %cst_13 = arith.constant dense<0.000000e+00> : vector<16x8xf32>
    %20 = tpu.matmul %19, %1, %cst_13 {dimension_numbers = #tpu.dot_dimension_numbers<[1], [0], [0], [1], [0, 0, 1, 1], [], []>} : vector<16x16xbf16>, vector<16x8xbf16>, vector<16x8xf32> -> vector<16x8xf32>
    %21 = arith.truncf %20 : vector<16x8xf32> to vector<16x8xbf16>
    %cst_14 = arith.constant dense<0.000000e+00> : vector<16x16xf32>
    %22 = tpu.matmul %21, %7, %cst_14 {dimension_numbers = #tpu.dot_dimension_numbers<[1], [0], [0], [1], [0, 0, 1, 1], [], []>} : vector<16x8xbf16>, vector<8x16xbf16>, vector<16x16xf32> -> vector<16x16xf32>
    %23 = arith.addf %22, %9 : vector<16x16xf32>
    %24 = arith.mulf %23, %23 : vector<16x16xf32>
    %25 = vector.extract_strided_slice %11 {offsets = [0, 1], sizes = [16, 1], strides = [1, 1]} : vector<16x4xi32> to vector<16x1xi32>
    %26 = vector.broadcast %25 : vector<16x1xi32> to vector<16x16xi32>
    %27 = arith.cmpi eq, %26, %12 : vector<16x16xi32>
    %cst_15 = arith.constant 1.000000e+00 : f32
    %cst_16 = arith.constant 0.000000e+00 : f32
    %28 = vector.broadcast %cst_15 : f32 to vector<16x16xf32>
    %29 = vector.broadcast %cst_16 : f32 to vector<16x16xf32>
    %30 = arith.select %27, %28, %29 : vector<16x16xi1>, vector<16x16xf32>
    %31 = arith.truncf %30 : vector<16x16xf32> to vector<16x16xbf16>
    %cst_17 = arith.constant dense<0.000000e+00> : vector<16x8xf32>
    %32 = tpu.matmul %31, %1, %cst_17 {dimension_numbers = #tpu.dot_dimension_numbers<[1], [0], [0], [1], [0, 0, 1, 1], [], []>} : vector<16x16xbf16>, vector<16x8xbf16>, vector<16x8xf32> -> vector<16x8xf32>
    %33 = arith.truncf %32 : vector<16x8xf32> to vector<16x8xbf16>
    %cst_18 = arith.constant dense<0.000000e+00> : vector<16x16xf32>
    %34 = tpu.matmul %33, %7, %cst_18 {dimension_numbers = #tpu.dot_dimension_numbers<[1], [0], [0], [1], [0, 0, 1, 1], [], []>} : vector<16x8xbf16>, vector<8x16xbf16>, vector<16x16xf32> -> vector<16x16xf32>
    %35 = arith.addf %34, %9 : vector<16x16xf32>
    %36 = arith.maximumf %23, %35 : vector<16x16xf32>
    %37 = arith.minimumf %23, %35 : vector<16x16xf32>
    %38 = arith.addf %23, %35 : vector<16x16xf32>
    %39 = arith.mulf %35, %35 : vector<16x16xf32>
    %40 = arith.addf %24, %39 : vector<16x16xf32>
    %41 = vector.extract_strided_slice %11 {offsets = [0, 2], sizes = [16, 1], strides = [1, 1]} : vector<16x4xi32> to vector<16x1xi32>
    %42 = vector.broadcast %41 : vector<16x1xi32> to vector<16x16xi32>
    %43 = arith.cmpi eq, %42, %12 : vector<16x16xi32>
    %cst_19 = arith.constant 1.000000e+00 : f32
    %cst_20 = arith.constant 0.000000e+00 : f32
    %44 = vector.broadcast %cst_19 : f32 to vector<16x16xf32>
    %45 = vector.broadcast %cst_20 : f32 to vector<16x16xf32>
    %46 = arith.select %43, %44, %45 : vector<16x16xi1>, vector<16x16xf32>
    %47 = arith.truncf %46 : vector<16x16xf32> to vector<16x16xbf16>
    %cst_21 = arith.constant dense<0.000000e+00> : vector<16x8xf32>
    %48 = tpu.matmul %47, %1, %cst_21 {dimension_numbers = #tpu.dot_dimension_numbers<[1], [0], [0], [1], [0, 0, 1, 1], [], []>} : vector<16x16xbf16>, vector<16x8xbf16>, vector<16x8xf32> -> vector<16x8xf32>
    %49 = arith.truncf %48 : vector<16x8xf32> to vector<16x8xbf16>
    %cst_22 = arith.constant dense<0.000000e+00> : vector<16x16xf32>
    %50 = tpu.matmul %49, %7, %cst_22 {dimension_numbers = #tpu.dot_dimension_numbers<[1], [0], [0], [1], [0, 0, 1, 1], [], []>} : vector<16x8xbf16>, vector<8x16xbf16>, vector<16x16xf32> -> vector<16x16xf32>
    %51 = arith.addf %50, %9 : vector<16x16xf32>
    %52 = arith.maximumf %36, %51 : vector<16x16xf32>
    %53 = arith.minimumf %37, %51 : vector<16x16xf32>
    %54 = arith.addf %38, %51 : vector<16x16xf32>
    %55 = arith.mulf %51, %51 : vector<16x16xf32>
    %56 = arith.addf %40, %55 : vector<16x16xf32>
    %57 = vector.extract_strided_slice %11 {offsets = [0, 3], sizes = [16, 1], strides = [1, 1]} : vector<16x4xi32> to vector<16x1xi32>
    %58 = vector.broadcast %57 : vector<16x1xi32> to vector<16x16xi32>
    %59 = arith.cmpi eq, %58, %12 : vector<16x16xi32>
    %cst_23 = arith.constant 1.000000e+00 : f32
    %cst_24 = arith.constant 0.000000e+00 : f32
    %60 = vector.broadcast %cst_23 : f32 to vector<16x16xf32>
    %61 = vector.broadcast %cst_24 : f32 to vector<16x16xf32>
    %62 = arith.select %59, %60, %61 : vector<16x16xi1>, vector<16x16xf32>
    %63 = arith.truncf %62 : vector<16x16xf32> to vector<16x16xbf16>
    %cst_25 = arith.constant dense<0.000000e+00> : vector<16x8xf32>
    %64 = tpu.matmul %63, %1, %cst_25 {dimension_numbers = #tpu.dot_dimension_numbers<[1], [0], [0], [1], [0, 0, 1, 1], [], []>} : vector<16x16xbf16>, vector<16x8xbf16>, vector<16x8xf32> -> vector<16x8xf32>
    %65 = arith.truncf %64 : vector<16x8xf32> to vector<16x8xbf16>
    %cst_26 = arith.constant dense<0.000000e+00> : vector<16x16xf32>
    %66 = tpu.matmul %65, %7, %cst_26 {dimension_numbers = #tpu.dot_dimension_numbers<[1], [0], [0], [1], [0, 0, 1, 1], [], []>} : vector<16x8xbf16>, vector<8x16xbf16>, vector<16x16xf32> -> vector<16x16xf32>
    %67 = arith.addf %66, %9 : vector<16x16xf32>
    %68 = arith.maximumf %52, %67 : vector<16x16xf32>
    %69 = arith.minimumf %53, %67 : vector<16x16xf32>
    %70 = arith.addf %54, %67 : vector<16x16xf32>
    %71 = arith.mulf %67, %67 : vector<16x16xf32>
    %72 = arith.addf %56, %71 : vector<16x16xf32>
    %73 = arith.truncf %68 : vector<16x16xf32> to vector<16x16xbf16>
    %c0_27 = arith.constant 0 : index
    %c0_28 = arith.constant 0 : index
    %c0_29 = arith.constant 0 : index
    %74 = vector.load %arg6[%c0_27, %c0_28, %c0_29] : memref<1x16x16xbf16, #tpu.memory_space<vmem>>, vector<1x16x16xbf16>
    %75 = vector.shape_cast %74 : vector<1x16x16xbf16> to vector<16x16xbf16>
    %76 = vector.shape_cast %73 : vector<16x16xbf16> to vector<1x16x16xbf16>
    tpu.vector_store %arg6[%c0_27, %c0_28, %c0_29], %76 {strides = array<i32>} : memref<1x16x16xbf16, #tpu.memory_space<vmem>>, vector<1x16x16xbf16>,
    %77 = arith.truncf %69 : vector<16x16xf32> to vector<16x16xbf16>
    %c0_30 = arith.constant 0 : index
    %c0_31 = arith.constant 0 : index
    %c0_32 = arith.constant 0 : index
    %78 = vector.load %arg7[%c0_30, %c0_31, %c0_32] : memref<1x16x16xbf16, #tpu.memory_space<vmem>>, vector<1x16x16xbf16>
    %79 = vector.shape_cast %78 : vector<1x16x16xbf16> to vector<16x16xbf16>
    %80 = vector.shape_cast %77 : vector<16x16xbf16> to vector<1x16x16xbf16>
    tpu.vector_store %arg7[%c0_30, %c0_31, %c0_32], %80 {strides = array<i32>} : memref<1x16x16xbf16, #tpu.memory_space<vmem>>, vector<1x16x16xbf16>,
    %cst_33 = arith.constant dense<0.000000e+00> : vector<16xf32>
    %81 = vector.multi_reduction <add>, %70, %cst_33 [0] : vector<16x16xf32> to vector<16xf32>
    %82 = vector.shape_cast %81 : vector<16xf32> to vector<1x16xf32>
    %c0_34 = arith.constant 0 : index
    %c0_35 = arith.constant 0 : index
    %c0_36 = arith.constant 0 : index
    %c0_37 = arith.constant 0 : index
    %83 = vector.load %arg8[%c0_34, %c0_35, %c0_36, %c0_37] : memref<1x1x1x16xf32, #tpu.memory_space<vmem>>, vector<1x1x1x16xf32>
    %84 = vector.shape_cast %83 : vector<1x1x1x16xf32> to vector<1x16xf32>
    %85 = vector.shape_cast %82 : vector<1x16xf32> to vector<1x1x1x16xf32>
    tpu.vector_store %arg8[%c0_34, %c0_35, %c0_36, %c0_37], %85 {strides = array<i32>} : memref<1x1x1x16xf32, #tpu.memory_space<vmem>>, vector<1x1x1x16xf32>,
    %cst_38 = arith.constant dense<0.000000e+00> : vector<16xf32>
    %86 = vector.multi_reduction <add>, %72, %cst_38 [0] : vector<16x16xf32> to vector<16xf32>
    %87 = vector.shape_cast %86 : vector<16xf32> to vector<1x16xf32>
    %c0_39 = arith.constant 0 : index
    %c0_40 = arith.constant 0 : index
    %c0_41 = arith.constant 0 : index
    %c0_42 = arith.constant 0 : index
    %88 = vector.load %arg9[%c0_39, %c0_40, %c0_41, %c0_42] : memref<1x1x1x16xf32, #tpu.memory_space<vmem>>, vector<1x1x1x16xf32>
    %89 = vector.shape_cast %88 : vector<1x1x1x16xf32> to vector<1x16xf32>
    %90 = vector.shape_cast %87 : vector<1x16xf32> to vector<1x1x1x16xf32>
    tpu.vector_store %arg9[%c0_39, %c0_40, %c0_41, %c0_42], %90 {strides = array<i32>} : memref<1x1x1x16xf32, #tpu.memory_space<vmem>>, vector<1x1x1x16xf32>,
    return
  }
  func.func @transform_0(%arg0: i32, %arg1: i32) -> (i32, i32, i32) {
    %c0_i32 = arith.constant 0 : i32
    %c0_i32_0 = arith.constant 0 : i32
    %c0_i32_1 = arith.constant 0 : i32
    return %arg0, %c0_i32, %c0_i32_0 : i32, i32, i32
  }
  func.func @transform_1(%arg0: i32, %arg1: i32) -> (i32, i32, i32) {
    %c0_i32 = arith.constant 0 : i32
    %c0_i32_0 = arith.constant 0 : i32
    return %arg0, %arg1, %c0_i32 : i32, i32, i32
  }
  func.func @transform_2(%arg0: i32, %arg1: i32) -> (i32, i32) {
    %c0_i32 = arith.constant 0 : i32
    %c0_i32_0 = arith.constant 0 : i32
    %c0_i32_1 = arith.constant 0 : i32
    return %c0_i32, %c0_i32_0 : i32, i32
  }
  func.func @transform_3(%arg0: i32, %arg1: i32) -> (i32, i32) {
    %c0_i32 = arith.constant 0 : i32
    %c0_i32_0 = arith.constant 0 : i32
    %c0_i32_1 = arith.constant 0 : i32
    return %c0_i32, %c0_i32_0 : i32, i32
  }
  func.func @transform_4(%arg0: i32, %arg1: i32) -> (i32, i32, i32) {
    %c0_i32 = arith.constant 0 : i32
    %c0_i32_0 = arith.constant 0 : i32
    return %arg0, %arg1, %c0_i32 : i32, i32, i32
  }
  func.func @transform_5(%arg0: i32, %arg1: i32) -> (i32, i32, i32) {
    %c0_i32 = arith.constant 0 : i32
    %c0_i32_0 = arith.constant 0 : i32
    return %arg0, %arg1, %c0_i32 : i32, i32, i32
  }
  func.func @transform_6(%arg0: i32, %arg1: i32) -> (i32, i32, i32, i32) {
    %c0_i32 = arith.constant 0 : i32
    %c0_i32_0 = arith.constant 0 : i32
    %c0_i32_1 = arith.constant 0 : i32
    return %arg0, %arg1, %c0_i32, %c0_i32_0 : i32, i32, i32, i32
  }
  func.func @transform_7(%arg0: i32, %arg1: i32) -> (i32, i32, i32, i32) {
    %c0_i32 = arith.constant 0 : i32
    %c0_i32_0 = arith.constant 0 : i32
    %c0_i32_1 = arith.constant 0 : i32
    return %arg0, %arg1, %c0_i32, %c0_i32_0 : i32, i32, i32, i32
  }
}

module attributes {stable_mosaic.version = 11 : i64} {
  func.func @_cat_mlp_kernel(%arg0: i32, %arg1: memref<32x16xbf16, #tpu.memory_space<vmem>>, %arg2: memref<32x16xbf16, #tpu.memory_space<vmem>>, %arg3: memref<32x16xbf16, #tpu.memory_space<vmem>>, %arg4: memref<32x16xbf16, #tpu.memory_space<vmem>>, %arg5: memref<1x16xf32, #tpu.memory_space<vmem>>, %arg6: memref<1x16xf32, #tpu.memory_space<vmem>>, %arg7: memref<1x16xf32, #tpu.memory_space<vmem>>, %arg8: memref<1x16xf32, #tpu.memory_space<vmem>>, %arg9: memref<16x16xbf16, #tpu.memory_space<vmem>>, %arg10: memref<16x16xbf16, #tpu.memory_space<vmem>>, %arg11: memref<32x16xbf16, #tpu.memory_space<vmem>>, %arg12: memref<1x1x16xf32, #tpu.memory_space<vmem>>, %arg13: memref<1x1x16xf32, #tpu.memory_space<vmem>>) attributes {dimension_semantics = [#tpu.dimension_semantics<parallel>], iteration_bounds = array<i64: 1>, scalar_prefetch = 0 : i64, scratch_operands = 0 : i64, tpu.core_type = #tpu.core_type<tc>, window_params = [{transform_indices = @transform_0, window_bounds = array<i64: 32, 16>}, {transform_indices = @transform_1, window_bounds = array<i64: 32, 16>}, {transform_indices = @transform_2, window_bounds = array<i64: 32, 16>}, {transform_indices = @transform_3, window_bounds = array<i64: 32, 16>}, {pipeline_mode = #tpu.pipeline_mode<synchronous>, transform_indices = @transform_4, window_bounds = array<i64: 1, 16>}, {pipeline_mode = #tpu.pipeline_mode<synchronous>, transform_indices = @transform_5, window_bounds = array<i64: 1, 16>}, {pipeline_mode = #tpu.pipeline_mode<synchronous>, transform_indices = @transform_6, window_bounds = array<i64: 1, 16>}, {pipeline_mode = #tpu.pipeline_mode<synchronous>, transform_indices = @transform_7, window_bounds = array<i64: 1, 16>}, {pipeline_mode = #tpu.pipeline_mode<synchronous>, transform_indices = @transform_8, window_bounds = array<i64: 16, 16>}, {pipeline_mode = #tpu.pipeline_mode<synchronous>, transform_indices = @transform_9, window_bounds = array<i64: 16, 16>}, {transform_indices = @transform_10, window_bounds = array<i64: 32, 16>}, {transform_indices = @transform_11, window_bounds = array<i64: 1, 1, 16>}, {transform_indices = @transform_12, window_bounds = array<i64: 1, 1, 16>}]} {
    %c0 = arith.constant 0 : index
    %c0_0 = arith.constant 0 : index
    %0 = vector.load %arg5[%c0, %c0_0] : memref<1x16xf32, #tpu.memory_space<vmem>>, vector<1x16xf32>
    %cst = arith.constant 0.000000e+00 : f32
    %1 = vector.broadcast %cst : f32 to vector<1x16xf32>
    %2 = arith.cmpf oge, %0, %1 : vector<1x16xf32>
    %c0_1 = arith.constant 0 : index
    %c0_2 = arith.constant 0 : index
    %3 = vector.load %arg1[%c0_1, %c0_2] : memref<32x16xbf16, #tpu.memory_space<vmem>>, vector<32x16xbf16>
    %4 = arith.extf %3 : vector<32x16xbf16> to vector<32x16xf32>
    %c0_3 = arith.constant 0 : index
    %c0_4 = arith.constant 0 : index
    %5 = vector.load %arg2[%c0_3, %c0_4] : memref<32x16xbf16, #tpu.memory_space<vmem>>, vector<32x16xbf16>
    %6 = arith.extf %5 : vector<32x16xbf16> to vector<32x16xf32>
    %7 = vector.shape_cast %2 : vector<1x16xi1> to vector<1x16xi1>
    %8 = vector.broadcast %7 : vector<1x16xi1> to vector<32x16xi1>
    %9 = arith.select %8, %4, %6 : vector<32x16xi1>, vector<32x16xf32>
    %10 = vector.broadcast %0 : vector<1x16xf32> to vector<32x16xf32>
    %11 = arith.mulf %9, %10 : vector<32x16xf32>
    %c0_5 = arith.constant 0 : index
    %c0_6 = arith.constant 0 : index
    %12 = vector.load %arg6[%c0_5, %c0_6] : memref<1x16xf32, #tpu.memory_space<vmem>>, vector<1x16xf32>
    %13 = vector.broadcast %12 : vector<1x16xf32> to vector<32x16xf32>
    %14 = arith.addf %11, %13 : vector<32x16xf32>
    %cst_7 = arith.constant 0.000000e+00 : f32
    %15 = vector.broadcast %cst_7 : f32 to vector<32x16xf32>
    %16 = arith.cmpf ogt, %14, %15 : vector<32x16xf32>
    %cst_8 = arith.constant 2.000000e-01 : f32
    %17 = vector.broadcast %cst_8 : f32 to vector<32x16xf32>
    %18 = arith.mulf %17, %14 : vector<32x16xf32>
    %19 = arith.select %16, %14, %18 : vector<32x16xi1>, vector<32x16xf32>
    %c0_9 = arith.constant 0 : index
    %c0_10 = arith.constant 0 : index
    %20 = vector.load %arg7[%c0_9, %c0_10] : memref<1x16xf32, #tpu.memory_space<vmem>>, vector<1x16xf32>
    %cst_11 = arith.constant 0.000000e+00 : f32
    %21 = vector.broadcast %cst_11 : f32 to vector<1x16xf32>
    %22 = arith.cmpf oge, %20, %21 : vector<1x16xf32>
    %c0_12 = arith.constant 0 : index
    %c0_13 = arith.constant 0 : index
    %23 = vector.load %arg3[%c0_12, %c0_13] : memref<32x16xbf16, #tpu.memory_space<vmem>>, vector<32x16xbf16>
    %24 = arith.extf %23 : vector<32x16xbf16> to vector<32x16xf32>
    %c0_14 = arith.constant 0 : index
    %c0_15 = arith.constant 0 : index
    %25 = vector.load %arg4[%c0_14, %c0_15] : memref<32x16xbf16, #tpu.memory_space<vmem>>, vector<32x16xbf16>
    %26 = arith.extf %25 : vector<32x16xbf16> to vector<32x16xf32>
    %27 = vector.shape_cast %22 : vector<1x16xi1> to vector<1x16xi1>
    %28 = vector.broadcast %27 : vector<1x16xi1> to vector<32x16xi1>
    %29 = arith.select %28, %24, %26 : vector<32x16xi1>, vector<32x16xf32>
    %30 = vector.broadcast %20 : vector<1x16xf32> to vector<32x16xf32>
    %31 = arith.mulf %29, %30 : vector<32x16xf32>
    %c0_16 = arith.constant 0 : index
    %c0_17 = arith.constant 0 : index
    %32 = vector.load %arg8[%c0_16, %c0_17] : memref<1x16xf32, #tpu.memory_space<vmem>>, vector<1x16xf32>
    %33 = vector.broadcast %32 : vector<1x16xf32> to vector<32x16xf32>
    %34 = arith.addf %31, %33 : vector<32x16xf32>
    %cst_18 = arith.constant 0.000000e+00 : f32
    %35 = vector.broadcast %cst_18 : f32 to vector<32x16xf32>
    %36 = arith.cmpf ogt, %34, %35 : vector<32x16xf32>
    %cst_19 = arith.constant 2.000000e-01 : f32
    %37 = vector.broadcast %cst_19 : f32 to vector<32x16xf32>
    %38 = arith.mulf %37, %34 : vector<32x16xf32>
    %39 = arith.select %36, %34, %38 : vector<32x16xi1>, vector<32x16xf32>
    %40 = arith.truncf %19 : vector<32x16xf32> to vector<32x16xbf16>
    %c0_20 = arith.constant 0 : index
    %c0_21 = arith.constant 0 : index
    %41 = vector.load %arg9[%c0_20, %c0_21] : memref<16x16xbf16, #tpu.memory_space<vmem>>, vector<16x16xbf16>
    %cst_22 = arith.constant dense<0.000000e+00> : vector<32x16xf32>
    %42 = tpu.matmul %40, %41, %cst_22 {dimension_numbers = #tpu.dot_dimension_numbers<[1], [0], [0], [1], [0, 0, 1, 1], [], []>} : vector<32x16xbf16>, vector<16x16xbf16>, vector<32x16xf32> -> vector<32x16xf32>
    %43 = arith.truncf %39 : vector<32x16xf32> to vector<32x16xbf16>
    %c0_23 = arith.constant 0 : index
    %c0_24 = arith.constant 0 : index
    %44 = vector.load %arg10[%c0_23, %c0_24] : memref<16x16xbf16, #tpu.memory_space<vmem>>, vector<16x16xbf16>
    %cst_25 = arith.constant dense<0.000000e+00> : vector<32x16xf32>
    %45 = tpu.matmul %43, %44, %cst_25 {dimension_numbers = #tpu.dot_dimension_numbers<[1], [0], [0], [1], [0, 0, 1, 1], [], []>} : vector<32x16xbf16>, vector<16x16xbf16>, vector<32x16xf32> -> vector<32x16xf32>
    %46 = arith.addf %42, %45 : vector<32x16xf32>
    %47 = arith.truncf %46 : vector<32x16xf32> to vector<32x16xbf16>
    %c0_26 = arith.constant 0 : index
    %c0_27 = arith.constant 0 : index
    %48 = vector.load %arg11[%c0_26, %c0_27] : memref<32x16xbf16, #tpu.memory_space<vmem>>, vector<32x16xbf16>
    tpu.vector_store %arg11[%c0_26, %c0_27], %47 {strides = array<i32>} : memref<32x16xbf16, #tpu.memory_space<vmem>>, vector<32x16xbf16>,
    %cst_28 = arith.constant dense<0.000000e+00> : vector<16xf32>
    %49 = vector.multi_reduction <add>, %46, %cst_28 [0] : vector<32x16xf32> to vector<16xf32>
    %50 = vector.shape_cast %49 : vector<16xf32> to vector<1x16xf32>
    %c0_29 = arith.constant 0 : index
    %c0_30 = arith.constant 0 : index
    %c0_31 = arith.constant 0 : index
    %51 = vector.load %arg12[%c0_29, %c0_30, %c0_31] : memref<1x1x16xf32, #tpu.memory_space<vmem>>, vector<1x1x16xf32>
    %52 = vector.shape_cast %51 : vector<1x1x16xf32> to vector<1x16xf32>
    %53 = vector.shape_cast %50 : vector<1x16xf32> to vector<1x1x16xf32>
    tpu.vector_store %arg12[%c0_29, %c0_30, %c0_31], %53 {strides = array<i32>} : memref<1x1x16xf32, #tpu.memory_space<vmem>>, vector<1x1x16xf32>,
    %54 = arith.mulf %46, %46 : vector<32x16xf32>
    %cst_32 = arith.constant dense<0.000000e+00> : vector<16xf32>
    %55 = vector.multi_reduction <add>, %54, %cst_32 [0] : vector<32x16xf32> to vector<16xf32>
    %56 = vector.shape_cast %55 : vector<16xf32> to vector<1x16xf32>
    %c0_33 = arith.constant 0 : index
    %c0_34 = arith.constant 0 : index
    %c0_35 = arith.constant 0 : index
    %57 = vector.load %arg13[%c0_33, %c0_34, %c0_35] : memref<1x1x16xf32, #tpu.memory_space<vmem>>, vector<1x1x16xf32>
    %58 = vector.shape_cast %57 : vector<1x1x16xf32> to vector<1x16xf32>
    %59 = vector.shape_cast %56 : vector<1x16xf32> to vector<1x1x16xf32>
    tpu.vector_store %arg13[%c0_33, %c0_34, %c0_35], %59 {strides = array<i32>} : memref<1x1x16xf32, #tpu.memory_space<vmem>>, vector<1x1x16xf32>,
    return
  }
  func.func @transform_0(%arg0: i32) -> (i32, i32) {
    %c0_i32 = arith.constant 0 : i32
    %c0_i32_0 = arith.constant 0 : i32
    return %arg0, %c0_i32 : i32, i32
  }
  func.func @transform_1(%arg0: i32) -> (i32, i32) {
    %c0_i32 = arith.constant 0 : i32
    %c0_i32_0 = arith.constant 0 : i32
    return %arg0, %c0_i32 : i32, i32
  }
  func.func @transform_2(%arg0: i32) -> (i32, i32) {
    %c0_i32 = arith.constant 0 : i32
    %c0_i32_0 = arith.constant 0 : i32
    return %arg0, %c0_i32 : i32, i32
  }
  func.func @transform_3(%arg0: i32) -> (i32, i32) {
    %c0_i32 = arith.constant 0 : i32
    %c0_i32_0 = arith.constant 0 : i32
    return %arg0, %c0_i32 : i32, i32
  }
  func.func @transform_4(%arg0: i32) -> (i32, i32) {
    %c0_i32 = arith.constant 0 : i32
    %c0_i32_0 = arith.constant 0 : i32
    %c0_i32_1 = arith.constant 0 : i32
    return %c0_i32, %c0_i32_0 : i32, i32
  }
  func.func @transform_5(%arg0: i32) -> (i32, i32) {
    %c0_i32 = arith.constant 0 : i32
    %c0_i32_0 = arith.constant 0 : i32
    %c0_i32_1 = arith.constant 0 : i32
    return %c0_i32, %c0_i32_0 : i32, i32
  }
  func.func @transform_6(%arg0: i32) -> (i32, i32) {
    %c0_i32 = arith.constant 0 : i32
    %c0_i32_0 = arith.constant 0 : i32
    %c0_i32_1 = arith.constant 0 : i32
    return %c0_i32, %c0_i32_0 : i32, i32
  }
  func.func @transform_7(%arg0: i32) -> (i32, i32) {
    %c0_i32 = arith.constant 0 : i32
    %c0_i32_0 = arith.constant 0 : i32
    %c0_i32_1 = arith.constant 0 : i32
    return %c0_i32, %c0_i32_0 : i32, i32
  }
  func.func @transform_8(%arg0: i32) -> (i32, i32) {
    %c0_i32 = arith.constant 0 : i32
    %c0_i32_0 = arith.constant 0 : i32
    %c0_i32_1 = arith.constant 0 : i32
    return %c0_i32, %c0_i32_0 : i32, i32
  }
  func.func @transform_9(%arg0: i32) -> (i32, i32) {
    %c0_i32 = arith.constant 0 : i32
    %c0_i32_0 = arith.constant 0 : i32
    %c0_i32_1 = arith.constant 0 : i32
    return %c0_i32, %c0_i32_0 : i32, i32
  }
  func.func @transform_10(%arg0: i32) -> (i32, i32) {
    %c0_i32 = arith.constant 0 : i32
    %c0_i32_0 = arith.constant 0 : i32
    return %arg0, %c0_i32 : i32, i32
  }
  func.func @transform_11(%arg0: i32) -> (i32, i32, i32) {
    %c0_i32 = arith.constant 0 : i32
    %c0_i32_0 = arith.constant 0 : i32
    %c0_i32_1 = arith.constant 0 : i32
    return %arg0, %c0_i32, %c0_i32_0 : i32, i32, i32
  }
  func.func @transform_12(%arg0: i32) -> (i32, i32, i32) {
    %c0_i32 = arith.constant 0 : i32
    %c0_i32_0 = arith.constant 0 : i32
    %c0_i32_1 = arith.constant 0 : i32
    return %arg0, %c0_i32, %c0_i32_0 : i32, i32, i32
  }
}

module attributes {stable_mosaic.version = 11 : i64} {
  func.func @_bn_leaky_kernel(%arg0: i32, %arg1: memref<32x16xbf16, #tpu.memory_space<vmem>>, %arg2: memref<1x16xf32, #tpu.memory_space<vmem>>, %arg3: memref<1x16xf32, #tpu.memory_space<vmem>>, %arg4: memref<32x16xf32, #tpu.memory_space<vmem>>) attributes {dimension_semantics = [#tpu.dimension_semantics<parallel>], iteration_bounds = array<i64: 1>, scalar_prefetch = 0 : i64, scratch_operands = 0 : i64, tpu.core_type = #tpu.core_type<tc>, window_params = [{transform_indices = @transform_0, window_bounds = array<i64: 32, 16>}, {pipeline_mode = #tpu.pipeline_mode<synchronous>, transform_indices = @transform_1, window_bounds = array<i64: 1, 16>}, {pipeline_mode = #tpu.pipeline_mode<synchronous>, transform_indices = @transform_2, window_bounds = array<i64: 1, 16>}, {transform_indices = @transform_3, window_bounds = array<i64: 32, 16>}]} {
    %c0 = arith.constant 0 : index
    %c0_0 = arith.constant 0 : index
    %0 = vector.load %arg1[%c0, %c0_0] : memref<32x16xbf16, #tpu.memory_space<vmem>>, vector<32x16xbf16>
    %1 = arith.extf %0 : vector<32x16xbf16> to vector<32x16xf32>
    %c0_1 = arith.constant 0 : index
    %c0_2 = arith.constant 0 : index
    %2 = vector.load %arg2[%c0_1, %c0_2] : memref<1x16xf32, #tpu.memory_space<vmem>>, vector<1x16xf32>
    %3 = vector.broadcast %2 : vector<1x16xf32> to vector<32x16xf32>
    %4 = arith.mulf %1, %3 : vector<32x16xf32>
    %c0_3 = arith.constant 0 : index
    %c0_4 = arith.constant 0 : index
    %5 = vector.load %arg3[%c0_3, %c0_4] : memref<1x16xf32, #tpu.memory_space<vmem>>, vector<1x16xf32>
    %6 = vector.broadcast %5 : vector<1x16xf32> to vector<32x16xf32>
    %7 = arith.addf %4, %6 : vector<32x16xf32>
    %cst = arith.constant 0.000000e+00 : f32
    %8 = vector.broadcast %cst : f32 to vector<32x16xf32>
    %9 = arith.cmpf ogt, %7, %8 : vector<32x16xf32>
    %cst_5 = arith.constant 2.000000e-01 : f32
    %10 = vector.broadcast %cst_5 : f32 to vector<32x16xf32>
    %11 = arith.mulf %10, %7 : vector<32x16xf32>
    %12 = arith.select %9, %7, %11 : vector<32x16xi1>, vector<32x16xf32>
    %c0_6 = arith.constant 0 : index
    %c0_7 = arith.constant 0 : index
    %13 = vector.load %arg4[%c0_6, %c0_7] : memref<32x16xf32, #tpu.memory_space<vmem>>, vector<32x16xf32>
    tpu.vector_store %arg4[%c0_6, %c0_7], %12 {strides = array<i32>} : memref<32x16xf32, #tpu.memory_space<vmem>>, vector<32x16xf32>,
    return
  }
  func.func @transform_0(%arg0: i32) -> (i32, i32) {
    %c0_i32 = arith.constant 0 : i32
    %c0_i32_0 = arith.constant 0 : i32
    return %arg0, %c0_i32 : i32, i32
  }
  func.func @transform_1(%arg0: i32) -> (i32, i32) {
    %c0_i32 = arith.constant 0 : i32
    %c0_i32_0 = arith.constant 0 : i32
    %c0_i32_1 = arith.constant 0 : i32
    return %c0_i32, %c0_i32_0 : i32, i32
  }
  func.func @transform_2(%arg0: i32) -> (i32, i32) {
    %c0_i32 = arith.constant 0 : i32
    %c0_i32_0 = arith.constant 0 : i32
    %c0_i32_1 = arith.constant 0 : i32
    return %c0_i32, %c0_i32_0 : i32, i32
  }
  func.func @transform_3(%arg0: i32) -> (i32, i32) {
    %c0_i32 = arith.constant 0 : i32
    %c0_i32_0 = arith.constant 0 : i32
    return %arg0, %c0_i32 : i32, i32
  }
}

module attributes {stable_mosaic.version = 11 : i64} {
  func.func @_edge_kernel(%arg0: i32, %arg1: i32, %arg2: memref<1x16x16xbf16, #tpu.memory_space<vmem>>, %arg3: memref<1x16x4xi32, #tpu.memory_space<vmem>>, %arg4: memref<16x32xbf16, #tpu.memory_space<vmem>>, %arg5: memref<16x32xbf16, #tpu.memory_space<vmem>>, %arg6: memref<1x16x32xbf16, #tpu.memory_space<vmem>>, %arg7: memref<1x16x32xbf16, #tpu.memory_space<vmem>>, %arg8: memref<1x1x1x32xf32, #tpu.memory_space<vmem>>, %arg9: memref<1x1x1x32xf32, #tpu.memory_space<vmem>>) attributes {dimension_semantics = [#tpu.dimension_semantics<parallel>, #tpu.dimension_semantics<parallel>], iteration_bounds = array<i64: 2, 1>, scalar_prefetch = 0 : i64, scratch_operands = 0 : i64, tpu.core_type = #tpu.core_type<tc>, window_params = [{transform_indices = @transform_0, window_bounds = array<i64: 1, 16, 16>}, {transform_indices = @transform_1, window_bounds = array<i64: 1, 16, 4>}, {pipeline_mode = #tpu.pipeline_mode<synchronous>, transform_indices = @transform_2, window_bounds = array<i64: 16, 32>}, {pipeline_mode = #tpu.pipeline_mode<synchronous>, transform_indices = @transform_3, window_bounds = array<i64: 16, 32>}, {transform_indices = @transform_4, window_bounds = array<i64: 1, 16, 32>}, {transform_indices = @transform_5, window_bounds = array<i64: 1, 16, 32>}, {transform_indices = @transform_6, window_bounds = array<i64: 1, 1, 1, 32>}, {transform_indices = @transform_7, window_bounds = array<i64: 1, 1, 1, 32>}]} {
    %c0 = arith.constant 0 : index
    %c0_0 = arith.constant 0 : index
    %c0_1 = arith.constant 0 : index
    %0 = vector.load %arg2[%c0, %c0_0, %c0_1] : memref<1x16x16xbf16, #tpu.memory_space<vmem>>, vector<1x16x16xbf16>
    %1 = vector.shape_cast %0 : vector<1x16x16xbf16> to vector<16x16xbf16>
    %c16_i32 = arith.constant 16 : i32
    %2 = arith.muli %arg1, %c16_i32 : i32
    %3 = tpu.assume_multiple %2, 16 : i32
    %c0_2 = arith.constant 0 : index
    %4 = arith.index_cast %3 : i32 to index
    %c0_3 = arith.constant 0 : index
    %5 = vector.load %arg2[%c0_2, %4, %c0_3] : memref<1x16x16xbf16, #tpu.memory_space<vmem>>, vector<1x16x16xbf16>
    %6 = vector.shape_cast %5 : vector<1x16x16xbf16> to vector<16x16xbf16>
    %c0_4 = arith.constant 0 : index
    %c0_5 = arith.constant 0 : index
    %7 = vector.load %arg4[%c0_4, %c0_5] : memref<16x32xbf16, #tpu.memory_space<vmem>>, vector<16x32xbf16>
    %c0_6 = arith.constant 0 : index
    %c0_7 = arith.constant 0 : index
    %8 = vector.load %arg5[%c0_6, %c0_7] : memref<16x32xbf16, #tpu.memory_space<vmem>>, vector<16x32xbf16>
    %cst = arith.constant dense<0.000000e+00> : vector<16x32xf32>
    %9 = tpu.matmul %6, %8, %cst {dimension_numbers = #tpu.dot_dimension_numbers<[1], [0], [0], [1], [0, 0, 1, 1], [], []>} : vector<16x16xbf16>, vector<16x32xbf16>, vector<16x32xf32> -> vector<16x32xf32>
    %c0_8 = arith.constant 0 : index
    %c0_9 = arith.constant 0 : index
    %c0_10 = arith.constant 0 : index
    %10 = vector.load %arg3[%c0_8, %c0_9, %c0_10] : memref<1x16x4xi32, #tpu.memory_space<vmem>>, vector<1x16x4xi32>
    %11 = vector.shape_cast %10 : vector<1x16x4xi32> to vector<16x4xi32>
    %12 = tpu.iota {dimensions = array<i32: 1>} : vector<16x16xi32>
    %13 = vector.extract_strided_slice %11 {offsets = [0, 0], sizes = [16, 1], strides = [1, 1]} : vector<16x4xi32> to vector<16x1xi32>
    %14 = vector.broadcast %13 : vector<16x1xi32> to vector<16x16xi32>
    %15 = arith.cmpi eq, %14, %12 : vector<16x16xi32>
    %cst_11 = arith.constant 1.000000e+00 : f32
    %cst_12 = arith.constant 0.000000e+00 : f32
    %16 = vector.broadcast %cst_11 : f32 to vector<16x16xf32>
    %17 = vector.broadcast %cst_12 : f32 to vector<16x16xf32>
    %18 = arith.select %15, %16, %17 : vector<16x16xi1>, vector<16x16xf32>
    %19 = arith.truncf %18 : vector<16x16xf32> to vector<16x16xbf16>
    %cst_13 = arith.constant dense<0.000000e+00> : vector<16x16xf32>
    %20 = tpu.matmul %19, %1, %cst_13 {dimension_numbers = #tpu.dot_dimension_numbers<[1], [0], [0], [1], [0, 0, 1, 1], [], []>} : vector<16x16xbf16>, vector<16x16xbf16>, vector<16x16xf32> -> vector<16x16xf32>
    %21 = arith.truncf %20 : vector<16x16xf32> to vector<16x16xbf16>
    %cst_14 = arith.constant dense<0.000000e+00> : vector<16x32xf32>
    %22 = tpu.matmul %21, %7, %cst_14 {dimension_numbers = #tpu.dot_dimension_numbers<[1], [0], [0], [1], [0, 0, 1, 1], [], []>} : vector<16x16xbf16>, vector<16x32xbf16>, vector<16x32xf32> -> vector<16x32xf32>
    %23 = arith.addf %22, %9 : vector<16x32xf32>
    %24 = arith.mulf %23, %23 : vector<16x32xf32>
    %25 = vector.extract_strided_slice %11 {offsets = [0, 1], sizes = [16, 1], strides = [1, 1]} : vector<16x4xi32> to vector<16x1xi32>
    %26 = vector.broadcast %25 : vector<16x1xi32> to vector<16x16xi32>
    %27 = arith.cmpi eq, %26, %12 : vector<16x16xi32>
    %cst_15 = arith.constant 1.000000e+00 : f32
    %cst_16 = arith.constant 0.000000e+00 : f32
    %28 = vector.broadcast %cst_15 : f32 to vector<16x16xf32>
    %29 = vector.broadcast %cst_16 : f32 to vector<16x16xf32>
    %30 = arith.select %27, %28, %29 : vector<16x16xi1>, vector<16x16xf32>
    %31 = arith.truncf %30 : vector<16x16xf32> to vector<16x16xbf16>
    %cst_17 = arith.constant dense<0.000000e+00> : vector<16x16xf32>
    %32 = tpu.matmul %31, %1, %cst_17 {dimension_numbers = #tpu.dot_dimension_numbers<[1], [0], [0], [1], [0, 0, 1, 1], [], []>} : vector<16x16xbf16>, vector<16x16xbf16>, vector<16x16xf32> -> vector<16x16xf32>
    %33 = arith.truncf %32 : vector<16x16xf32> to vector<16x16xbf16>
    %cst_18 = arith.constant dense<0.000000e+00> : vector<16x32xf32>
    %34 = tpu.matmul %33, %7, %cst_18 {dimension_numbers = #tpu.dot_dimension_numbers<[1], [0], [0], [1], [0, 0, 1, 1], [], []>} : vector<16x16xbf16>, vector<16x32xbf16>, vector<16x32xf32> -> vector<16x32xf32>
    %35 = arith.addf %34, %9 : vector<16x32xf32>
    %36 = arith.maximumf %23, %35 : vector<16x32xf32>
    %37 = arith.minimumf %23, %35 : vector<16x32xf32>
    %38 = arith.addf %23, %35 : vector<16x32xf32>
    %39 = arith.mulf %35, %35 : vector<16x32xf32>
    %40 = arith.addf %24, %39 : vector<16x32xf32>
    %41 = vector.extract_strided_slice %11 {offsets = [0, 2], sizes = [16, 1], strides = [1, 1]} : vector<16x4xi32> to vector<16x1xi32>
    %42 = vector.broadcast %41 : vector<16x1xi32> to vector<16x16xi32>
    %43 = arith.cmpi eq, %42, %12 : vector<16x16xi32>
    %cst_19 = arith.constant 1.000000e+00 : f32
    %cst_20 = arith.constant 0.000000e+00 : f32
    %44 = vector.broadcast %cst_19 : f32 to vector<16x16xf32>
    %45 = vector.broadcast %cst_20 : f32 to vector<16x16xf32>
    %46 = arith.select %43, %44, %45 : vector<16x16xi1>, vector<16x16xf32>
    %47 = arith.truncf %46 : vector<16x16xf32> to vector<16x16xbf16>
    %cst_21 = arith.constant dense<0.000000e+00> : vector<16x16xf32>
    %48 = tpu.matmul %47, %1, %cst_21 {dimension_numbers = #tpu.dot_dimension_numbers<[1], [0], [0], [1], [0, 0, 1, 1], [], []>} : vector<16x16xbf16>, vector<16x16xbf16>, vector<16x16xf32> -> vector<16x16xf32>
    %49 = arith.truncf %48 : vector<16x16xf32> to vector<16x16xbf16>
    %cst_22 = arith.constant dense<0.000000e+00> : vector<16x32xf32>
    %50 = tpu.matmul %49, %7, %cst_22 {dimension_numbers = #tpu.dot_dimension_numbers<[1], [0], [0], [1], [0, 0, 1, 1], [], []>} : vector<16x16xbf16>, vector<16x32xbf16>, vector<16x32xf32> -> vector<16x32xf32>
    %51 = arith.addf %50, %9 : vector<16x32xf32>
    %52 = arith.maximumf %36, %51 : vector<16x32xf32>
    %53 = arith.minimumf %37, %51 : vector<16x32xf32>
    %54 = arith.addf %38, %51 : vector<16x32xf32>
    %55 = arith.mulf %51, %51 : vector<16x32xf32>
    %56 = arith.addf %40, %55 : vector<16x32xf32>
    %57 = vector.extract_strided_slice %11 {offsets = [0, 3], sizes = [16, 1], strides = [1, 1]} : vector<16x4xi32> to vector<16x1xi32>
    %58 = vector.broadcast %57 : vector<16x1xi32> to vector<16x16xi32>
    %59 = arith.cmpi eq, %58, %12 : vector<16x16xi32>
    %cst_23 = arith.constant 1.000000e+00 : f32
    %cst_24 = arith.constant 0.000000e+00 : f32
    %60 = vector.broadcast %cst_23 : f32 to vector<16x16xf32>
    %61 = vector.broadcast %cst_24 : f32 to vector<16x16xf32>
    %62 = arith.select %59, %60, %61 : vector<16x16xi1>, vector<16x16xf32>
    %63 = arith.truncf %62 : vector<16x16xf32> to vector<16x16xbf16>
    %cst_25 = arith.constant dense<0.000000e+00> : vector<16x16xf32>
    %64 = tpu.matmul %63, %1, %cst_25 {dimension_numbers = #tpu.dot_dimension_numbers<[1], [0], [0], [1], [0, 0, 1, 1], [], []>} : vector<16x16xbf16>, vector<16x16xbf16>, vector<16x16xf32> -> vector<16x16xf32>
    %65 = arith.truncf %64 : vector<16x16xf32> to vector<16x16xbf16>
    %cst_26 = arith.constant dense<0.000000e+00> : vector<16x32xf32>
    %66 = tpu.matmul %65, %7, %cst_26 {dimension_numbers = #tpu.dot_dimension_numbers<[1], [0], [0], [1], [0, 0, 1, 1], [], []>} : vector<16x16xbf16>, vector<16x32xbf16>, vector<16x32xf32> -> vector<16x32xf32>
    %67 = arith.addf %66, %9 : vector<16x32xf32>
    %68 = arith.maximumf %52, %67 : vector<16x32xf32>
    %69 = arith.minimumf %53, %67 : vector<16x32xf32>
    %70 = arith.addf %54, %67 : vector<16x32xf32>
    %71 = arith.mulf %67, %67 : vector<16x32xf32>
    %72 = arith.addf %56, %71 : vector<16x32xf32>
    %73 = arith.truncf %68 : vector<16x32xf32> to vector<16x32xbf16>
    %c0_27 = arith.constant 0 : index
    %c0_28 = arith.constant 0 : index
    %c0_29 = arith.constant 0 : index
    %74 = vector.load %arg6[%c0_27, %c0_28, %c0_29] : memref<1x16x32xbf16, #tpu.memory_space<vmem>>, vector<1x16x32xbf16>
    %75 = vector.shape_cast %74 : vector<1x16x32xbf16> to vector<16x32xbf16>
    %76 = vector.shape_cast %73 : vector<16x32xbf16> to vector<1x16x32xbf16>
    tpu.vector_store %arg6[%c0_27, %c0_28, %c0_29], %76 {strides = array<i32>} : memref<1x16x32xbf16, #tpu.memory_space<vmem>>, vector<1x16x32xbf16>,
    %77 = arith.truncf %69 : vector<16x32xf32> to vector<16x32xbf16>
    %c0_30 = arith.constant 0 : index
    %c0_31 = arith.constant 0 : index
    %c0_32 = arith.constant 0 : index
    %78 = vector.load %arg7[%c0_30, %c0_31, %c0_32] : memref<1x16x32xbf16, #tpu.memory_space<vmem>>, vector<1x16x32xbf16>
    %79 = vector.shape_cast %78 : vector<1x16x32xbf16> to vector<16x32xbf16>
    %80 = vector.shape_cast %77 : vector<16x32xbf16> to vector<1x16x32xbf16>
    tpu.vector_store %arg7[%c0_30, %c0_31, %c0_32], %80 {strides = array<i32>} : memref<1x16x32xbf16, #tpu.memory_space<vmem>>, vector<1x16x32xbf16>,
    %cst_33 = arith.constant dense<0.000000e+00> : vector<32xf32>
    %81 = vector.multi_reduction <add>, %70, %cst_33 [0] : vector<16x32xf32> to vector<32xf32>
    %82 = vector.shape_cast %81 : vector<32xf32> to vector<1x32xf32>
    %c0_34 = arith.constant 0 : index
    %c0_35 = arith.constant 0 : index
    %c0_36 = arith.constant 0 : index
    %c0_37 = arith.constant 0 : index
    %83 = vector.load %arg8[%c0_34, %c0_35, %c0_36, %c0_37] : memref<1x1x1x32xf32, #tpu.memory_space<vmem>>, vector<1x1x1x32xf32>
    %84 = vector.shape_cast %83 : vector<1x1x1x32xf32> to vector<1x32xf32>
    %85 = vector.shape_cast %82 : vector<1x32xf32> to vector<1x1x1x32xf32>
    tpu.vector_store %arg8[%c0_34, %c0_35, %c0_36, %c0_37], %85 {strides = array<i32>} : memref<1x1x1x32xf32, #tpu.memory_space<vmem>>, vector<1x1x1x32xf32>,
    %cst_38 = arith.constant dense<0.000000e+00> : vector<32xf32>
    %86 = vector.multi_reduction <add>, %72, %cst_38 [0] : vector<16x32xf32> to vector<32xf32>
    %87 = vector.shape_cast %86 : vector<32xf32> to vector<1x32xf32>
    %c0_39 = arith.constant 0 : index
    %c0_40 = arith.constant 0 : index
    %c0_41 = arith.constant 0 : index
    %c0_42 = arith.constant 0 : index
    %88 = vector.load %arg9[%c0_39, %c0_40, %c0_41, %c0_42] : memref<1x1x1x32xf32, #tpu.memory_space<vmem>>, vector<1x1x1x32xf32>
    %89 = vector.shape_cast %88 : vector<1x1x1x32xf32> to vector<1x32xf32>
    %90 = vector.shape_cast %87 : vector<1x32xf32> to vector<1x1x1x32xf32>
    tpu.vector_store %arg9[%c0_39, %c0_40, %c0_41, %c0_42], %90 {strides = array<i32>} : memref<1x1x1x32xf32, #tpu.memory_space<vmem>>, vector<1x1x1x32xf32>,
    return
  }
  func.func @transform_0(%arg0: i32, %arg1: i32) -> (i32, i32, i32) {
    %c0_i32 = arith.constant 0 : i32
    %c0_i32_0 = arith.constant 0 : i32
    %c0_i32_1 = arith.constant 0 : i32
    return %arg0, %c0_i32, %c0_i32_0 : i32, i32, i32
  }
  func.func @transform_1(%arg0: i32, %arg1: i32) -> (i32, i32, i32) {
    %c0_i32 = arith.constant 0 : i32
    %c0_i32_0 = arith.constant 0 : i32
    return %arg0, %arg1, %c0_i32 : i32, i32, i32
  }
  func.func @transform_2(%arg0: i32, %arg1: i32) -> (i32, i32) {
    %c0_i32 = arith.constant 0 : i32
    %c0_i32_0 = arith.constant 0 : i32
    %c0_i32_1 = arith.constant 0 : i32
    return %c0_i32, %c0_i32_0 : i32, i32
  }
  func.func @transform_3(%arg0: i32, %arg1: i32) -> (i32, i32) {
    %c0_i32 = arith.constant 0 : i32
    %c0_i32_0 = arith.constant 0 : i32
    %c0_i32_1 = arith.constant 0 : i32
    return %c0_i32, %c0_i32_0 : i32, i32
  }
  func.func @transform_4(%arg0: i32, %arg1: i32) -> (i32, i32, i32) {
    %c0_i32 = arith.constant 0 : i32
    %c0_i32_0 = arith.constant 0 : i32
    return %arg0, %arg1, %c0_i32 : i32, i32, i32
  }
  func.func @transform_5(%arg0: i32, %arg1: i32) -> (i32, i32, i32) {
    %c0_i32 = arith.constant 0 : i32
    %c0_i32_0 = arith.constant 0 : i32
    return %arg0, %arg1, %c0_i32 : i32, i32, i32
  }
  func.func @transform_6(%arg0: i32, %arg1: i32) -> (i32, i32, i32, i32) {
    %c0_i32 = arith.constant 0 : i32
    %c0_i32_0 = arith.constant 0 : i32
    %c0_i32_1 = arith.constant 0 : i32
    return %arg0, %arg1, %c0_i32, %c0_i32_0 : i32, i32, i32, i32
  }
  func.func @transform_7(%arg0: i32, %arg1: i32) -> (i32, i32, i32, i32) {
    %c0_i32 = arith.constant 0 : i32
    %c0_i32_0 = arith.constant 0 : i32
    %c0_i32_1 = arith.constant 0 : i32
    return %arg0, %arg1, %c0_i32, %c0_i32_0 : i32, i32, i32, i32
  }
}

module attributes {stable_mosaic.version = 11 : i64} {
  func.func @_pdist_kernel(%arg0: i32, %arg1: i32, %arg2: memref<1x16x16xf32, #tpu.memory_space<vmem>>, %arg3: memref<1x16x16xf32, #tpu.memory_space<vmem>>, %arg4: memref<1x1x16xf32, #tpu.memory_space<vmem>>, %arg5: memref<1x16x16xf32, #tpu.memory_space<vmem>>) attributes {dimension_semantics = [#tpu.dimension_semantics<parallel>, #tpu.dimension_semantics<parallel>], iteration_bounds = array<i64: 2, 1>, scalar_prefetch = 0 : i64, scratch_operands = 0 : i64, tpu.core_type = #tpu.core_type<tc>, window_params = [{transform_indices = @transform_0, window_bounds = array<i64: 1, 16, 16>}, {transform_indices = @transform_1, window_bounds = array<i64: 1, 16, 16>}, {transform_indices = @transform_2, window_bounds = array<i64: 1, 1, 16>}, {transform_indices = @transform_3, window_bounds = array<i64: 1, 16, 16>}]} {
    %c0 = arith.constant 0 : index
    %c0_0 = arith.constant 0 : index
    %c0_1 = arith.constant 0 : index
    %0 = vector.load %arg2[%c0, %c0_0, %c0_1] : memref<1x16x16xf32, #tpu.memory_space<vmem>>, vector<1x16x16xf32>
    %1 = vector.shape_cast %0 : vector<1x16x16xf32> to vector<16x16xf32>
    %c0_2 = arith.constant 0 : index
    %c0_3 = arith.constant 0 : index
    %c0_4 = arith.constant 0 : index
    %2 = vector.load %arg3[%c0_2, %c0_3, %c0_4] : memref<1x16x16xf32, #tpu.memory_space<vmem>>, vector<1x16x16xf32>
    %3 = vector.shape_cast %2 : vector<1x16x16xf32> to vector<16x16xf32>
    %cst = arith.constant dense<0.000000e+00> : vector<16x16xf32>
    %4 = tpu.matmul %1, %3, %cst {dimension_numbers = #tpu.dot_dimension_numbers<[1], [0], [0], [1], [0, 0, 1, 1], [], []>} : vector<16x16xf32>, vector<16x16xf32>, vector<16x16xf32> -> vector<16x16xf32>
    %cst_5 = arith.constant 2.000000e+00 : f32
    %5 = vector.broadcast %cst_5 : f32 to vector<16x16xf32>
    %6 = arith.mulf %5, %4 : vector<16x16xf32>
    %c0_6 = arith.constant 0 : index
    %c0_7 = arith.constant 0 : index
    %c0_8 = arith.constant 0 : index
    %7 = vector.load %arg4[%c0_6, %c0_7, %c0_8] : memref<1x1x16xf32, #tpu.memory_space<vmem>>, vector<1x1x16xf32>
    %8 = vector.shape_cast %7 : vector<1x1x16xf32> to vector<1x16xf32>
    %9 = vector.broadcast %8 : vector<1x16xf32> to vector<16x16xf32>
    %10 = arith.subf %6, %9 : vector<16x16xf32>
    %c0_9 = arith.constant 0 : index
    %c0_10 = arith.constant 0 : index
    %c0_11 = arith.constant 0 : index
    %11 = vector.load %arg5[%c0_9, %c0_10, %c0_11] : memref<1x16x16xf32, #tpu.memory_space<vmem>>, vector<1x16x16xf32>
    %12 = vector.shape_cast %11 : vector<1x16x16xf32> to vector<16x16xf32>
    %13 = vector.shape_cast %10 : vector<16x16xf32> to vector<1x16x16xf32>
    tpu.vector_store %arg5[%c0_9, %c0_10, %c0_11], %13 {strides = array<i32>} : memref<1x16x16xf32, #tpu.memory_space<vmem>>, vector<1x16x16xf32>,
    return
  }
  func.func @transform_0(%arg0: i32, %arg1: i32) -> (i32, i32, i32) {
    %c0_i32 = arith.constant 0 : i32
    %c0_i32_0 = arith.constant 0 : i32
    return %arg0, %arg1, %c0_i32 : i32, i32, i32
  }
  func.func @transform_1(%arg0: i32, %arg1: i32) -> (i32, i32, i32) {
    %c0_i32 = arith.constant 0 : i32
    %c0_i32_0 = arith.constant 0 : i32
    %c0_i32_1 = arith.constant 0 : i32
    return %arg0, %c0_i32, %c0_i32_0 : i32, i32, i32
  }
  func.func @transform_2(%arg0: i32, %arg1: i32) -> (i32, i32, i32) {
    %c0_i32 = arith.constant 0 : i32
    %c0_i32_0 = arith.constant 0 : i32
    %c0_i32_1 = arith.constant 0 : i32
    return %arg0, %c0_i32, %c0_i32_0 : i32, i32, i32
  }
  func.func @transform_3(%arg0: i32, %arg1: i32) -> (i32, i32, i32) {
    %c0_i32 = arith.constant 0 : i32
    %c0_i32_0 = arith.constant 0 : i32
    return %arg0, %arg1, %c0_i32 : i32, i32, i32
  }
}

module attributes {stable_mosaic.version = 11 : i64} {
  func.func @_bn_leaky_kernel(%arg0: i32, %arg1: memref<32x32xbf16, #tpu.memory_space<vmem>>, %arg2: memref<1x32xf32, #tpu.memory_space<vmem>>, %arg3: memref<1x32xf32, #tpu.memory_space<vmem>>, %arg4: memref<32x32xf32, #tpu.memory_space<vmem>>) attributes {dimension_semantics = [#tpu.dimension_semantics<parallel>], iteration_bounds = array<i64: 1>, scalar_prefetch = 0 : i64, scratch_operands = 0 : i64, tpu.core_type = #tpu.core_type<tc>, window_params = [{transform_indices = @transform_0, window_bounds = array<i64: 32, 32>}, {pipeline_mode = #tpu.pipeline_mode<synchronous>, transform_indices = @transform_1, window_bounds = array<i64: 1, 32>}, {pipeline_mode = #tpu.pipeline_mode<synchronous>, transform_indices = @transform_2, window_bounds = array<i64: 1, 32>}, {transform_indices = @transform_3, window_bounds = array<i64: 32, 32>}]} {
    %c0 = arith.constant 0 : index
    %c0_0 = arith.constant 0 : index
    %0 = vector.load %arg1[%c0, %c0_0] : memref<32x32xbf16, #tpu.memory_space<vmem>>, vector<32x32xbf16>
    %1 = arith.extf %0 : vector<32x32xbf16> to vector<32x32xf32>
    %c0_1 = arith.constant 0 : index
    %c0_2 = arith.constant 0 : index
    %2 = vector.load %arg2[%c0_1, %c0_2] : memref<1x32xf32, #tpu.memory_space<vmem>>, vector<1x32xf32>
    %3 = vector.broadcast %2 : vector<1x32xf32> to vector<32x32xf32>
    %4 = arith.mulf %1, %3 : vector<32x32xf32>
    %c0_3 = arith.constant 0 : index
    %c0_4 = arith.constant 0 : index
    %5 = vector.load %arg3[%c0_3, %c0_4] : memref<1x32xf32, #tpu.memory_space<vmem>>, vector<1x32xf32>
    %6 = vector.broadcast %5 : vector<1x32xf32> to vector<32x32xf32>
    %7 = arith.addf %4, %6 : vector<32x32xf32>
    %cst = arith.constant 0.000000e+00 : f32
    %8 = vector.broadcast %cst : f32 to vector<32x32xf32>
    %9 = arith.cmpf ogt, %7, %8 : vector<32x32xf32>
    %cst_5 = arith.constant 2.000000e-01 : f32
    %10 = vector.broadcast %cst_5 : f32 to vector<32x32xf32>
    %11 = arith.mulf %10, %7 : vector<32x32xf32>
    %12 = arith.select %9, %7, %11 : vector<32x32xi1>, vector<32x32xf32>
    %c0_6 = arith.constant 0 : index
    %c0_7 = arith.constant 0 : index
    %13 = vector.load %arg4[%c0_6, %c0_7] : memref<32x32xf32, #tpu.memory_space<vmem>>, vector<32x32xf32>
    tpu.vector_store %arg4[%c0_6, %c0_7], %12 {strides = array<i32>} : memref<32x32xf32, #tpu.memory_space<vmem>>, vector<32x32xf32>,
    return
  }
  func.func @transform_0(%arg0: i32) -> (i32, i32) {
    %c0_i32 = arith.constant 0 : i32
    %c0_i32_0 = arith.constant 0 : i32
    return %arg0, %c0_i32 : i32, i32
  }
  func.func @transform_1(%arg0: i32) -> (i32, i32) {
    %c0_i32 = arith.constant 0 : i32
    %c0_i32_0 = arith.constant 0 : i32
    %c0_i32_1 = arith.constant 0 : i32
    return %c0_i32, %c0_i32_0 : i32, i32
  }
  func.func @transform_2(%arg0: i32) -> (i32, i32) {
    %c0_i32 = arith.constant 0 : i32
    %c0_i32_0 = arith.constant 0 : i32
    %c0_i32_1 = arith.constant 0 : i32
    return %c0_i32, %c0_i32_0 : i32, i32
  }
  func.func @transform_3(%arg0: i32) -> (i32, i32) {
    %c0_i32 = arith.constant 0 : i32
    %c0_i32_0 = arith.constant 0 : i32
    return %arg0, %c0_i32 : i32, i32
  }
}

module attributes {stable_mosaic.version = 11 : i64} {
  func.func @_cat_mlp_kernel(%arg0: i32, %arg1: memref<32x32xbf16, #tpu.memory_space<vmem>>, %arg2: memref<32x32xbf16, #tpu.memory_space<vmem>>, %arg3: memref<32x32xbf16, #tpu.memory_space<vmem>>, %arg4: memref<32x32xbf16, #tpu.memory_space<vmem>>, %arg5: memref<1x32xf32, #tpu.memory_space<vmem>>, %arg6: memref<1x32xf32, #tpu.memory_space<vmem>>, %arg7: memref<1x32xf32, #tpu.memory_space<vmem>>, %arg8: memref<1x32xf32, #tpu.memory_space<vmem>>, %arg9: memref<32x32xbf16, #tpu.memory_space<vmem>>, %arg10: memref<32x32xbf16, #tpu.memory_space<vmem>>, %arg11: memref<32x32xbf16, #tpu.memory_space<vmem>>, %arg12: memref<1x1x32xf32, #tpu.memory_space<vmem>>, %arg13: memref<1x1x32xf32, #tpu.memory_space<vmem>>) attributes {dimension_semantics = [#tpu.dimension_semantics<parallel>], iteration_bounds = array<i64: 1>, scalar_prefetch = 0 : i64, scratch_operands = 0 : i64, tpu.core_type = #tpu.core_type<tc>, window_params = [{transform_indices = @transform_0, window_bounds = array<i64: 32, 32>}, {transform_indices = @transform_1, window_bounds = array<i64: 32, 32>}, {transform_indices = @transform_2, window_bounds = array<i64: 32, 32>}, {transform_indices = @transform_3, window_bounds = array<i64: 32, 32>}, {pipeline_mode = #tpu.pipeline_mode<synchronous>, transform_indices = @transform_4, window_bounds = array<i64: 1, 32>}, {pipeline_mode = #tpu.pipeline_mode<synchronous>, transform_indices = @transform_5, window_bounds = array<i64: 1, 32>}, {pipeline_mode = #tpu.pipeline_mode<synchronous>, transform_indices = @transform_6, window_bounds = array<i64: 1, 32>}, {pipeline_mode = #tpu.pipeline_mode<synchronous>, transform_indices = @transform_7, window_bounds = array<i64: 1, 32>}, {pipeline_mode = #tpu.pipeline_mode<synchronous>, transform_indices = @transform_8, window_bounds = array<i64: 32, 32>}, {pipeline_mode = #tpu.pipeline_mode<synchronous>, transform_indices = @transform_9, window_bounds = array<i64: 32, 32>}, {transform_indices = @transform_10, window_bounds = array<i64: 32, 32>}, {transform_indices = @transform_11, window_bounds = array<i64: 1, 1, 32>}, {transform_indices = @transform_12, window_bounds = array<i64: 1, 1, 32>}]} {
    %c0 = arith.constant 0 : index
    %c0_0 = arith.constant 0 : index
    %0 = vector.load %arg5[%c0, %c0_0] : memref<1x32xf32, #tpu.memory_space<vmem>>, vector<1x32xf32>
    %cst = arith.constant 0.000000e+00 : f32
    %1 = vector.broadcast %cst : f32 to vector<1x32xf32>
    %2 = arith.cmpf oge, %0, %1 : vector<1x32xf32>
    %c0_1 = arith.constant 0 : index
    %c0_2 = arith.constant 0 : index
    %3 = vector.load %arg1[%c0_1, %c0_2] : memref<32x32xbf16, #tpu.memory_space<vmem>>, vector<32x32xbf16>
    %4 = arith.extf %3 : vector<32x32xbf16> to vector<32x32xf32>
    %c0_3 = arith.constant 0 : index
    %c0_4 = arith.constant 0 : index
    %5 = vector.load %arg2[%c0_3, %c0_4] : memref<32x32xbf16, #tpu.memory_space<vmem>>, vector<32x32xbf16>
    %6 = arith.extf %5 : vector<32x32xbf16> to vector<32x32xf32>
    %7 = vector.shape_cast %2 : vector<1x32xi1> to vector<1x32xi1>
    %8 = vector.broadcast %7 : vector<1x32xi1> to vector<32x32xi1>
    %9 = arith.select %8, %4, %6 : vector<32x32xi1>, vector<32x32xf32>
    %10 = vector.broadcast %0 : vector<1x32xf32> to vector<32x32xf32>
    %11 = arith.mulf %9, %10 : vector<32x32xf32>
    %c0_5 = arith.constant 0 : index
    %c0_6 = arith.constant 0 : index
    %12 = vector.load %arg6[%c0_5, %c0_6] : memref<1x32xf32, #tpu.memory_space<vmem>>, vector<1x32xf32>
    %13 = vector.broadcast %12 : vector<1x32xf32> to vector<32x32xf32>
    %14 = arith.addf %11, %13 : vector<32x32xf32>
    %cst_7 = arith.constant 0.000000e+00 : f32
    %15 = vector.broadcast %cst_7 : f32 to vector<32x32xf32>
    %16 = arith.cmpf ogt, %14, %15 : vector<32x32xf32>
    %cst_8 = arith.constant 2.000000e-01 : f32
    %17 = vector.broadcast %cst_8 : f32 to vector<32x32xf32>
    %18 = arith.mulf %17, %14 : vector<32x32xf32>
    %19 = arith.select %16, %14, %18 : vector<32x32xi1>, vector<32x32xf32>
    %c0_9 = arith.constant 0 : index
    %c0_10 = arith.constant 0 : index
    %20 = vector.load %arg7[%c0_9, %c0_10] : memref<1x32xf32, #tpu.memory_space<vmem>>, vector<1x32xf32>
    %cst_11 = arith.constant 0.000000e+00 : f32
    %21 = vector.broadcast %cst_11 : f32 to vector<1x32xf32>
    %22 = arith.cmpf oge, %20, %21 : vector<1x32xf32>
    %c0_12 = arith.constant 0 : index
    %c0_13 = arith.constant 0 : index
    %23 = vector.load %arg3[%c0_12, %c0_13] : memref<32x32xbf16, #tpu.memory_space<vmem>>, vector<32x32xbf16>
    %24 = arith.extf %23 : vector<32x32xbf16> to vector<32x32xf32>
    %c0_14 = arith.constant 0 : index
    %c0_15 = arith.constant 0 : index
    %25 = vector.load %arg4[%c0_14, %c0_15] : memref<32x32xbf16, #tpu.memory_space<vmem>>, vector<32x32xbf16>
    %26 = arith.extf %25 : vector<32x32xbf16> to vector<32x32xf32>
    %27 = vector.shape_cast %22 : vector<1x32xi1> to vector<1x32xi1>
    %28 = vector.broadcast %27 : vector<1x32xi1> to vector<32x32xi1>
    %29 = arith.select %28, %24, %26 : vector<32x32xi1>, vector<32x32xf32>
    %30 = vector.broadcast %20 : vector<1x32xf32> to vector<32x32xf32>
    %31 = arith.mulf %29, %30 : vector<32x32xf32>
    %c0_16 = arith.constant 0 : index
    %c0_17 = arith.constant 0 : index
    %32 = vector.load %arg8[%c0_16, %c0_17] : memref<1x32xf32, #tpu.memory_space<vmem>>, vector<1x32xf32>
    %33 = vector.broadcast %32 : vector<1x32xf32> to vector<32x32xf32>
    %34 = arith.addf %31, %33 : vector<32x32xf32>
    %cst_18 = arith.constant 0.000000e+00 : f32
    %35 = vector.broadcast %cst_18 : f32 to vector<32x32xf32>
    %36 = arith.cmpf ogt, %34, %35 : vector<32x32xf32>
    %cst_19 = arith.constant 2.000000e-01 : f32
    %37 = vector.broadcast %cst_19 : f32 to vector<32x32xf32>
    %38 = arith.mulf %37, %34 : vector<32x32xf32>
    %39 = arith.select %36, %34, %38 : vector<32x32xi1>, vector<32x32xf32>
    %40 = arith.truncf %19 : vector<32x32xf32> to vector<32x32xbf16>
    %c0_20 = arith.constant 0 : index
    %c0_21 = arith.constant 0 : index
    %41 = vector.load %arg9[%c0_20, %c0_21] : memref<32x32xbf16, #tpu.memory_space<vmem>>, vector<32x32xbf16>
    %cst_22 = arith.constant dense<0.000000e+00> : vector<32x32xf32>
    %42 = tpu.matmul %40, %41, %cst_22 {dimension_numbers = #tpu.dot_dimension_numbers<[1], [0], [0], [1], [0, 0, 1, 1], [], []>} : vector<32x32xbf16>, vector<32x32xbf16>, vector<32x32xf32> -> vector<32x32xf32>
    %43 = arith.truncf %39 : vector<32x32xf32> to vector<32x32xbf16>
    %c0_23 = arith.constant 0 : index
    %c0_24 = arith.constant 0 : index
    %44 = vector.load %arg10[%c0_23, %c0_24] : memref<32x32xbf16, #tpu.memory_space<vmem>>, vector<32x32xbf16>
    %cst_25 = arith.constant dense<0.000000e+00> : vector<32x32xf32>
    %45 = tpu.matmul %43, %44, %cst_25 {dimension_numbers = #tpu.dot_dimension_numbers<[1], [0], [0], [1], [0, 0, 1, 1], [], []>} : vector<32x32xbf16>, vector<32x32xbf16>, vector<32x32xf32> -> vector<32x32xf32>
    %46 = arith.addf %42, %45 : vector<32x32xf32>
    %47 = arith.truncf %46 : vector<32x32xf32> to vector<32x32xbf16>
    %c0_26 = arith.constant 0 : index
    %c0_27 = arith.constant 0 : index
    %48 = vector.load %arg11[%c0_26, %c0_27] : memref<32x32xbf16, #tpu.memory_space<vmem>>, vector<32x32xbf16>
    tpu.vector_store %arg11[%c0_26, %c0_27], %47 {strides = array<i32>} : memref<32x32xbf16, #tpu.memory_space<vmem>>, vector<32x32xbf16>,
    %cst_28 = arith.constant dense<0.000000e+00> : vector<32xf32>
    %49 = vector.multi_reduction <add>, %46, %cst_28 [0] : vector<32x32xf32> to vector<32xf32>
    %50 = vector.shape_cast %49 : vector<32xf32> to vector<1x32xf32>
    %c0_29 = arith.constant 0 : index
    %c0_30 = arith.constant 0 : index
    %c0_31 = arith.constant 0 : index
    %51 = vector.load %arg12[%c0_29, %c0_30, %c0_31] : memref<1x1x32xf32, #tpu.memory_space<vmem>>, vector<1x1x32xf32>
    %52 = vector.shape_cast %51 : vector<1x1x32xf32> to vector<1x32xf32>
    %53 = vector.shape_cast %50 : vector<1x32xf32> to vector<1x1x32xf32>
    tpu.vector_store %arg12[%c0_29, %c0_30, %c0_31], %53 {strides = array<i32>} : memref<1x1x32xf32, #tpu.memory_space<vmem>>, vector<1x1x32xf32>,
    %54 = arith.mulf %46, %46 : vector<32x32xf32>
    %cst_32 = arith.constant dense<0.000000e+00> : vector<32xf32>
    %55 = vector.multi_reduction <add>, %54, %cst_32 [0] : vector<32x32xf32> to vector<32xf32>
    %56 = vector.shape_cast %55 : vector<32xf32> to vector<1x32xf32>
    %c0_33 = arith.constant 0 : index
    %c0_34 = arith.constant 0 : index
    %c0_35 = arith.constant 0 : index
    %57 = vector.load %arg13[%c0_33, %c0_34, %c0_35] : memref<1x1x32xf32, #tpu.memory_space<vmem>>, vector<1x1x32xf32>
    %58 = vector.shape_cast %57 : vector<1x1x32xf32> to vector<1x32xf32>
    %59 = vector.shape_cast %56 : vector<1x32xf32> to vector<1x1x32xf32>
    tpu.vector_store %arg13[%c0_33, %c0_34, %c0_35], %59 {strides = array<i32>} : memref<1x1x32xf32, #tpu.memory_space<vmem>>, vector<1x1x32xf32>,
    return
  }
  func.func @transform_0(%arg0: i32) -> (i32, i32) {
    %c0_i32 = arith.constant 0 : i32
    %c0_i32_0 = arith.constant 0 : i32
    return %arg0, %c0_i32 : i32, i32
  }
  func.func @transform_1(%arg0: i32) -> (i32, i32) {
    %c0_i32 = arith.constant 0 : i32
    %c0_i32_0 = arith.constant 0 : i32
    return %arg0, %c0_i32 : i32, i32
  }
  func.func @transform_2(%arg0: i32) -> (i32, i32) {
    %c0_i32 = arith.constant 0 : i32
    %c0_i32_0 = arith.constant 0 : i32
    return %arg0, %c0_i32 : i32, i32
  }
  func.func @transform_3(%arg0: i32) -> (i32, i32) {
    %c0_i32 = arith.constant 0 : i32
    %c0_i32_0 = arith.constant 0 : i32
    return %arg0, %c0_i32 : i32, i32
  }
  func.func @transform_4(%arg0: i32) -> (i32, i32) {
    %c0_i32 = arith.constant 0 : i32
    %c0_i32_0 = arith.constant 0 : i32
    %c0_i32_1 = arith.constant 0 : i32
    return %c0_i32, %c0_i32_0 : i32, i32
  }
  func.func @transform_5(%arg0: i32) -> (i32, i32) {
    %c0_i32 = arith.constant 0 : i32
    %c0_i32_0 = arith.constant 0 : i32
    %c0_i32_1 = arith.constant 0 : i32
    return %c0_i32, %c0_i32_0 : i32, i32
  }
  func.func @transform_6(%arg0: i32) -> (i32, i32) {
    %c0_i32 = arith.constant 0 : i32
    %c0_i32_0 = arith.constant 0 : i32
    %c0_i32_1 = arith.constant 0 : i32
    return %c0_i32, %c0_i32_0 : i32, i32
  }
  func.func @transform_7(%arg0: i32) -> (i32, i32) {
    %c0_i32 = arith.constant 0 : i32
    %c0_i32_0 = arith.constant 0 : i32
    %c0_i32_1 = arith.constant 0 : i32
    return %c0_i32, %c0_i32_0 : i32, i32
  }
  func.func @transform_8(%arg0: i32) -> (i32, i32) {
    %c0_i32 = arith.constant 0 : i32
    %c0_i32_0 = arith.constant 0 : i32
    %c0_i32_1 = arith.constant 0 : i32
    return %c0_i32, %c0_i32_0 : i32, i32
  }
  func.func @transform_9(%arg0: i32) -> (i32, i32) {
    %c0_i32 = arith.constant 0 : i32
    %c0_i32_0 = arith.constant 0 : i32
    %c0_i32_1 = arith.constant 0 : i32
    return %c0_i32, %c0_i32_0 : i32, i32
  }
  func.func @transform_10(%arg0: i32) -> (i32, i32) {
    %c0_i32 = arith.constant 0 : i32
    %c0_i32_0 = arith.constant 0 : i32
    return %arg0, %c0_i32 : i32, i32
  }
  func.func @transform_11(%arg0: i32) -> (i32, i32, i32) {
    %c0_i32 = arith.constant 0 : i32
    %c0_i32_0 = arith.constant 0 : i32
    %c0_i32_1 = arith.constant 0 : i32
    return %arg0, %c0_i32, %c0_i32_0 : i32, i32, i32
  }
  func.func @transform_12(%arg0: i32) -> (i32, i32, i32) {
    %c0_i32 = arith.constant 0 : i32
    %c0_i32_0 = arith.constant 0 : i32
    %c0_i32_1 = arith.constant 0 : i32
    return %arg0, %c0_i32, %c0_i32_0 : i32, i32, i32
  }
}

</mosaic_0001>

<bundles_post_ra>
// kernel: dgcnn_forward.15
= control target key start
LH: loop header
LB: loop body
LE: loop exit
PB: predicated region body
PF: predicated region fallthrough
CT: control target
= control target key end

     0   :  { %s484_s12 = smov 0   ;;  %s486_s13 = smov 0   ;;  %s523_s0 = inlined_call_operand.vmem [shape: f32[2,16,3], index: 0, kind: input, shape index: {}]   ;;  %s524_s1 = inlined_call_operand.vmem [shape: f32[2,3,16], index: 1, kind: input, shape index: {}]   ;;  %s525_s2 = inlined_call_operand.vmem [shape: f32[2,1,16], index: 2, kind: input, shape index: {}]   ;;  %s526_s3 = inlined_call_operand.vmem [shape: f32[2,16,16], index: 3, kind: output, shape index: {}]  }
   0x1   :  { %s488_s14 = smov 0  }
   0x2 LB: > { %s25_s15 = sadd.s32 1, %s458_s13  ;;  %p401_p0 = scmp.ge.s32.totalorder %s462_s14, 1  ;;  %s462_s14 = sphi %s488_s14, %s13_s14   ;;  %s458_s13 = sphi %s486_s13, %s528_s13   ;;  %s454_s12 = sphi %s484_s12, %s527_s12  }
   0x3   : > { %p27_p1 = scmp.ge.s32.totalorder %s25_s15, 2  ;;  %p175_p2 = scmp.lt.s32.totalorder %s462_s14, 3 }
   0x5   : > { %s530_s15 = smov (%p27_p1, %s25_s15), 0  ;;  %p176_p3 = pnand %p401_p0, %p175_p2 }
   0x6   : > { %p215_p4 = scmp.lt.s32.totalorder (!%p176_p3), %s454_s12, 1 }
   0x7   : > { %179 = sbr.rel (%p176_p3) target bundleno = 149 (0x95), region = 32 }
   0xc   : > { %s532_s12 = smov (!%p215_p4, %s454_s12), 1  ;;  %vm251_vm0 = vcmask 1042432   ;;  %vm244_vm1 = vcmask 23552   ;;  %vm286_vm2 = vcmask 130048  }
   0xd   : > { %s404_s16 = sshll.u32 %s532_s12, 2  ;;  %s412_s17 = sshll.u32 %s532_s12, 4 }
   0xe   : > { %s227_s20 = scalar_lea.vmem %s524_s1, %s404_s16  ;;  %s222_s23 = scalar_lea.vmem %s523_s0, %s412_s17 }
   0xf   : > { %v243_v0 = vld [vmem:[%s227_s20] sm:$0x7]  ;;  %v242_v2 = vld [vmem:[%s222_s23 + $0x8] sm:$0xff]  ;;  %s230_s26 = scalar_lea.vmem %s525_s2, %s532_s12  ;;  %s239_s29 = scalar_lea.vmem %s526_s3, %s412_s17 }
  0x10   : > { %v241_v1 = vld [vmem:[%s222_s23] sm:$0xff]  ;;  %407 = vmatpush.msk.msra.mxu0 %vm251_vm0, %v243_v0  ;;  %414 = vmatpush.msk.msra.mxu1 %vm251_vm0, %v243_v0 }
  0x11   : > { %408 = vmatmul.msk.f32.vlgmr.msra.gmra.mxu0 %vm244_vm1, %v241_v1  ;;  %409 = vmatmul.msk.f32.vlgmr.msra.gmra.mxu1 %vm244_vm1, %v242_v2  ;;  %v439_v3 = vld [vmem:[%s230_s26] ss:$0 sm:$0xff] }
  0x8e   : > { %v272_v4 = vpop.f32.mrf.mxu0  ;;  %v275_v5 = vpop.f32.mrf.mxu1 }
  0x8f   : > { %v278_v6 = vmul.f32 2.0, %v272_v4  ;;  %v279_v7 = vmul.f32 2.0, %v275_v5 }
  0x91   : > { %v284_v8 = vsub.f32 %v278_v6, %v439_v3  ;;  %v285_v9 = vsub.f32 %v279_v7, %v439_v3 }
  0x93   : > { %287 = vst.msk [vmem:[%s239_s29] sm:$0xff] %vm286_vm2, %v284_v8 }
  0x94   : > { %288 = vst.msk [vmem:[%s239_s29 + $0x8] sm:$0xff] %vm286_vm2, %v285_v9 }
  0x95 PF: > { %s13_s14 = sadd.s32 1, %s462_s14   ;;  %s527_s12 = smov %s458_s13 }
  0x96   : > { %p10_p5 = scmp.ge.s32.totalorder %s13_s14, 4   ;;  %s528_s13 = smov %s530_s15 }
  0x98   :  { %12 = sbr.rel (!%p10_p5) target bundleno = 2 (0x2), region = 68 }

// kernel: dgcnn_forward.19
= control target key start
LH: loop header
LB: loop body
LE: loop exit
PB: predicated region body
PF: predicated region fallthrough
CT: control target
= control target key end

     0   :  { %vm50_vm0 = vcmask 64512   ;;  %s118_s0 = inlined_call_operand.vmem [shape: bf16[32,8], index: 0, kind: input, shape index: {}]   ;;  %s119_s1 = inlined_call_operand.vmem [shape: f32[1,8], index: 1, kind: input, shape index: {}]   ;;  %s120_s2 = inlined_call_operand.vmem [shape: f32[1,8], index: 2, kind: input, shape index: {}]   ;;  %s121_s3 = inlined_call_operand.vmem [shape: f32[32,8], index: 3, kind: output, shape index: {}]  }
   0x1   :  { %v60_v0 = vld [vmem:[%s118_s0] sm:$0xff]   ;;  %v67_v5 = vld [vmem:[%s118_s0 + $0x8] sm:$0xff]  }
   0x2   :  { %v68_v1 = vld [vmem:[%s119_s1] ss:$0 sm:$0xff]  ;;  %v61_v2 = vunpack.c.l.bf16 %v60_v0  ;;  %v62_v4 = vunpack.c.h.bf16 %v60_v0  ;;  %v65_v6 = vunpack.c.l.bf16 %v67_v5  ;;  %v66_v7 = vunpack.c.h.bf16 %v67_v5 }
   0x3   :  { %v69_v3 = vld [vmem:[%s120_s2] ss:$0 sm:$0xff] }
   0x4   :  { %v26_v8 = vmul.f32 %v68_v1, %v61_v2  ;;  %v27_v9 = vmul.f32 %v68_v1, %v62_v4  ;;  %v28_v10 = vmul.f32 %v68_v1, %v65_v6  ;;  %v29_v11 = vmul.f32 %v68_v1, %v66_v7 }
   0x6   :  { %v34_v12 = vadd.f32 %v69_v3, %v26_v8  ;;  %v35_v13 = vadd.f32 %v69_v3, %v27_v9  ;;  %v36_v14 = vadd.f32 %v69_v3, %v28_v10  ;;  %v37_v15 = vadd.f32 %v69_v3, %v29_v11 }
   0x8   :  { %vm38_vm1 = vcmp.gt.f32.partialorder %v34_v12, 0.0  ;;  %v42_v16 = vmul.f32 0.2, %v34_v12  ;;  %vm39_vm2 = vcmp.gt.f32.partialorder %v35_v13, 0.0  ;;  %v43_v17 = vmul.f32 0.2, %v35_v13 }
   0x9   :  { %vm40_vm3 = vcmp.gt.f32.partialorder %v36_v14, 0.0  ;;  %v44_v18 = vmul.f32 0.2, %v36_v14  ;;  %vm41_vm4 = vcmp.gt.f32.partialorder %v37_v15, 0.0  ;;  %v45_v19 = vmul.f32 0.2, %v37_v15 }
   0xa   :  { %v46_v20 = vsel %vm38_vm1, %v34_v12, %v42_v16  ;;  %v47_v21 = vsel %vm39_vm2, %v35_v13, %v43_v17 }
   0xb   :  { %51 = vst.msk [vmem:[%s121_s3] sm:$0xff] %vm50_vm0, %v46_v20  ;;  %v48_v22 = vsel %vm40_vm3, %v36_v14, %v44_v18  ;;  %v49_v23 = vsel %vm41_vm4, %v37_v15, %v45_v19 }
   0xc   :  { %52 = vst.msk [vmem:[%s121_s3 + $0x8] sm:$0xff] %vm50_vm0, %v47_v21 }
   0xd   :  { %53 = vst.msk [vmem:[%s121_s3 + $0x10] sm:$0xff] %vm50_vm0, %v48_v22 }
   0xe   :  { %54 = vst.msk [vmem:[%s121_s3 + $0x18] sm:$0xff] %vm50_vm0, %v49_v23 }

// kernel: dgcnn_forward.16
= control target key start
LH: loop header
LB: loop body
LE: loop exit
PB: predicated region body
PF: predicated region fallthrough
CT: control target
= control target key end

     0   :  { %s1061_s24 = smov 0   ;;  %s1063_s25 = smov 0   ;;  %s1148_s0 = inlined_call_operand.vmem [shape: bf16[2,16,3], index: 0, kind: input, shape index: {}]   ;;  %s1149_s1 = inlined_call_operand.vmem [shape: s32[2,16,4], index: 1, kind: input, shape index: {}]   ;;  %s1150_s2 = inlined_call_operand.vmem [shape: bf16[3,8], index: 2, kind: input, shape index: {}]   ;;  %s1151_s3 = inlined_call_operand.vmem [shape: bf16[3,8], index: 3, kind: input, shape index: {}]   ;;  %s1152_s4 = inlined_call_operand.vmem [shape: bf16[2,16,8], index: 4, kind: output, shape index: {0}]   ;;  %s1153_s5 = inlined_call_operand.vmem [shape: bf16[2,16,8], index: 5, kind: output, shape index: {1}]   ;;  %s1154_s6 = inlined_call_operand.vmem [shape: f32[2,1,1,8], index: 6, kind: output, shape index: {2}]   ;;  %s1155_s7 = inlined_call_operand.vmem [shape: f32[2,1,1,8], index: 7, kind: output, shape index: {3}]  }
   0x1   :  { %s1065_s26 = smov 0  }
   0x2 LB: > { %s30_s27 = sadd.s32 1, %s1009_s25  ;;  %p922_p0 = scmp.ge.s32.totalorder %s1013_s26, 1  ;;  %s1013_s26 = sphi %s1065_s26, %s18_s26   ;;  %s1009_s25 = sphi %s1063_s25, %s1157_s25   ;;  %s1005_s24 = sphi %s1061_s24, %s1156_s24  }
   0x3   : > { %p32_p1 = scmp.ge.s32.totalorder %s30_s27, 2  ;;  %p281_p2 = scmp.lt.s32.totalorder %s1013_s26, 3 }
   0x5   : > { %s1159_s27 = smov (%p32_p1, %s30_s27), 0  ;;  %p282_p3 = pnand %p922_p0, %p281_p2 }
   0x6   : > { %p347_p4 = scmp.lt.s32.totalorder (!%p282_p3), %s1005_s24, 1 }
   0x7   : > { %285 = sbr.rel (%p282_p3) target bundleno = 459 (0x1cb), region = 36 }
   0xc   : > { %v1015_v0 = vmov 1   ;;  %v1016_v1 = vmov 0   ;;  %s1161_s24 = smov (!%p347_p4, %s1005_s24), 1  ;;  %v1017_v2 = vmov 2   ;;  %v1018_v5 = vmov 3  }
   0xd   : > { %987 = vset.pattern.permute.xlu1 %v1015_v0  ;;  %986 = vset.pattern.permute.xlu0 %v1016_v1  ;;  %s951_s28 = sshll.u32 %s1161_s24, 4  ;;  %s1086_s9 = sshll.u32 %s1161_s24, 3  ;;  %vm415_vm0 = vcmask 1040384   ;;  %vm416_vm1 = vcmask 1041408   ;;  %v404_v7 = vld [vmem:[%s1150_s2] sm:$0x3]  ;;  %v438_v9 = vlaneseq }
   0xe   : > { %988 = vset.pattern.permute.xlu2 %v1017_v2  ;;  %s360_s8 = scalar_lea.vmem %s1149_s1, %s951_s28  ;;  %s351_s12 = scalar_lea.vmem %s1148_s0, %s1086_s9  ;;  %v405_v8 = vld [vmem:[%s1151_s3] sm:$0x3]  ;;  %v1019_v10 = vmov 65535   ;;  %vm411_vm2 = vcmask 23552   ;;  %vm457_vm7 = vcmask 130048   ;;  %v1020_v22 = vmov 0.0  }
   0xf   : > { %v436_v3 = vld [vmem:[%s360_s8] sm:$0xff]  ;;  %v437_v4 = vld [vmem:[%s360_s8 + $0x8] sm:$0xff]  ;;  %v417_v11 = vsel %vm415_vm0, 4294967295, %v1019_v10  ;;  %v439_v18 = vand.u32 127, %v438_v9  ;;  %vm668_vm12 = vcmask 60416   ;;  %s1111_s19 = scalar_lea.vmem %s1152_s4, %s1086_s9  ;;  %s1117_s22 = scalar_lea.vmem %s1153_s5, %s1086_s9  ;;  %vm675_vm13 = vcmask 64512  }
  0x10   : > { %499 = vperm.xlu1 %987, %v436_v3   ;;  %441 = vperm.xlu0 %986, %v436_v3   ;;  %v954_v6 = vld [vmem:[%s351_s12] sm:$0xff]  ;;  %v418_v14 = vsel %vm416_vm1, %v417_v11, 0  ;;  %s387_s29 = scalar_lea.vmem %s1154_s6, %s1161_s24  ;;  %vm685_vm14 = vcmask 57344   ;;  %s393_s9 = scalar_lea.vmem %s1155_s7, %s1161_s24 }
  0x11   : > { %555 = vperm.xlu2 %988, %v436_v3   ;;  %468 = vmatpush.bf16.msra.mxu1 %v954_v6  ;;  %v420_v15 = vand.u32 %v418_v14, %v405_v8  ;;  %v480_v16 = vand.u32 %v418_v14, %v404_v7  ;;  %v955_v17 = vld [vmem:[%s351_s12] sm:$0xff] }
  0x12   : > { %519 = vmatpush.bf16.msra.mxu3 %v954_v6 }
  0x13   : > { %429 = vmatpush.bf16.msra.mxu0 %v420_v15  ;;  %489 = vmatpush.bf16.msra.mxu2 %v480_v16 }
  0x15   : > { %575 = vmatpush.bf16.msrb.mxu1 %v954_v6 }
  0x16   : > { %631 = vmatpush.bf16.msrb.mxu3 %v954_v6  ;;  %935 = vmatmul.msk.bf16.vlgmr.msra.gmra.mxu0 %vm411_vm2, %v955_v17 }
  0x17   : > { %537 = vmatpush.bf16.msrb.mxu0 %v480_v16  ;;  %593 = vmatpush.bf16.msrb.mxu2 %v480_v16 }
  0x18   : > { %502 = vperm.xlu1 %987, %v437_v4   ;;  %444 = vperm.xlu0 %986, %v437_v4  }
  0x19   : > { %558 = vperm.xlu2 %988, %v437_v4  }
  0x1b   : > { %649 = vmatpush.bf16.msra.mxu0 %v480_v16 }
  0x20   : > { %990 = vset.pattern.permute.xlu1 %v1018_v5  ;;  %989 = vset.pattern.permute.xlu0 %v1018_v5 }
  0x21   : > { %614 = vperm.xlu1 %990, %v437_v4   ;;  %611 = vperm.xlu0 %989, %v436_v3  }
  0x6b   : > { %v556_v19 = vpop.permute.xlu2 %555 }
  0x6c   : > { %vm560_vm10 = vcmp.eq.s32.totalorder %v556_v19, %v439_v18 }
  0x6d   : > { %v562_v34 = vsel %vm560_vm10, 1.0, %v1020_v22 }
  0x73   : > { %v559_v31 = vpop.permute.xlu2 %558 }
  0x74   : > { %vm561_vm11 = vcmp.eq.s32.totalorder %v559_v31, %v439_v18 }
  0x75   : > { %v563_v35 = vsel %vm561_vm11, 1.0, %v1020_v22 }
  0x76   : > { %v564_v37 = vpack.c.bf16 %v563_v35, %v562_v34 }
  0x82   : > { %v500_v12 = vpop.permute.xlu1 %499  ;;  %v442_v13 = vpop.permute.xlu0 %441 }
  0x83   : > { %vm504_vm3 = vcmp.eq.s32.totalorder %v500_v12, %v439_v18  ;;  %vm446_vm4 = vcmp.eq.s32.totalorder %v442_v13, %v439_v18 }
  0x84   : > { %v506_v23 = vsel %vm504_vm3, 1.0, %v1020_v22  ;;  %v448_v24 = vsel %vm446_vm4, 1.0, %v1020_v22 }
  0x8a   : > { %v503_v20 = vpop.permute.xlu1 %502  ;;  %v445_v21 = vpop.permute.xlu0 %444 }
  0x8b   : > { %vm505_vm5 = vcmp.eq.s32.totalorder %v503_v20, %v439_v18  ;;  %vm447_vm6 = vcmp.eq.s32.totalorder %v445_v21, %v439_v18 }
  0x8c   : > { %v507_v25 = vsel %vm505_vm5, 1.0, %v1020_v22  ;;  %v449_v26 = vsel %vm447_vm6, 1.0, %v1020_v22 }
  0x8d   : > { %v508_v27 = vpack.c.bf16 %v507_v25, %v506_v23  ;;  %v450_v28 = vpack.c.bf16 %v449_v26, %v448_v24 }
  0x8f   : > { %940 = vmatmul.msk.bf16.vlgmr.msra.gmra.mxu1 %vm457_vm7, %v450_v28  ;;  %942 = vmatmul.msk.bf16.vlgmr.msra.gmra.mxu3 %vm457_vm7, %v508_v27 }
  0x93   : > { %v615_v29 = vpop.permute.xlu1 %614  ;;  %v612_v30 = vpop.permute.xlu0 %611 }
  0x94   : > { %vm617_vm8 = vcmp.eq.s32.totalorder %v615_v29, %v439_v18  ;;  %vm616_vm9 = vcmp.eq.s32.totalorder %v612_v30, %v439_v18  ;;  %v431_v50 = vpop.f32.mrf.mxu0 }
  0x95   : > { %v619_v32 = vsel %vm617_vm8, 1.0, %v1020_v22  ;;  %v618_v33 = vsel %vm616_vm9, 1.0, %v1020_v22 }
  0x96   : > { %v620_v36 = vpack.c.bf16 %v619_v32, %v618_v33 }
  0x9c   : > { %v433_v51 = vpop.f32.mrf.mxu0 }
  0x9f   : > { %944 = vmatmul.msk.bf16.vlgmr.msrb.gmra.mxu1 %vm457_vm7, %v564_v37  ;;  %946 = vmatmul.msk.bf16.vlgmr.msrb.gmra.mxu3 %vm457_vm7, %v620_v36 }
 0x10c   : > { %v470_v38 = vpop.f32.mrf.mxu1 }
 0x112   : > { %v521_v39 = vpop.f32.mrf.mxu3 }
 0x114   : > { %v472_v40 = vpop.f32.mrf.mxu1 }
 0x115   : > { %v475_v41 = vpack.c.bf16 %v472_v40, %v470_v38 }
 0x117   : > { %941 = vmatmul.msk.bf16.vlgmr.msra.gmra.mxu2 %vm411_vm2, %v475_v41 }
 0x11a   : > { %v523_v42 = vpop.f32.mrf.mxu3 }
 0x11b   : > { %v526_v43 = vpack.c.bf16 %v523_v42, %v521_v39 }
 0x11c   : > { %v577_v44 = vpop.f32.mrf.mxu1 }
 0x11d   : > { %943 = vmatmul.msk.bf16.vlgmr.msrb.gmra.mxu0 %vm411_vm2, %v526_v43 }
 0x122   : > { %v633_v45 = vpop.f32.mrf.mxu3 }
 0x124   : > { %v579_v46 = vpop.f32.mrf.mxu1 }
 0x125   : > { %v582_v47 = vpack.c.bf16 %v579_v46, %v577_v44 }
 0x127   : > { %945 = vmatmul.msk.bf16.vlgmr.msrb.gmra.mxu2 %vm411_vm2, %v582_v47 }
 0x12a   : > { %v635_v48 = vpop.f32.mrf.mxu3 }
 0x12b   : > { %v638_v49 = vpack.c.bf16 %v635_v48, %v633_v45 }
 0x12d   : > { %947 = vmatmul.msk.bf16.vlgmr.msra.gmra.mxu0 %vm411_vm2, %v638_v49 }
 0x19a   : > { %v491_v52 = vpop.f32.mrf.mxu2  ;;  %v539_v53 = vpop.f32.mrf.mxu0 }
 0x19b   : > { %v492_v56 = vadd.f32 %v491_v52, %v431_v50  ;;  %v540_v57 = vadd.f32 %v539_v53, %v431_v50 }
 0x19d   : > { %v544_v60 = vmax.f32 %v492_v56, %v540_v57  ;;  %v546_v61 = vmin.f32 %v492_v56, %v540_v57  ;;  %v496_v63 = vmul.f32 %v492_v56, %v492_v56  ;;  %v550_v0 = vmul.f32 %v540_v57, %v540_v57 }
 0x19e   : > { %v548_v6 = vadd.f32 %v540_v57, %v492_v56 }
 0x19f   : > { %v552_v10 = vadd.f32 %v550_v0, %v496_v63 }
 0x1a2   : > { %v493_v54 = vpop.f32.mrf.mxu2  ;;  %v541_v55 = vpop.f32.mrf.mxu0 }
 0x1a3   : > { %v494_v1 = vadd.f32 %v493_v54, %v433_v51  ;;  %v542_v2 = vadd.f32 %v541_v55, %v433_v51 }
 0x1a5   : > { %v497_v11 = vmul.f32 %v494_v1, %v494_v1  ;;  %v551_v12 = vmul.f32 %v542_v2, %v542_v2  ;;  %v545_v16 = vmax.f32 %v494_v1, %v542_v2  ;;  %v547_v20 = vmin.f32 %v494_v1, %v542_v2 }
 0x1a6   : > { %v549_v21 = vadd.f32 %v542_v2, %v494_v1 }
 0x1a7   : > { %v553_v24 = vadd.f32 %v551_v12, %v497_v11 }
 0x1aa   : > { %v595_v58 = vpop.f32.mrf.mxu2  ;;  %v651_v59 = vpop.f32.mrf.mxu0 }
 0x1ab   : > { %v596_v62 = vadd.f32 %v595_v58, %v431_v50  ;;  %v652_v5 = vadd.f32 %v651_v59, %v431_v50 }
 0x1ad   : > { %v600_v3 = vmax.f32 %v544_v60, %v596_v62  ;;  %v602_v4 = vmin.f32 %v546_v61, %v596_v62  ;;  %v606_v7 = vmul.f32 %v596_v62, %v596_v62  ;;  %v604_v13 = vadd.f32 %v596_v62, %v548_v6 }
 0x1ae   : > { %v662_v26 = vmul.f32 %v652_v5, %v652_v5 }
 0x1af   : > { %v656_v8 = vmax.f32 %v600_v3, %v652_v5  ;;  %v658_v9 = vmin.f32 %v602_v4, %v652_v5  ;;  %v608_v17 = vadd.f32 %v606_v7, %v552_v10  ;;  %v660_v25 = vadd.f32 %v652_v5, %v604_v13 }
 0x1b1   : > { %v666_v14 = vpack.c.bf16 %v656_v8, %v656_v8  ;;  %v671_v15 = vpack.c.bf16 %v658_v9, %v658_v9  ;;  %v664_v31 = vadd.f32 %v662_v26, %v608_v17  ;;  %v676_v37 = vsel %vm675_vm13, %v660_v25, 0.0 }
 0x1b2   : > { %v597_v18 = vpop.f32.mrf.mxu2  ;;  %v653_v19 = vpop.f32.mrf.mxu0 }
 0x1b3   : > { %669 = vst.msk [vmem:[%s1111_s19] sm:$0xf] %vm668_vm12, %v666_v14  ;;  %v598_v22 = vadd.f32 %v597_v18, %v433_v51  ;;  %v654_v23 = vadd.f32 %v653_v19, %v433_v51  ;;  %v687_v43 = vsel %vm675_vm13, %v664_v31, 0.0 }
 0x1b4   : > { %673 = vst.msk [vmem:[%s1117_s22] sm:$0xf] %vm668_vm12, %v671_v15 }
 0x1b5   : > { %v601_v27 = vmax.f32 %v545_v16, %v598_v22  ;;  %v603_v28 = vmin.f32 %v547_v20, %v598_v22  ;;  %v605_v29 = vadd.f32 %v598_v22, %v549_v21  ;;  %v607_v30 = vmul.f32 %v598_v22, %v598_v22 }
 0x1b6   : > { %v663_v32 = vmul.f32 %v654_v23, %v654_v23 }
 0x1b7   : > { %v609_v33 = vadd.f32 %v607_v30, %v553_v24  ;;  %v657_v34 = vmax.f32 %v601_v27, %v654_v23  ;;  %v659_v35 = vmin.f32 %v603_v28, %v654_v23  ;;  %v661_v36 = vadd.f32 %v654_v23, %v605_v29 }
 0x1b9   : > { %v665_v38 = vadd.f32 %v663_v32, %v609_v33  ;;  %v667_v39 = vpack.c.bf16 %v657_v34, %v657_v34  ;;  %v672_v40 = vpack.c.bf16 %v659_v35, %v659_v35  ;;  %v677_v41 = vsel %vm675_vm13, %v661_v36, 0.0 }
 0x1ba   : > { %v678_v42 = vadd.f32 %v677_v41, %v676_v37 }
 0x1bb   : > { %670 = vst.msk [vmem:[%s1111_s19 + $0x4] sm:$0xf] %vm668_vm12, %v667_v39  ;;  %v688_v44 = vsel %vm675_vm13, %v665_v38, 0.0 }
 0x1bc   : > { %674 = vst.msk [vmem:[%s1117_s22 + $0x4] sm:$0xf] %vm668_vm12, %v672_v40  ;;  %v679_v45 = vrot.slane %v678_v42, 4  ;;  %v689_v46 = vadd.f32 %v688_v44, %v687_v43 }
 0x1be   : > { %v680_v47 = vadd.f32 %v679_v45, %v678_v42  ;;  %v690_v48 = vrot.slane %v689_v46, 4 }
 0x1c0   : > { %v681_v49 = vrot.slane %v680_v47, 2  ;;  %v691_v50 = vadd.f32 %v690_v48, %v689_v46 }
 0x1c2   : > { %v682_v51 = vadd.f32 %v681_v49, %v680_v47  ;;  %v692_v52 = vrot.slane %v691_v50, 2 }
 0x1c4   : > { %v683_v53 = vrot.slane %v682_v51, 1  ;;  %v693_v54 = vadd.f32 %v692_v52, %v691_v50 }
 0x1c6   : > { %v684_v55 = vadd.f32 %v683_v53, %v682_v51  ;;  %v694_v56 = vrot.slane %v693_v54, 1 }
 0x1c8   : > { %686 = vst.msk [vmem:[%s387_s29] sm:$0x1] %vm685_vm14, %v684_v55  ;;  %v695_v57 = vadd.f32 %v694_v56, %v693_v54 }
 0x1ca   : > { %696 = vst.msk [vmem:[%s393_s9] sm:$0x1] %vm685_vm14, %v695_v57 }
 0x1cb PF: > { %s18_s26 = sadd.s32 1, %s1013_s26   ;;  %s1156_s24 = smov %s1009_s25 }
 0x1cc   : > { %p15_p5 = scmp.ge.s32.totalorder %s18_s26, 4   ;;  %s1157_s25 = smov %s1159_s27 }
 0x1ce   :  { %17 = sbr.rel (!%p15_p5) target bundleno = 2 (0x2), region = 106 }

// kernel: dgcnn_forward.18
= control target key start
LH: loop header
LB: loop body
LE: loop exit
PB: predicated region body
PF: predicated region fallthrough
CT: control target
= control target key end

     0   :  { %vm156_vm0 = vcmask 1043456   ;;  %v308_v12 = vmov 0   ;;  %vm149_vm4 = vcmask 64512   ;;  %vm211_vm14 = vcmask 60416   ;;  %s468_s9 = inlined_call_operand.vmem [shape: bf16[8,8], index: 9, kind: input, shape index: {}]   ;;  %s469_s8 = inlined_call_operand.vmem [shape: bf16[8,8], index: 8, kind: input, shape index: {}]   ;;  %s470_s2 = inlined_call_operand.vmem [shape: bf16[32,8], index: 2, kind: input, shape index: {}]   ;;  %s471_s3 = inlined_call_operand.vmem [shape: bf16[32,8], index: 3, kind: input, shape index: {}]   ;;  %s472_s6 = inlined_call_operand.vmem [shape: f32[1,8], index: 6, kind: input, shape index: {}]   ;;  %s473_s0 = inlined_call_operand.vmem [shape: bf16[32,8], index: 0, kind: input, shape index: {}]   ;;  %s474_s4 = inlined_call_operand.vmem [shape: f32[1,8], index: 4, kind: input, shape index: {}]   ;;  %s475_s7 = inlined_call_operand.vmem [shape: f32[1,8], index: 7, kind: input, shape index: {}]   ;;  %s476_s1 = inlined_call_operand.vmem [shape: bf16[32,8], index: 1, kind: input, shape index: {}]   ;;  %s477_s5 = inlined_call_operand.vmem [shape: f32[1,8], index: 5, kind: input, shape index: {}]   ;;  %s478_s10 = inlined_call_operand.vmem [shape: bf16[32,8], index: 10, kind: output, shape index: {0}]   ;;  %s479_s11 = inlined_call_operand.vmem [shape: f32[1,1,8], index: 11, kind: output, shape index: {1}]   ;;  %s480_s12 = inlined_call_operand.vmem [shape: f32[1,1,8], index: 12, kind: output, shape index: {2}]  }
   0x1   :  { %v148_v0 = vld [vmem:[%s468_s9] sm:$0xf]  ;;  %v299_v7 = vld [vmem:[%s470_s2 + $0x8] sm:$0xff]   ;;  %vm229_vm15 = vcmask 57344  }
   0x2   :  { %v145_v1 = vld [vmem:[%s469_s8] sm:$0xf]  ;;  %v158_v3 = vsel %vm156_vm0, %v148_v0, 0  ;;  %v287_v14 = vunpack.c.l.bf16 %v299_v7  ;;  %v288_v15 = vunpack.c.h.bf16 %v299_v7  ;;  %v300_v16 = vld [vmem:[%s471_s3 + $0x8] sm:$0xff]  }
   0x3   :  { %v91_v2 = vld [vmem:[%s472_s6] sm:$0x1]  ;;  %v186_v4 = vsel %vm156_vm0, %v145_v1, 0  ;;  %167 = vmatpush.bf16.msra.mxu0 %v158_v3  ;;  %301 = vmatpush.bf16.msra.mxu2 %v158_v3  ;;  %v295_v21 = vunpack.c.l.bf16 %v300_v16  ;;  %v296_v22 = vunpack.c.h.bf16 %v300_v16  ;;  %v297_v28 = vld [vmem:[%s473_s0 + $0x8] sm:$0xff]  }
   0x4   :  { %vm92_vm1 = vcmp.ge.f32.partialorder %v91_v2, 0.0  ;;  %v282_v5 = vld [vmem:[%s470_s2] sm:$0xff]   ;;  %195 = vmatpush.bf16.msra.mxu1 %v186_v4  ;;  %302 = vmatpush.bf16.msra.mxu3 %v186_v4  ;;  %v298_v37 = vld [vmem:[%s476_s1 + $0x8] sm:$0xff]   ;;  %v271_v41 = vunpack.c.l.bf16 %v297_v28  ;;  %v272_v49 = vunpack.c.h.bf16 %v297_v28 }
   0x5   :  { %v290_v6 = vld [vmem:[%s471_s3] sm:$0xff]   ;;  %v283_v8 = vunpack.c.l.bf16 %v282_v5  ;;  %v284_v9 = vunpack.c.h.bf16 %v282_v5  ;;  %v109_v13 = vsel %vm92_vm1, 1, %v308_v12  ;;  %v279_v50 = vunpack.c.l.bf16 %v298_v37 }
   0x6   :  { %v291_v10 = vunpack.c.l.bf16 %v290_v6  ;;  %v292_v11 = vunpack.c.h.bf16 %v290_v6  ;;  %v39_v17 = vld [vmem:[%s474_s4] sm:$0x1]  ;;  %v110_v19 = vperm.slane %v109_v13, 0  ;;  %v280_v51 = vunpack.c.h.bf16 %v298_v37 }
   0x7   :  { %v266_v18 = vld [vmem:[%s473_s0] sm:$0xff]   ;;  %vm40_vm2 = vcmp.ge.f32.partialorder %v39_v17, 0.0 }
   0x8   :  { %v304_v20 = vld [vmem:[%s472_s6] ss:$0 sm:$0xff]  ;;  %vm111_vm3 = vcmp.eq.s32.totalorder %v110_v19, 1  ;;  %v267_v24 = vunpack.c.l.bf16 %v266_v18  ;;  %v268_v25 = vunpack.c.h.bf16 %v266_v18  ;;  %v57_v27 = vsel %vm40_vm2, 1, %v308_v12 }
   0x9   :  { %v305_v23 = vld [vmem:[%s475_s7] ss:$0 sm:$0xff]  ;;  %v112_v29 = vsel %vm111_vm3, %v283_v8, %v291_v10  ;;  %v113_v30 = vsel %vm111_vm3, %v284_v9, %v292_v11  ;;  %v114_v31 = vsel %vm111_vm3, %v287_v14, %v295_v21  ;;  %v115_v32 = vsel %vm111_vm3, %v288_v15, %v296_v22 }
   0xa   :  { %v274_v26 = vld [vmem:[%s476_s1] sm:$0xff]   ;;  %v119_v33 = vmul.f32 %v304_v20, %v112_v29  ;;  %v120_v34 = vmul.f32 %v304_v20, %v113_v30  ;;  %v121_v35 = vmul.f32 %v304_v20, %v114_v31  ;;  %v122_v36 = vmul.f32 %v304_v20, %v115_v32 }
   0xb   :  { %v275_v38 = vunpack.c.l.bf16 %v274_v26  ;;  %v276_v39 = vunpack.c.h.bf16 %v274_v26  ;;  %v58_v40 = vperm.slane %v57_v27, 0  ;;  %v306_v47 = vld [vmem:[%s474_s4] ss:$0 sm:$0xff] }
   0xc   :  { %v127_v42 = vadd.f32 %v305_v23, %v119_v33  ;;  %v128_v43 = vadd.f32 %v305_v23, %v120_v34  ;;  %v129_v44 = vadd.f32 %v305_v23, %v121_v35  ;;  %v130_v45 = vadd.f32 %v305_v23, %v122_v36  ;;  %v307_v48 = vld [vmem:[%s477_s5] ss:$0 sm:$0xff] }
   0xd   :  { %vm416_vm5 = vcmp.eq.s32.totalorder %v58_v40, 1 }
   0xe   :  { %vm131_vm6 = vcmp.gt.f32.partialorder %v127_v42, 0.0  ;;  %vm132_vm7 = vcmp.gt.f32.partialorder %v128_v43, 0.0  ;;  %v135_v52 = vmul.f32 0.2, %v127_v42  ;;  %v136_v53 = vmul.f32 0.2, %v128_v43 }
   0xf   :  { %vm133_vm8 = vcmp.gt.f32.partialorder %v129_v44, 0.0  ;;  %vm134_vm9 = vcmp.gt.f32.partialorder %v130_v45, 0.0  ;;  %v137_v54 = vmul.f32 0.2, %v129_v44  ;;  %v138_v55 = vmul.f32 0.2, %v130_v45 }
  0x10   :  { %v139_v56 = vsel %vm131_vm6, %v127_v42, %v135_v52  ;;  %v140_v57 = vsel %vm132_vm7, %v128_v43, %v136_v53  ;;  %v60_v58 = vsel %vm416_vm5, %v267_v24, %v275_v38  ;;  %v61_v59 = vsel %vm416_vm5, %v268_v25, %v276_v39 }
  0x11   :  { %v146_v60 = vpack.c.bf16 %v140_v57, %v139_v56  ;;  %v141_v61 = vsel %vm133_vm8, %v129_v44, %v137_v54  ;;  %v142_v62 = vsel %vm134_vm9, %v130_v45, %v138_v55  ;;  %v67_v63 = vmul.f32 %v306_v47, %v60_v58 }
  0x12   :  { %v147_v0 = vpack.c.bf16 %v142_v62, %v141_v61  ;;  %v68_v1 = vmul.f32 %v306_v47, %v61_v59  ;;  %v62_v2 = vsel %vm416_vm5, %v271_v41, %v279_v50  ;;  %v63_v3 = vsel %vm416_vm5, %v272_v49, %v280_v51 }
  0x13   :  { %261 = vmatmul.msk.bf16.vlgmr.msra.gmra.mxu0 %vm149_vm4, %v146_v60  ;;  %v75_v4 = vadd.f32 %v307_v48, %v67_v63  ;;  %v69_v5 = vmul.f32 %v306_v47, %v62_v2  ;;  %v70_v6 = vmul.f32 %v306_v47, %v63_v3 }
  0x14   :  { %262 = vmatmul.msk.bf16.vlgmr.msra.gmra.mxu2 %vm149_vm4, %v147_v0  ;;  %v76_v7 = vadd.f32 %v307_v48, %v68_v1 }
  0x15   :  { %vm79_vm10 = vcmp.gt.f32.partialorder %v75_v4, 0.0  ;;  %v83_v8 = vmul.f32 0.2, %v75_v4  ;;  %v77_v9 = vadd.f32 %v307_v48, %v69_v5  ;;  %v78_v10 = vadd.f32 %v307_v48, %v70_v6 }
  0x16   :  { %vm80_vm11 = vcmp.gt.f32.partialorder %v76_v7, 0.0  ;;  %v84_v11 = vmul.f32 0.2, %v76_v7 }
  0x17   :  { %v87_v12 = vsel %vm79_vm10, %v75_v4, %v83_v8  ;;  %vm81_vm12 = vcmp.gt.f32.partialorder %v77_v9, 0.0  ;;  %vm82_vm13 = vcmp.gt.f32.partialorder %v78_v10, 0.0  ;;  %v85_v13 = vmul.f32 0.2, %v77_v9 }
  0x18   :  { %v88_v14 = vsel %vm80_vm11, %v76_v7, %v84_v11  ;;  %v86_v15 = vmul.f32 0.2, %v78_v10 }
  0x19   :  { %v143_v16 = vpack.c.bf16 %v88_v14, %v87_v12  ;;  %v89_v17 = vsel %vm81_vm12, %v77_v9, %v85_v13 }
  0x1a   :  { %v90_v18 = vsel %vm82_vm13, %v78_v10, %v86_v15 }
  0x1b   :  { %263 = vmatmul.msk.bf16.vlgmr.msra.gmra.mxu1 %vm149_vm4, %v143_v16  ;;  %v144_v19 = vpack.c.bf16 %v90_v18, %v89_v17 }
  0x1d   :  { %264 = vmatmul.msk.bf16.vlgmr.msra.gmra.mxu3 %vm149_vm4, %v144_v19 }
  0x90   :  { %v169_v20 = vpop.f32.mrf.mxu0 }
  0x97   :  { %v174_v24 = vpop.f32.mrf.mxu2 }
  0x98   :  { %v197_v21 = vpop.f32.mrf.mxu1  ;;  %v171_v25 = vpop.f32.mrf.mxu0 }
  0x99   :  { %v198_v22 = vadd.f32 %v197_v21, %v169_v20 }
  0x9b   :  { %v207_v23 = vpack.c.bf16 %v198_v22, %v198_v22  ;;  %v231_v30 = vmul.f32 %v198_v22, %v198_v22  ;;  %v216_v35 = vsel %vm149_vm4, %v198_v22, 0.0 }
  0x9d   :  { %212 = vst.msk [vmem:[%s478_s10] sm:$0xf] %vm211_vm14, %v207_v23  ;;  %v235_v39 = vsel %vm149_vm4, %v231_v30, 0.0 }
  0x9f   :  { %v176_v38 = vpop.f32.mrf.mxu2 }
  0xa0   :  { %v202_v26 = vpop.f32.mrf.mxu3  ;;  %v199_v27 = vpop.f32.mrf.mxu1 }
  0xa1   :  { %v203_v28 = vadd.f32 %v202_v26, %v174_v24  ;;  %v200_v29 = vadd.f32 %v199_v27, %v171_v25 }
  0xa3   :  { %v209_v31 = vpack.c.bf16 %v203_v28, %v203_v28  ;;  %v208_v32 = vpack.c.bf16 %v200_v29, %v200_v29  ;;  %v217_v33 = vsel %vm149_vm4, %v200_v29, 0.0  ;;  %v232_v34 = vmul.f32 %v200_v29, %v200_v29 }
  0xa4   :  { %v218_v36 = vadd.f32 %v217_v33, %v216_v35  ;;  %v233_v40 = vmul.f32 %v203_v28, %v203_v28  ;;  %v219_v43 = vsel %vm149_vm4, %v203_v28, 0.0 }
  0xa5   :  { %214 = vst.msk [vmem:[%s478_s10 + $0x8] sm:$0xf] %vm211_vm14, %v209_v31  ;;  %v236_v37 = vsel %vm149_vm4, %v232_v34, 0.0 }
  0xa6   :  { %213 = vst.msk [vmem:[%s478_s10 + $0x4] sm:$0xf] %vm211_vm14, %v208_v32  ;;  %v237_v41 = vadd.f32 %v236_v37, %v235_v39  ;;  %v220_v45 = vadd.f32 %v219_v43, %v218_v36  ;;  %v238_v46 = vsel %vm149_vm4, %v233_v40, 0.0 }
  0xa8   :  { %v204_v42 = vpop.f32.mrf.mxu3  ;;  %v239_v51 = vadd.f32 %v238_v46, %v237_v41 }
  0xa9   :  { %v205_v44 = vadd.f32 %v204_v42, %v176_v38 }
  0xab   :  { %v210_v47 = vpack.c.bf16 %v205_v44, %v205_v44  ;;  %v221_v48 = vsel %vm149_vm4, %v205_v44, 0.0  ;;  %v234_v49 = vmul.f32 %v205_v44, %v205_v44 }
  0xac   :  { %v222_v50 = vadd.f32 %v221_v48, %v220_v45 }
  0xad   :  { %215 = vst.msk [vmem:[%s478_s10 + $0xc] sm:$0xf] %vm211_vm14, %v210_v47  ;;  %v240_v52 = vsel %vm149_vm4, %v234_v49, 0.0 }
  0xae   :  { %v223_v53 = vrot.slane %v222_v50, 4  ;;  %v241_v54 = vadd.f32 %v240_v52, %v239_v51 }
  0xb0   :  { %v224_v55 = vadd.f32 %v223_v53, %v222_v50  ;;  %v242_v56 = vrot.slane %v241_v54, 4 }
  0xb2   :  { %v225_v57 = vrot.slane %v224_v55, 2  ;;  %v243_v58 = vadd.f32 %v242_v56, %v241_v54 }
  0xb4   :  { %v226_v59 = vadd.f32 %v225_v57, %v224_v55  ;;  %v244_v60 = vrot.slane %v243_v58, 2 }
  0xb6   :  { %v227_v61 = vrot.slane %v226_v59, 1  ;;  %v245_v62 = vadd.f32 %v244_v60, %v243_v58 }
  0xb8   :  { %v228_v63 = vadd.f32 %v227_v61, %v226_v59  ;;  %v246_v0 = vrot.slane %v245_v62, 1 }
  0xba   :  { %230 = vst.msk [vmem:[%s479_s11] sm:$0x1] %vm229_vm15, %v228_v63  ;;  %v247_v1 = vadd.f32 %v246_v0, %v245_v62 }
  0xbc   :  { %248 = vst.msk [vmem:[%s480_s12] sm:$0x1] %vm229_vm15, %v247_v1 }

// kernel: dgcnn_forward.20
= control target key start
LH: loop header
LB: loop body
LE: loop exit
PB: predicated region body
PF: predicated region fallthrough
CT: control target
= control target key end

     0   :  { %s479_s12 = smov 0   ;;  %s481_s13 = smov 0   ;;  %s518_s0 = inlined_call_operand.vmem [shape: f32[2,16,8], index: 0, kind: input, shape index: {}]   ;;  %s519_s1 = inlined_call_operand.vmem [shape: f32[2,8,16], index: 1, kind: input, shape index: {}]   ;;  %s520_s2 = inlined_call_operand.vmem [shape: f32[2,1,16], index: 2, kind: input, shape index: {}]   ;;  %s521_s3 = inlined_call_operand.vmem [shape: f32[2,16,16], index: 3, kind: output, shape index: {}]  }
   0x1   :  { %s483_s14 = smov 0  }
   0x2 LB: > { %s25_s15 = sadd.s32 1, %s453_s13  ;;  %p397_p0 = scmp.ge.s32.totalorder %s457_s14, 1  ;;  %s457_s14 = sphi %s483_s14, %s13_s14   ;;  %s453_s13 = sphi %s481_s13, %s523_s13   ;;  %s449_s12 = sphi %s479_s12, %s522_s12  }
   0x3   : > { %p27_p1 = scmp.ge.s32.totalorder %s25_s15, 2  ;;  %p175_p2 = scmp.lt.s32.totalorder %s457_s14, 3 }
   0x5   : > { %s525_s15 = smov (%p27_p1, %s25_s15), 0  ;;  %p176_p3 = pnand %p397_p0, %p175_p2 }
   0x6   : > { %p215_p4 = scmp.lt.s32.totalorder (!%p176_p3), %s449_s12, 1 }
   0x7   : > { %179 = sbr.rel (%p176_p3) target bundleno = 149 (0x95), region = 32 }
   0xc   : > { %s527_s12 = smov (!%p215_p4, %s449_s12), 1  ;;  %vm244_vm0 = vcmask 64512   ;;  %vm282_vm1 = vcmask 130048  }
   0xd   : > { %s400_s16 = sshll.u32 %s527_s12, 3  ;;  %s407_s17 = sshll.u32 %s527_s12, 4 }
   0xe   : > { %s227_s20 = scalar_lea.vmem %s519_s1, %s400_s16  ;;  %s222_s23 = scalar_lea.vmem %s518_s0, %s407_s17 }
   0xf   : > { %v243_v0 = vld [vmem:[%s227_s20] sm:$0xff]  ;;  %v242_v2 = vld [vmem:[%s222_s23 + $0x8] sm:$0xff]  ;;  %s230_s26 = scalar_lea.vmem %s520_s2, %s527_s12  ;;  %s239_s29 = scalar_lea.vmem %s521_s3, %s407_s17 }
  0x10   : > { %v241_v1 = vld [vmem:[%s222_s23] sm:$0xff]  ;;  %266 = vmatpush.msra.mxu0 %v243_v0  ;;  %409 = vmatpush.msra.mxu1 %v243_v0 }
  0x11   : > { %403 = vmatmul.msk.f32.vlgmr.msra.gmra.mxu0 %vm244_vm0, %v241_v1  ;;  %404 = vmatmul.msk.f32.vlgmr.msra.gmra.mxu1 %vm244_vm0, %v242_v2  ;;  %v434_v3 = vld [vmem:[%s230_s26] ss:$0 sm:$0xff] }
  0x8e   : > { %v268_v4 = vpop.f32.mrf.mxu0  ;;  %v271_v5 = vpop.f32.mrf.mxu1 }
  0x8f   : > { %v274_v6 = vmul.f32 2.0, %v268_v4  ;;  %v275_v7 = vmul.f32 2.0, %v271_v5 }
  0x91   : > { %v280_v8 = vsub.f32 %v274_v6, %v434_v3  ;;  %v281_v9 = vsub.f32 %v275_v7, %v434_v3 }
  0x93   : > { %283 = vst.msk [vmem:[%s239_s29] sm:$0xff] %vm282_vm1, %v280_v8 }
  0x94   : > { %284 = vst.msk [vmem:[%s239_s29 + $0x8] sm:$0xff] %vm282_vm1, %v281_v9 }
  0x95 PF: > { %s13_s14 = sadd.s32 1, %s457_s14   ;;  %s522_s12 = smov %s453_s13 }
  0x96   : > { %p10_p5 = scmp.ge.s32.totalorder %s13_s14, 4   ;;  %s523_s13 = smov %s525_s15 }
  0x98   :  { %12 = sbr.rel (!%p10_p5) target bundleno = 2 (0x2), region = 68 }

// kernel: dgcnn_forward.22
= control target key start
LH: loop header
LB: loop body
LE: loop exit
PB: predicated region body
PF: predicated region fallthrough
CT: control target
= control target key end

     0   :  { %s1055_s24 = smov 0   ;;  %s1057_s25 = smov 0   ;;  %s1142_s0 = inlined_call_operand.vmem [shape: bf16[2,16,8], index: 0, kind: input, shape index: {}]   ;;  %s1143_s1 = inlined_call_operand.vmem [shape: s32[2,16,4], index: 1, kind: input, shape index: {}]   ;;  %s1144_s2 = inlined_call_operand.vmem [shape: bf16[8,16], index: 2, kind: input, shape index: {}]   ;;  %s1145_s3 = inlined_call_operand.vmem [shape: bf16[8,16], index: 3, kind: input, shape index: {}]   ;;  %s1146_s4 = inlined_call_operand.vmem [shape: bf16[2,16,16], index: 4, kind: output, shape index: {0}]   ;;  %s1147_s5 = inlined_call_operand.vmem [shape: bf16[2,16,16], index: 5, kind: output, shape index: {1}]   ;;  %s1148_s6 = inlined_call_operand.vmem [shape: f32[2,1,1,16], index: 6, kind: output, shape index: {2}]   ;;  %s1149_s7 = inlined_call_operand.vmem [shape: f32[2,1,1,16], index: 7, kind: output, shape index: {3}]  }
   0x1   :  { %s1059_s26 = smov 0  }
   0x2 LB: > { %s30_s27 = sadd.s32 1, %s1004_s25  ;;  %p918_p0 = scmp.ge.s32.totalorder %s1008_s26, 1  ;;  %s1008_s26 = sphi %s1059_s26, %s18_s26   ;;  %s1004_s25 = sphi %s1057_s25, %s1151_s25   ;;  %s1000_s24 = sphi %s1055_s24, %s1150_s24  }
   0x3   : > { %p32_p1 = scmp.ge.s32.totalorder %s30_s27, 2  ;;  %p281_p2 = scmp.lt.s32.totalorder %s1008_s26, 3 }
   0x5   : > { %s1153_s27 = smov (%p32_p1, %s30_s27), 0  ;;  %p282_p3 = pnand %p918_p0, %p281_p2 }
   0x6   : > { %p347_p4 = scmp.lt.s32.totalorder (!%p282_p3), %s1000_s24, 1 }
   0x7   : > { %285 = sbr.rel (%p282_p3) target bundleno = 459 (0x1cb), region = 36 }
   0xc   : > { %v1010_v0 = vmov 1   ;;  %v1011_v1 = vmov 0   ;;  %s1155_s24 = smov (!%p347_p4, %s1000_s24), 1  ;;  %v1012_v2 = vmov 2   ;;  %v1013_v5 = vmov 3  }
   0xd   : > { %982 = vset.pattern.permute.xlu1 %v1010_v0  ;;  %981 = vset.pattern.permute.xlu0 %v1011_v1  ;;  %s947_s28 = sshll.u32 %s1155_s24, 4  ;;  %s1080_s9 = sshll.u32 %s1155_s24, 3  ;;  %v404_v7 = vld [vmem:[%s1144_s2] sm:$0xf]  ;;  %vm415_vm0 = vcmask 1043456   ;;  %v435_v12 = vlaneseq  ;;  %vm411_vm1 = vcmask 64512  }
   0xe   : > { %983 = vset.pattern.permute.xlu2 %v1012_v2  ;;  %s360_s8 = scalar_lea.vmem %s1143_s1, %s947_s28  ;;  %s351_s12 = scalar_lea.vmem %s1142_s0, %s1080_s9  ;;  %v405_v8 = vld [vmem:[%s1145_s3] sm:$0xf]  ;;  %v477_v10 = vsel %vm415_vm0, %v404_v7, 0  ;;  %vm454_vm6 = vcmask 130048   ;;  %v1014_v19 = vmov 0.0   ;;  %vm665_vm11 = vcmask 125952  }
   0xf   : > { %v433_v3 = vld [vmem:[%s360_s8] sm:$0xff]  ;;  %v434_v4 = vld [vmem:[%s360_s8 + $0x8] sm:$0xff]  ;;  %v417_v9 = vsel %vm415_vm0, %v405_v8, 0  ;;  %486 = vmatpush.bf16.msra.mxu2 %v477_v10  ;;  %v436_v15 = vand.u32 127, %v435_v12  ;;  %s1105_s19 = scalar_lea.vmem %s1146_s4, %s1080_s9  ;;  %s1111_s22 = scalar_lea.vmem %s1147_s5, %s1080_s9  ;;  %vm681_vm12 = vcmask 122880  }
  0x10   : > { %496 = vperm.xlu1 %982, %v433_v3   ;;  %438 = vperm.xlu0 %981, %v433_v3   ;;  %v950_v6 = vld [vmem:[%s351_s12] sm:$0xff]  ;;  %s387_s29 = scalar_lea.vmem %s1148_s6, %s1155_s24  ;;  %s393_s9 = scalar_lea.vmem %s1149_s7, %s1155_s24 }
  0x11   : > { %552 = vperm.xlu2 %983, %v433_v3   ;;  %465 = vmatpush.bf16.msra.mxu1 %v950_v6  ;;  %v951_v11 = vld [vmem:[%s351_s12] sm:$0xff] }
  0x12   : > { %516 = vmatpush.bf16.msra.mxu3 %v950_v6  ;;  %426 = vmatpush.bf16.msra.mxu0 %v417_v9 }
  0x13   : > { %590 = vmatpush.bf16.msrb.mxu2 %v477_v10 }
  0x15   : > { %572 = vmatpush.bf16.msrb.mxu1 %v950_v6  ;;  %931 = vmatmul.msk.bf16.vlgmr.msra.gmra.mxu0 %vm411_vm1, %v951_v11 }
  0x16   : > { %628 = vmatpush.bf16.msrb.mxu3 %v950_v6  ;;  %534 = vmatpush.bf16.msrb.mxu0 %v477_v10 }
  0x18   : > { %499 = vperm.xlu1 %982, %v434_v4   ;;  %441 = vperm.xlu0 %981, %v434_v4  }
  0x19   : > { %555 = vperm.xlu2 %983, %v434_v4  }
  0x1a   : > { %646 = vmatpush.bf16.msra.mxu0 %v477_v10 }
  0x20   : > { %985 = vset.pattern.permute.xlu1 %v1013_v5  ;;  %984 = vset.pattern.permute.xlu0 %v1013_v5 }
  0x21   : > { %611 = vperm.xlu1 %985, %v434_v4   ;;  %608 = vperm.xlu0 %984, %v433_v3  }
  0x6b   : > { %v553_v16 = vpop.permute.xlu2 %552 }
  0x6c   : > { %vm557_vm9 = vcmp.eq.s32.totalorder %v553_v16, %v436_v15 }
  0x6d   : > { %v559_v31 = vsel %vm557_vm9, 1.0, %v1014_v19 }
  0x73   : > { %v556_v28 = vpop.permute.xlu2 %555 }
  0x74   : > { %vm558_vm10 = vcmp.eq.s32.totalorder %v556_v28, %v436_v15 }
  0x75   : > { %v560_v32 = vsel %vm558_vm10, 1.0, %v1014_v19 }
  0x76   : > { %v561_v34 = vpack.c.bf16 %v560_v32, %v559_v31 }
  0x82   : > { %v497_v13 = vpop.permute.xlu1 %496  ;;  %v439_v14 = vpop.permute.xlu0 %438 }
  0x83   : > { %vm501_vm2 = vcmp.eq.s32.totalorder %v497_v13, %v436_v15  ;;  %vm443_vm3 = vcmp.eq.s32.totalorder %v439_v14, %v436_v15 }
  0x84   : > { %v503_v20 = vsel %vm501_vm2, 1.0, %v1014_v19  ;;  %v445_v21 = vsel %vm443_vm3, 1.0, %v1014_v19 }
  0x8a   : > { %v500_v17 = vpop.permute.xlu1 %499  ;;  %v442_v18 = vpop.permute.xlu0 %441 }
  0x8b   : > { %vm502_vm4 = vcmp.eq.s32.totalorder %v500_v17, %v436_v15  ;;  %vm444_vm5 = vcmp.eq.s32.totalorder %v442_v18, %v436_v15 }
  0x8c   : > { %v504_v22 = vsel %vm502_vm4, 1.0, %v1014_v19  ;;  %v446_v23 = vsel %vm444_vm5, 1.0, %v1014_v19 }
  0x8d   : > { %v505_v24 = vpack.c.bf16 %v504_v22, %v503_v20  ;;  %v447_v25 = vpack.c.bf16 %v446_v23, %v445_v21 }
  0x8f   : > { %936 = vmatmul.msk.bf16.vlgmr.msra.gmra.mxu1 %vm454_vm6, %v447_v25  ;;  %938 = vmatmul.msk.bf16.vlgmr.msra.gmra.mxu3 %vm454_vm6, %v505_v24 }
  0x92   : > { %v428_v47 = vpop.f32.mrf.mxu0 }
  0x93   : > { %v612_v26 = vpop.permute.xlu1 %611  ;;  %v609_v27 = vpop.permute.xlu0 %608 }
  0x94   : > { %vm614_vm7 = vcmp.eq.s32.totalorder %v612_v26, %v436_v15  ;;  %vm613_vm8 = vcmp.eq.s32.totalorder %v609_v27, %v436_v15 }
  0x95   : > { %v616_v29 = vsel %vm614_vm7, 1.0, %v1014_v19  ;;  %v615_v30 = vsel %vm613_vm8, 1.0, %v1014_v19 }
  0x96   : > { %v617_v33 = vpack.c.bf16 %v616_v29, %v615_v30 }
  0x9a   : > { %v430_v48 = vpop.f32.mrf.mxu0 }
  0x9f   : > { %940 = vmatmul.msk.bf16.vlgmr.msrb.gmra.mxu1 %vm454_vm6, %v561_v34  ;;  %942 = vmatmul.msk.bf16.vlgmr.msrb.gmra.mxu3 %vm454_vm6, %v617_v33 }
 0x10c   : > { %v467_v35 = vpop.f32.mrf.mxu1 }
 0x112   : > { %v518_v36 = vpop.f32.mrf.mxu3 }
 0x114   : > { %v469_v37 = vpop.f32.mrf.mxu1 }
 0x115   : > { %v472_v38 = vpack.c.bf16 %v469_v37, %v467_v35 }
 0x117   : > { %937 = vmatmul.msk.bf16.vlgmr.msra.gmra.mxu2 %vm411_vm1, %v472_v38 }
 0x11a   : > { %v520_v39 = vpop.f32.mrf.mxu3 }
 0x11b   : > { %v523_v40 = vpack.c.bf16 %v520_v39, %v518_v36 }
 0x11c   : > { %v574_v41 = vpop.f32.mrf.mxu1 }
 0x11d   : > { %939 = vmatmul.msk.bf16.vlgmr.msrb.gmra.mxu0 %vm411_vm1, %v523_v40 }
 0x122   : > { %v630_v42 = vpop.f32.mrf.mxu3 }
 0x124   : > { %v576_v43 = vpop.f32.mrf.mxu1 }
 0x125   : > { %v579_v44 = vpack.c.bf16 %v576_v43, %v574_v41 }
 0x127   : > { %941 = vmatmul.msk.bf16.vlgmr.msrb.gmra.mxu2 %vm411_vm1, %v579_v44 }
 0x12a   : > { %v632_v45 = vpop.f32.mrf.mxu3 }
 0x12b   : > { %v635_v46 = vpack.c.bf16 %v632_v45, %v630_v42 }
 0x12d   : > { %943 = vmatmul.msk.bf16.vlgmr.msra.gmra.mxu0 %vm411_vm1, %v635_v46 }
 0x19a   : > { %v488_v49 = vpop.f32.mrf.mxu2  ;;  %v536_v50 = vpop.f32.mrf.mxu0 }
 0x19b   : > { %v489_v53 = vadd.f32 %v488_v49, %v428_v47  ;;  %v537_v54 = vadd.f32 %v536_v50, %v428_v47 }
 0x19d   : > { %v541_v57 = vmax.f32 %v489_v53, %v537_v54  ;;  %v543_v58 = vmin.f32 %v489_v53, %v537_v54  ;;  %v493_v60 = vmul.f32 %v489_v53, %v489_v53  ;;  %v547_v61 = vmul.f32 %v537_v54, %v537_v54 }
 0x19e   : > { %v545_v3 = vadd.f32 %v537_v54, %v489_v53 }
 0x19f   : > { %v549_v7 = vadd.f32 %v547_v61, %v493_v60 }
 0x1a2   : > { %v490_v51 = vpop.f32.mrf.mxu2  ;;  %v538_v52 = vpop.f32.mrf.mxu0 }
 0x1a3   : > { %v491_v62 = vadd.f32 %v490_v51, %v430_v48  ;;  %v539_v63 = vadd.f32 %v538_v52, %v430_v48 }
 0x1a5   : > { %v494_v8 = vmul.f32 %v491_v62, %v491_v62  ;;  %v548_v9 = vmul.f32 %v539_v63, %v539_v63  ;;  %v542_v13 = vmax.f32 %v491_v62, %v539_v63  ;;  %v544_v17 = vmin.f32 %v491_v62, %v539_v63 }
 0x1a6   : > { %v546_v18 = vadd.f32 %v539_v63, %v491_v62 }
 0x1a7   : > { %v550_v21 = vadd.f32 %v548_v9, %v494_v8 }
 0x1aa   : > { %v592_v55 = vpop.f32.mrf.mxu2  ;;  %v648_v56 = vpop.f32.mrf.mxu0 }
 0x1ab   : > { %v593_v59 = vadd.f32 %v592_v55, %v428_v47  ;;  %v649_v2 = vadd.f32 %v648_v56, %v428_v47 }
 0x1ad   : > { %v597_v0 = vmax.f32 %v541_v57, %v593_v59  ;;  %v599_v1 = vmin.f32 %v543_v58, %v593_v59  ;;  %v603_v4 = vmul.f32 %v593_v59, %v593_v59  ;;  %v601_v10 = vadd.f32 %v593_v59, %v545_v3 }
 0x1ae   : > { %v659_v23 = vmul.f32 %v649_v2, %v649_v2 }
 0x1af   : > { %v653_v5 = vmax.f32 %v597_v0, %v649_v2  ;;  %v655_v6 = vmin.f32 %v599_v1, %v649_v2  ;;  %v605_v14 = vadd.f32 %v603_v4, %v549_v7  ;;  %v657_v22 = vadd.f32 %v649_v2, %v601_v10 }
 0x1b1   : > { %v663_v11 = vpack.c.bf16 %v653_v5, %v653_v5  ;;  %v668_v12 = vpack.c.bf16 %v655_v6, %v655_v6  ;;  %v661_v28 = vadd.f32 %v659_v23, %v605_v14  ;;  %v672_v34 = vsel %vm454_vm6, %v657_v22, 0.0 }
 0x1b2   : > { %v594_v15 = vpop.f32.mrf.mxu2  ;;  %v650_v16 = vpop.f32.mrf.mxu0 }
 0x1b3   : > { %666 = vst.msk [vmem:[%s1105_s19] sm:$0xf] %vm665_vm11, %v663_v11  ;;  %v595_v19 = vadd.f32 %v594_v15, %v430_v48  ;;  %v651_v20 = vadd.f32 %v650_v16, %v430_v48  ;;  %v683_v40 = vsel %vm454_vm6, %v661_v28, 0.0 }
 0x1b4   : > { %670 = vst.msk [vmem:[%s1111_s22] sm:$0xf] %vm665_vm11, %v668_v12 }
 0x1b5   : > { %v598_v24 = vmax.f32 %v542_v13, %v595_v19  ;;  %v600_v25 = vmin.f32 %v544_v17, %v595_v19  ;;  %v602_v26 = vadd.f32 %v595_v19, %v546_v18  ;;  %v604_v27 = vmul.f32 %v595_v19, %v595_v19 }
 0x1b6   : > { %v660_v29 = vmul.f32 %v651_v20, %v651_v20 }
 0x1b7   : > { %v606_v30 = vadd.f32 %v604_v27, %v550_v21  ;;  %v654_v31 = vmax.f32 %v598_v24, %v651_v20  ;;  %v656_v32 = vmin.f32 %v600_v25, %v651_v20  ;;  %v658_v33 = vadd.f32 %v651_v20, %v602_v26 }
 0x1b9   : > { %v662_v35 = vadd.f32 %v660_v29, %v606_v30  ;;  %v664_v36 = vpack.c.bf16 %v654_v31, %v654_v31  ;;  %v669_v37 = vpack.c.bf16 %v656_v32, %v656_v32  ;;  %v673_v38 = vsel %vm454_vm6, %v658_v33, 0.0 }
 0x1ba   : > { %v674_v39 = vadd.f32 %v673_v38, %v672_v34 }
 0x1bb   : > { %667 = vst.msk [vmem:[%s1105_s19 + $0x4] sm:$0xf] %vm665_vm11, %v664_v36  ;;  %v684_v41 = vsel %vm454_vm6, %v662_v35, 0.0 }
 0x1bc   : > { %671 = vst.msk [vmem:[%s1111_s22 + $0x4] sm:$0xf] %vm665_vm11, %v669_v37  ;;  %v675_v42 = vrot.slane %v674_v39, 4  ;;  %v685_v43 = vadd.f32 %v684_v41, %v683_v40 }
 0x1be   : > { %v676_v44 = vadd.f32 %v675_v42, %v674_v39  ;;  %v686_v45 = vrot.slane %v685_v43, 4 }
 0x1c0   : > { %v677_v46 = vrot.slane %v676_v44, 2  ;;  %v687_v47 = vadd.f32 %v686_v45, %v685_v43 }
 0x1c2   : > { %v678_v48 = vadd.f32 %v677_v46, %v676_v44  ;;  %v688_v49 = vrot.slane %v687_v47, 2 }
 0x1c4   : > { %v679_v50 = vrot.slane %v678_v48, 1  ;;  %v689_v51 = vadd.f32 %v688_v49, %v687_v47 }
 0x1c6   : > { %v680_v52 = vadd.f32 %v679_v50, %v678_v48  ;;  %v690_v53 = vrot.slane %v689_v51, 1 }
 0x1c8   : > { %682 = vst.msk [vmem:[%s387_s29] sm:$0x1] %vm681_vm12, %v680_v52  ;;  %v691_v54 = vadd.f32 %v690_v53, %v689_v51 }
 0x1ca   : > { %692 = vst.msk [vmem:[%s393_s9] sm:$0x1] %vm681_vm12, %v691_v54 }
 0x1cb PF: > { %s18_s26 = sadd.s32 1, %s1008_s26   ;;  %s1150_s24 = smov %s1004_s25 }
 0x1cc   : > { %p15_p5 = scmp.ge.s32.totalorder %s18_s26, 4   ;;  %s1151_s25 = smov %s1153_s27 }
 0x1ce   :  { %17 = sbr.rel (!%p15_p5) target bundleno = 2 (0x2), region = 106 }

// kernel: dgcnn_forward.24
= control target key start
LH: loop header
LB: loop body
LE: loop exit
PB: predicated region body
PF: predicated region fallthrough
CT: control target
= control target key end

     0   :  { %vm50_vm0 = vcmask 130048   ;;  %s118_s0 = inlined_call_operand.vmem [shape: bf16[32,16], index: 0, kind: input, shape index: {}]   ;;  %s119_s1 = inlined_call_operand.vmem [shape: f32[1,16], index: 1, kind: input, shape index: {}]   ;;  %s120_s2 = inlined_call_operand.vmem [shape: f32[1,16], index: 2, kind: input, shape index: {}]   ;;  %s121_s3 = inlined_call_operand.vmem [shape: f32[32,16], index: 3, kind: output, shape index: {}]  }
   0x1   :  { %v60_v0 = vld [vmem:[%s118_s0] sm:$0xff]   ;;  %v67_v5 = vld [vmem:[%s118_s0 + $0x8] sm:$0xff]  }
   0x2   :  { %v68_v1 = vld [vmem:[%s119_s1] ss:$0 sm:$0xff]  ;;  %v61_v2 = vunpack.c.l.bf16 %v60_v0  ;;  %v62_v4 = vunpack.c.h.bf16 %v60_v0  ;;  %v65_v6 = vunpack.c.l.bf16 %v67_v5  ;;  %v66_v7 = vunpack.c.h.bf16 %v67_v5 }
   0x3   :  { %v69_v3 = vld [vmem:[%s120_s2] ss:$0 sm:$0xff] }
   0x4   :  { %v26_v8 = vmul.f32 %v68_v1, %v61_v2  ;;  %v27_v9 = vmul.f32 %v68_v1, %v62_v4  ;;  %v28_v10 = vmul.f32 %v68_v1, %v65_v6  ;;  %v29_v11 = vmul.f32 %v68_v1, %v66_v7 }
   0x6   :  { %v34_v12 = vadd.f32 %v69_v3, %v26_v8  ;;  %v35_v13 = vadd.f32 %v69_v3, %v27_v9  ;;  %v36_v14 = vadd.f32 %v69_v3, %v28_v10  ;;  %v37_v15 = vadd.f32 %v69_v3, %v29_v11 }
   0x8   :  { %vm38_vm1 = vcmp.gt.f32.partialorder %v34_v12, 0.0  ;;  %v42_v16 = vmul.f32 0.2, %v34_v12  ;;  %vm39_vm2 = vcmp.gt.f32.partialorder %v35_v13, 0.0  ;;  %v43_v17 = vmul.f32 0.2, %v35_v13 }
   0x9   :  { %vm40_vm3 = vcmp.gt.f32.partialorder %v36_v14, 0.0  ;;  %v44_v18 = vmul.f32 0.2, %v36_v14  ;;  %vm41_vm4 = vcmp.gt.f32.partialorder %v37_v15, 0.0  ;;  %v45_v19 = vmul.f32 0.2, %v37_v15 }
   0xa   :  { %v46_v20 = vsel %vm38_vm1, %v34_v12, %v42_v16  ;;  %v47_v21 = vsel %vm39_vm2, %v35_v13, %v43_v17 }
   0xb   :  { %51 = vst.msk [vmem:[%s121_s3] sm:$0xff] %vm50_vm0, %v46_v20  ;;  %v48_v22 = vsel %vm40_vm3, %v36_v14, %v44_v18  ;;  %v49_v23 = vsel %vm41_vm4, %v37_v15, %v45_v19 }
   0xc   :  { %52 = vst.msk [vmem:[%s121_s3 + $0x8] sm:$0xff] %vm50_vm0, %v47_v21 }
   0xd   :  { %53 = vst.msk [vmem:[%s121_s3 + $0x10] sm:$0xff] %vm50_vm0, %v48_v22 }
   0xe   :  { %54 = vst.msk [vmem:[%s121_s3 + $0x18] sm:$0xff] %vm50_vm0, %v49_v23 }

// kernel: dgcnn_forward.23
= control target key start
LH: loop header
LB: loop body
LE: loop exit
PB: predicated region body
PF: predicated region fallthrough
CT: control target
= control target key end

     0   :  { %v325_v10 = vmov 0   ;;  %vm157_vm3 = vcmask 130048   ;;  %vm218_vm13 = vcmask 125952   ;;  %vm236_vm14 = vcmask 122880   ;;  %s485_s9 = inlined_call_operand.vmem [shape: bf16[16,16], index: 9, kind: input, shape index: {}]   ;;  %s486_s8 = inlined_call_operand.vmem [shape: bf16[16,16], index: 8, kind: input, shape index: {}]   ;;  %s487_s2 = inlined_call_operand.vmem [shape: bf16[32,16], index: 2, kind: input, shape index: {}]   ;;  %s488_s3 = inlined_call_operand.vmem [shape: bf16[32,16], index: 3, kind: input, shape index: {}]   ;;  %s489_s6 = inlined_call_operand.vmem [shape: f32[1,16], index: 6, kind: input, shape index: {}]   ;;  %s490_s0 = inlined_call_operand.vmem [shape: bf16[32,16], index: 0, kind: input, shape index: {}]   ;;  %s491_s4 = inlined_call_operand.vmem [shape: f32[1,16], index: 4, kind: input, shape index: {}]   ;;  %s492_s7 = inlined_call_operand.vmem [shape: f32[1,16], index: 7, kind: input, shape index: {}]   ;;  %s493_s1 = inlined_call_operand.vmem [shape: bf16[32,16], index: 1, kind: input, shape index: {}]   ;;  %s494_s5 = inlined_call_operand.vmem [shape: f32[1,16], index: 5, kind: input, shape index: {}]   ;;  %s495_s10 = inlined_call_operand.vmem [shape: bf16[32,16], index: 10, kind: output, shape index: {0}]   ;;  %s496_s11 = inlined_call_operand.vmem [shape: f32[1,1,16], index: 11, kind: output, shape index: {1}]   ;;  %s497_s12 = inlined_call_operand.vmem [shape: f32[1,1,16], index: 12, kind: output, shape index: {2}]  }
   0x1   :  { %v281_v0 = vld [vmem:[%s485_s9] sm:$0xff]  ;;  %v316_v8 = vld [vmem:[%s487_s2 + $0x8] sm:$0xff]  }
   0x2   :  { %v280_v1 = vld [vmem:[%s486_s8] sm:$0xff]  ;;  %171 = vmatpush.bf16.msra.mxu0 %v281_v0  ;;  %318 = vmatpush.bf16.msra.mxu2 %v281_v0  ;;  %v304_v12 = vunpack.c.l.bf16 %v316_v8  ;;  %v305_v13 = vunpack.c.h.bf16 %v316_v8  ;;  %v317_v14 = vld [vmem:[%s488_s3 + $0x8] sm:$0xff]  }
   0x3   :  { %v91_v2 = vld [vmem:[%s489_s6] sm:$0x1]  ;;  %202 = vmatpush.bf16.msra.mxu1 %v280_v1  ;;  %319 = vmatpush.bf16.msra.mxu3 %v280_v1  ;;  %v312_v19 = vunpack.c.l.bf16 %v317_v14  ;;  %v313_v20 = vunpack.c.h.bf16 %v317_v14  ;;  %v314_v26 = vld [vmem:[%s490_s0 + $0x8] sm:$0xff]  }
   0x4   :  { %vm92_vm0 = vcmp.ge.f32.partialorder %v91_v2, 0.0  ;;  %v299_v3 = vld [vmem:[%s487_s2] sm:$0xff]   ;;  %v315_v35 = vld [vmem:[%s493_s1 + $0x8] sm:$0xff]   ;;  %v288_v39 = vunpack.c.l.bf16 %v314_v26  ;;  %v289_v47 = vunpack.c.h.bf16 %v314_v26 }
   0x5   :  { %v307_v4 = vld [vmem:[%s488_s3] sm:$0xff]   ;;  %v300_v5 = vunpack.c.l.bf16 %v299_v3  ;;  %v301_v6 = vunpack.c.h.bf16 %v299_v3  ;;  %v109_v11 = vsel %vm92_vm0, 1, %v325_v10  ;;  %v296_v48 = vunpack.c.l.bf16 %v315_v35 }
   0x6   :  { %v308_v7 = vunpack.c.l.bf16 %v307_v4  ;;  %v309_v9 = vunpack.c.h.bf16 %v307_v4  ;;  %v39_v15 = vld [vmem:[%s491_s4] sm:$0x1]  ;;  %v110_v17 = vperm.slane %v109_v11, 0  ;;  %v297_v49 = vunpack.c.h.bf16 %v315_v35 }
   0x7   :  { %v283_v16 = vld [vmem:[%s490_s0] sm:$0xff]   ;;  %vm40_vm1 = vcmp.ge.f32.partialorder %v39_v15, 0.0 }
   0x8   :  { %v321_v18 = vld [vmem:[%s489_s6] ss:$0 sm:$0xff]  ;;  %vm111_vm2 = vcmp.eq.s32.totalorder %v110_v17, 1  ;;  %v284_v22 = vunpack.c.l.bf16 %v283_v16  ;;  %v285_v23 = vunpack.c.h.bf16 %v283_v16  ;;  %v57_v25 = vsel %vm40_vm1, 1, %v325_v10 }
   0x9   :  { %v322_v21 = vld [vmem:[%s492_s7] ss:$0 sm:$0xff]  ;;  %v112_v27 = vsel %vm111_vm2, %v300_v5, %v308_v7  ;;  %v113_v28 = vsel %vm111_vm2, %v301_v6, %v309_v9  ;;  %v114_v29 = vsel %vm111_vm2, %v304_v12, %v312_v19  ;;  %v115_v30 = vsel %vm111_vm2, %v305_v13, %v313_v20 }
   0xa   :  { %v291_v24 = vld [vmem:[%s493_s1] sm:$0xff]   ;;  %v119_v31 = vmul.f32 %v321_v18, %v112_v27  ;;  %v120_v32 = vmul.f32 %v321_v18, %v113_v28  ;;  %v121_v33 = vmul.f32 %v321_v18, %v114_v29  ;;  %v122_v34 = vmul.f32 %v321_v18, %v115_v30 }
   0xb   :  { %v292_v36 = vunpack.c.l.bf16 %v291_v24  ;;  %v293_v37 = vunpack.c.h.bf16 %v291_v24  ;;  %v58_v38 = vperm.slane %v57_v25, 0  ;;  %v323_v45 = vld [vmem:[%s491_s4] ss:$0 sm:$0xff] }
   0xc   :  { %v127_v40 = vadd.f32 %v322_v21, %v119_v31  ;;  %v128_v41 = vadd.f32 %v322_v21, %v120_v32  ;;  %v129_v42 = vadd.f32 %v322_v21, %v121_v33  ;;  %v130_v43 = vadd.f32 %v322_v21, %v122_v34  ;;  %v324_v46 = vld [vmem:[%s494_s5] ss:$0 sm:$0xff] }
   0xd   :  { %vm433_vm4 = vcmp.eq.s32.totalorder %v58_v38, 1 }
   0xe   :  { %vm131_vm5 = vcmp.gt.f32.partialorder %v127_v40, 0.0  ;;  %vm132_vm6 = vcmp.gt.f32.partialorder %v128_v41, 0.0  ;;  %v135_v50 = vmul.f32 0.2, %v127_v40  ;;  %v136_v51 = vmul.f32 0.2, %v128_v41 }
   0xf   :  { %vm133_vm7 = vcmp.gt.f32.partialorder %v129_v42, 0.0  ;;  %vm134_vm8 = vcmp.gt.f32.partialorder %v130_v43, 0.0  ;;  %v137_v52 = vmul.f32 0.2, %v129_v42  ;;  %v138_v53 = vmul.f32 0.2, %v130_v43 }
  0x10   :  { %v139_v54 = vsel %vm131_vm5, %v127_v40, %v135_v50  ;;  %v140_v55 = vsel %vm132_vm6, %v128_v41, %v136_v51  ;;  %v60_v56 = vsel %vm433_vm4, %v284_v22, %v292_v36  ;;  %v61_v57 = vsel %vm433_vm4, %v285_v23, %v293_v37 }
  0x11   :  { %v147_v58 = vpack.c.bf16 %v140_v55, %v139_v54  ;;  %v141_v59 = vsel %vm133_vm7, %v129_v42, %v137_v52  ;;  %v142_v60 = vsel %vm134_vm8, %v130_v43, %v138_v53  ;;  %v67_v61 = vmul.f32 %v323_v45, %v60_v56 }
  0x12   :  { %v148_v62 = vpack.c.bf16 %v142_v60, %v141_v59  ;;  %v68_v63 = vmul.f32 %v323_v45, %v61_v57  ;;  %v62_v0 = vsel %vm433_vm4, %v288_v39, %v296_v48  ;;  %v63_v1 = vsel %vm433_vm4, %v289_v47, %v297_v49 }
  0x13   :  { %272 = vmatmul.msk.bf16.vlgmr.msra.gmra.mxu0 %vm157_vm3, %v147_v58  ;;  %v75_v2 = vadd.f32 %v324_v46, %v67_v61  ;;  %v69_v3 = vmul.f32 %v323_v45, %v62_v0  ;;  %v70_v4 = vmul.f32 %v323_v45, %v63_v1 }
  0x14   :  { %273 = vmatmul.msk.bf16.vlgmr.msra.gmra.mxu2 %vm157_vm3, %v148_v62  ;;  %v76_v5 = vadd.f32 %v324_v46, %v68_v63 }
  0x15   :  { %vm79_vm9 = vcmp.gt.f32.partialorder %v75_v2, 0.0  ;;  %v83_v6 = vmul.f32 0.2, %v75_v2  ;;  %v77_v7 = vadd.f32 %v324_v46, %v69_v3  ;;  %v78_v8 = vadd.f32 %v324_v46, %v70_v4 }
  0x16   :  { %vm80_vm10 = vcmp.gt.f32.partialorder %v76_v5, 0.0  ;;  %v84_v9 = vmul.f32 0.2, %v76_v5 }
  0x17   :  { %v87_v10 = vsel %vm79_vm9, %v75_v2, %v83_v6  ;;  %vm81_vm11 = vcmp.gt.f32.partialorder %v77_v7, 0.0  ;;  %vm82_vm12 = vcmp.gt.f32.partialorder %v78_v8, 0.0  ;;  %v85_v11 = vmul.f32 0.2, %v77_v7 }
  0x18   :  { %v88_v12 = vsel %vm80_vm10, %v76_v5, %v84_v9  ;;  %v86_v13 = vmul.f32 0.2, %v78_v8 }
  0x19   :  { %v143_v14 = vpack.c.bf16 %v88_v12, %v87_v10  ;;  %v89_v15 = vsel %vm81_vm11, %v77_v7, %v85_v11 }
  0x1a   :  { %v90_v16 = vsel %vm82_vm12, %v78_v8, %v86_v13 }
  0x1b   :  { %278 = vmatmul.msk.bf16.vlgmr.msra.gmra.mxu1 %vm157_vm3, %v143_v14  ;;  %v144_v17 = vpack.c.bf16 %v90_v16, %v89_v15 }
  0x1d   :  { %279 = vmatmul.msk.bf16.vlgmr.msra.gmra.mxu3 %vm157_vm3, %v144_v17 }
  0x90   :  { %v173_v18 = vpop.f32.mrf.mxu0 }
  0x97   :  { %v178_v22 = vpop.f32.mrf.mxu2 }
  0x98   :  { %v204_v19 = vpop.f32.mrf.mxu1  ;;  %v175_v23 = vpop.f32.mrf.mxu0 }
  0x99   :  { %v205_v20 = vadd.f32 %v204_v19, %v173_v18 }
  0x9b   :  { %v214_v21 = vpack.c.bf16 %v205_v20, %v205_v20  ;;  %v238_v28 = vmul.f32 %v205_v20, %v205_v20  ;;  %v223_v33 = vsel %vm157_vm3, %v205_v20, 0.0 }
  0x9d   :  { %219 = vst.msk [vmem:[%s495_s10] sm:$0xf] %vm218_vm13, %v214_v21  ;;  %v242_v37 = vsel %vm157_vm3, %v238_v28, 0.0 }
  0x9f   :  { %v180_v36 = vpop.f32.mrf.mxu2 }
  0xa0   :  { %v209_v24 = vpop.f32.mrf.mxu3  ;;  %v206_v25 = vpop.f32.mrf.mxu1 }
  0xa1   :  { %v210_v26 = vadd.f32 %v209_v24, %v178_v22  ;;  %v207_v27 = vadd.f32 %v206_v25, %v175_v23 }
  0xa3   :  { %v216_v29 = vpack.c.bf16 %v210_v26, %v210_v26  ;;  %v215_v30 = vpack.c.bf16 %v207_v27, %v207_v27  ;;  %v224_v31 = vsel %vm157_vm3, %v207_v27, 0.0  ;;  %v239_v32 = vmul.f32 %v207_v27, %v207_v27 }
  0xa4   :  { %v225_v34 = vadd.f32 %v224_v31, %v223_v33  ;;  %v240_v38 = vmul.f32 %v210_v26, %v210_v26  ;;  %v226_v41 = vsel %vm157_vm3, %v210_v26, 0.0 }
  0xa5   :  { %221 = vst.msk [vmem:[%s495_s10 + $0x8] sm:$0xf] %vm218_vm13, %v216_v29  ;;  %v243_v35 = vsel %vm157_vm3, %v239_v32, 0.0 }
  0xa6   :  { %220 = vst.msk [vmem:[%s495_s10 + $0x4] sm:$0xf] %vm218_vm13, %v215_v30  ;;  %v244_v39 = vadd.f32 %v243_v35, %v242_v37  ;;  %v227_v43 = vadd.f32 %v226_v41, %v225_v34  ;;  %v245_v44 = vsel %vm157_vm3, %v240_v38, 0.0 }
  0xa8   :  { %v211_v40 = vpop.f32.mrf.mxu3  ;;  %v246_v49 = vadd.f32 %v245_v44, %v244_v39 }
  0xa9   :  { %v212_v42 = vadd.f32 %v211_v40, %v180_v36 }
  0xab   :  { %v217_v45 = vpack.c.bf16 %v212_v42, %v212_v42  ;;  %v228_v46 = vsel %vm157_vm3, %v212_v42, 0.0  ;;  %v241_v47 = vmul.f32 %v212_v42, %v212_v42 }
  0xac   :  { %v229_v48 = vadd.f32 %v228_v46, %v227_v43 }
  0xad   :  { %222 = vst.msk [vmem:[%s495_s10 + $0xc] sm:$0xf] %vm218_vm13, %v217_v45  ;;  %v247_v50 = vsel %vm157_vm3, %v241_v47, 0.0 }
  0xae   :  { %v230_v51 = vrot.slane %v229_v48, 4  ;;  %v248_v52 = vadd.f32 %v247_v50, %v246_v49 }
  0xb0   :  { %v231_v53 = vadd.f32 %v230_v51, %v229_v48  ;;  %v249_v54 = vrot.slane %v248_v52, 4 }
  0xb2   :  { %v232_v55 = vrot.slane %v231_v53, 2  ;;  %v250_v56 = vadd.f32 %v249_v54, %v248_v52 }
  0xb4   :  { %v233_v57 = vadd.f32 %v232_v55, %v231_v53  ;;  %v251_v58 = vrot.slane %v250_v56, 2 }
  0xb6   :  { %v234_v59 = vrot.slane %v233_v57, 1  ;;  %v252_v60 = vadd.f32 %v251_v58, %v250_v56 }
  0xb8   :  { %v235_v61 = vadd.f32 %v234_v59, %v233_v57  ;;  %v253_v62 = vrot.slane %v252_v60, 1 }
  0xba   :  { %237 = vst.msk [vmem:[%s496_s11] sm:$0x1] %vm236_vm14, %v235_v61  ;;  %v254_v63 = vadd.f32 %v253_v62, %v252_v60 }
  0xbc   :  { %255 = vst.msk [vmem:[%s497_s12] sm:$0x1] %vm236_vm14, %v254_v63 }

// kernel: dgcnn_forward.25
= control target key start
LH: loop header
LB: loop body
LE: loop exit
PB: predicated region body
PF: predicated region fallthrough
CT: control target
= control target key end

     0   :  { %s485_s12 = smov 0   ;;  %s487_s13 = smov 0   ;;  %s524_s0 = inlined_call_operand.vmem [shape: f32[2,16,16], index: 0, kind: input, shape index: {}]   ;;  %s525_s1 = inlined_call_operand.vmem [shape: f32[2,16,16], index: 1, kind: input, shape index: {}]   ;;  %s526_s2 = inlined_call_operand.vmem [shape: f32[2,1,16], index: 2, kind: input, shape index: {}]   ;;  %s527_s3 = inlined_call_operand.vmem [shape: f32[2,16,16], index: 3, kind: output, shape index: {}]  }
   0x1   :  { %s489_s14 = smov 0  }
   0x2 LB: > { %s25_s15 = sadd.s32 1, %s459_s13  ;;  %p400_p0 = scmp.ge.s32.totalorder %s463_s14, 1  ;;  %s463_s14 = sphi %s489_s14, %s13_s14   ;;  %s459_s13 = sphi %s487_s13, %s529_s13   ;;  %s455_s12 = sphi %s485_s12, %s528_s12  }
   0x3   : > { %p27_p1 = scmp.ge.s32.totalorder %s25_s15, 2  ;;  %p176_p2 = scmp.lt.s32.totalorder %s463_s14, 3 }
   0x5   : > { %s531_s15 = smov (%p27_p1, %s25_s15), 0  ;;  %p177_p3 = pnand %p400_p0, %p176_p2 }
   0x6   : > { %p217_p4 = scmp.lt.s32.totalorder (!%p177_p3), %s455_s12, 1 }
   0x7   : > { %180 = sbr.rel (%p177_p3) target bundleno = 151 (0x97), region = 32 }
   0xc   : > { %s533_s12 = smov (!%p217_p4, %s455_s12), 1  ;;  %vm248_vm0 = vcmask 130048  }
   0xd   : > { %s411_s16 = sshll.u32 %s533_s12, 4  ;;  %s233_s19 = scalar_lea.vmem %s526_s2, %s533_s12 }
   0xe   : > { %s230_s22 = scalar_lea.vmem %s525_s1, %s411_s16  ;;  %s224_s25 = scalar_lea.vmem %s524_s0, %s411_s16  ;;  %v440_v4 = vld [vmem:[%s233_s19] ss:$0 sm:$0xff] }
   0xf   : > { %v247_v0 = vld [vmem:[%s230_s22 + $0x8] sm:$0xff]  ;;  %v246_v1 = vld [vmem:[%s230_s22] sm:$0xff]  ;;  %s242_s28 = scalar_lea.vmem %s527_s3, %s411_s16 }
  0x10   : > { %269 = vmatpush.msra.mxu0 %v247_v0  ;;  %414 = vmatpush.msra.mxu1 %v247_v0  ;;  %v244_v2 = vld [vmem:[%s224_s25] sm:$0xff]  ;;  %v245_v3 = vld [vmem:[%s224_s25 + $0x8] sm:$0xff] }
  0x12   : > { %270 = vmatpush.msra.mxu0 %v246_v1  ;;  %415 = vmatpush.msra.mxu1 %v246_v1 }
  0x13   : > { %407 = vmatmul.msk.f32.vlgmr.msra.gmra.mxu0 %vm248_vm0, %v244_v2  ;;  %408 = vmatmul.msk.f32.vlgmr.msra.gmra.mxu1 %vm248_vm0, %v245_v3 }
  0x90   : > { %v272_v5 = vpop.f32.mrf.mxu0  ;;  %v275_v6 = vpop.f32.mrf.mxu1 }
  0x91   : > { %v278_v7 = vmul.f32 2.0, %v272_v5  ;;  %v279_v8 = vmul.f32 2.0, %v275_v6 }
  0x93   : > { %v284_v9 = vsub.f32 %v278_v7, %v440_v4  ;;  %v285_v10 = vsub.f32 %v279_v8, %v440_v4 }
  0x95   : > { %286 = vst.msk [vmem:[%s242_s28] sm:$0xff] %vm248_vm0, %v284_v9 }
  0x96   : > { %287 = vst.msk [vmem:[%s242_s28 + $0x8] sm:$0xff] %vm248_vm0, %v285_v10 }
  0x97 PF: > { %s13_s14 = sadd.s32 1, %s463_s14   ;;  %s528_s12 = smov %s459_s13 }
  0x98   : > { %p10_p5 = scmp.ge.s32.totalorder %s13_s14, 4   ;;  %s529_s13 = smov %s531_s15 }
  0x9a   :  { %12 = sbr.rel (!%p10_p5) target bundleno = 2 (0x2), region = 68 }

// kernel: dgcnn_forward.27
= control target key start
LH: loop header
LB: loop body
LE: loop exit
PB: predicated region body
PF: predicated region fallthrough
CT: control target
= control target key end

     0   :  { %s1072_s24 = smov 0   ;;  %s1074_s25 = smov 0   ;;  %s1159_s0 = inlined_call_operand.vmem [shape: bf16[2,16,16], index: 0, kind: input, shape index: {}]   ;;  %s1160_s1 = inlined_call_operand.vmem [shape: s32[2,16,4], index: 1, kind: input, shape index: {}]   ;;  %s1161_s2 = inlined_call_operand.vmem [shape: bf16[16,32], index: 2, kind: input, shape index: {}]   ;;  %s1162_s3 = inlined_call_operand.vmem [shape: bf16[16,32], index: 3, kind: input, shape index: {}]   ;;  %s1163_s4 = inlined_call_operand.vmem [shape: bf16[2,16,32], index: 4, kind: output, shape index: {0}]   ;;  %s1164_s5 = inlined_call_operand.vmem [shape: bf16[2,16,32], index: 5, kind: output, shape index: {1}]   ;;  %s1165_s6 = inlined_call_operand.vmem [shape: f32[2,1,1,32], index: 6, kind: output, shape index: {2}]   ;;  %s1166_s7 = inlined_call_operand.vmem [shape: f32[2,1,1,32], index: 7, kind: output, shape index: {3}]  }
   0x1   :  { %s1076_s26 = smov 0  }
   0x2 LB: > { %s30_s27 = sadd.s32 1, %s1021_s25  ;;  %p925_p0 = scmp.ge.s32.totalorder %s1025_s26, 1  ;;  %s1025_s26 = sphi %s1076_s26, %s18_s26   ;;  %s1021_s25 = sphi %s1074_s25, %s1168_s25   ;;  %s1017_s24 = sphi %s1072_s24, %s1167_s24  }
   0x3   : > { %p32_p1 = scmp.ge.s32.totalorder %s30_s27, 2  ;;  %p281_p2 = scmp.lt.s32.totalorder %s1025_s26, 3 }
   0x5   : > { %s1170_s27 = smov (%p32_p1, %s30_s27), 0  ;;  %p282_p3 = pnand %p925_p0, %p281_p2 }
   0x6   : > { %p347_p4 = scmp.lt.s32.totalorder (!%p282_p3), %s1017_s24, 1 }
   0x7   : > { %285 = sbr.rel (%p282_p3) target bundleno = 459 (0x1cb), region = 36 }
   0xc   : > { %v1027_v0 = vmov 1   ;;  %v1028_v1 = vmov 0   ;;  %s1172_s24 = smov (!%p347_p4, %s1017_s24), 1  ;;  %v1029_v2 = vmov 2   ;;  %v1030_v5 = vmov 3   ;;  %v968_v7 = vld [vmem:[%s1162_s3] sm:$0xff] }
   0xd   : > { %999 = vset.pattern.permute.xlu1 %v1027_v0  ;;  %998 = vset.pattern.permute.xlu0 %v1028_v1  ;;  %s962_s28 = sshll.u32 %s1172_s24, 4  ;;  %s1097_s9 = sshll.u32 %s1172_s24, 3  ;;  %v439_v9 = vlaneseq  ;;  %vm419_vm0 = vcmask 130048   ;;  %v1031_v16 = vmov 0.0   ;;  %v967_v32 = vld [vmem:[%s1161_s2] sm:$0xff]  ;;  %vm671_vm9 = vcmask 257024  }
   0xe   : > { %1000 = vset.pattern.permute.xlu2 %v1029_v2  ;;  %s360_s8 = scalar_lea.vmem %s1160_s1, %s962_s28  ;;  %s351_s12 = scalar_lea.vmem %s1159_s0, %s1097_s9  ;;  %430 = vmatpush.bf16.msra.mxu0 %v968_v7  ;;  %vm678_vm10 = vcmask 261120   ;;  %vm688_vm11 = vcmask 253952  }
   0xf   : > { %v437_v3 = vld [vmem:[%s360_s8] sm:$0xff]  ;;  %v438_v4 = vld [vmem:[%s360_s8 + $0x8] sm:$0xff]  ;;  %v440_v12 = vand.u32 127, %v439_v9  ;;  %492 = vmatpush.bf16.msra.mxu2 %v967_v32  ;;  %s1122_s19 = scalar_lea.vmem %s1163_s4, %s1097_s9  ;;  %s1128_s22 = scalar_lea.vmem %s1164_s5, %s1097_s9 }
  0x10   : > { %502 = vperm.xlu1 %999, %v437_v3   ;;  %442 = vperm.xlu0 %998, %v437_v3   ;;  %v965_v6 = vld [vmem:[%s351_s12] sm:$0xff]  ;;  %s387_s29 = scalar_lea.vmem %s1165_s6, %s1172_s24  ;;  %s393_s9 = scalar_lea.vmem %s1166_s7, %s1172_s24 }
  0x11   : > { %558 = vperm.xlu2 %1000, %v437_v3   ;;  %468 = vmatpush.bf16.msra.mxu1 %v965_v6  ;;  %v966_v8 = vld [vmem:[%s351_s12] sm:$0xff] }
  0x12   : > { %522 = vmatpush.bf16.msra.mxu3 %v965_v6  ;;  %942 = vmatmul.msk.bf16.vlgmr.msra.gmra.mxu0 %vm419_vm0, %v966_v8 }
  0x13   : > { %540 = vmatpush.bf16.msrb.mxu0 %v967_v32  ;;  %596 = vmatpush.bf16.msrb.mxu2 %v967_v32 }
  0x15   : > { %578 = vmatpush.bf16.msrb.mxu1 %v965_v6 }
  0x16   : > { %634 = vmatpush.bf16.msrb.mxu3 %v965_v6 }
  0x17   : > { %652 = vmatpush.bf16.msra.mxu0 %v967_v32 }
  0x18   : > { %505 = vperm.xlu1 %999, %v438_v4   ;;  %445 = vperm.xlu0 %998, %v438_v4  }
  0x19   : > { %561 = vperm.xlu2 %1000, %v438_v4  }
  0x20   : > { %1002 = vset.pattern.permute.xlu1 %v1030_v5  ;;  %1001 = vset.pattern.permute.xlu0 %v1030_v5 }
  0x21   : > { %617 = vperm.xlu1 %1002, %v438_v4   ;;  %614 = vperm.xlu0 %1001, %v437_v3  }
  0x6b   : > { %v559_v13 = vpop.permute.xlu2 %558 }
  0x6c   : > { %vm563_vm7 = vcmp.eq.s32.totalorder %v559_v13, %v440_v12 }
  0x6d   : > { %v565_v28 = vsel %vm563_vm7, 1.0, %v1031_v16 }
  0x73   : > { %v562_v25 = vpop.permute.xlu2 %561 }
  0x74   : > { %vm564_vm8 = vcmp.eq.s32.totalorder %v562_v25, %v440_v12 }
  0x75   : > { %v566_v29 = vsel %vm564_vm8, 1.0, %v1031_v16 }
  0x76   : > { %v567_v31 = vpack.c.bf16 %v566_v29, %v565_v28 }
  0x82   : > { %v503_v10 = vpop.permute.xlu1 %502  ;;  %v443_v11 = vpop.permute.xlu0 %442 }
  0x83   : > { %vm507_vm1 = vcmp.eq.s32.totalorder %v503_v10, %v440_v12  ;;  %vm447_vm2 = vcmp.eq.s32.totalorder %v443_v11, %v440_v12 }
  0x84   : > { %v509_v17 = vsel %vm507_vm1, 1.0, %v1031_v16  ;;  %v449_v18 = vsel %vm447_vm2, 1.0, %v1031_v16 }
  0x8a   : > { %v506_v14 = vpop.permute.xlu1 %505  ;;  %v446_v15 = vpop.permute.xlu0 %445 }
  0x8b   : > { %vm508_vm3 = vcmp.eq.s32.totalorder %v506_v14, %v440_v12  ;;  %vm448_vm4 = vcmp.eq.s32.totalorder %v446_v15, %v440_v12 }
  0x8c   : > { %v510_v19 = vsel %vm508_vm3, 1.0, %v1031_v16  ;;  %v450_v20 = vsel %vm448_vm4, 1.0, %v1031_v16 }
  0x8d   : > { %v511_v21 = vpack.c.bf16 %v510_v19, %v509_v17  ;;  %v451_v22 = vpack.c.bf16 %v450_v20, %v449_v18 }
  0x8f   : > { %947 = vmatmul.msk.bf16.vlgmr.msra.gmra.mxu1 %vm419_vm0, %v451_v22  ;;  %953 = vmatmul.msk.bf16.vlgmr.msra.gmra.mxu3 %vm419_vm0, %v511_v21  ;;  %v432_v45 = vpop.f32.mrf.mxu0 }
  0x93   : > { %v618_v23 = vpop.permute.xlu1 %617  ;;  %v615_v24 = vpop.permute.xlu0 %614 }
  0x94   : > { %vm620_vm5 = vcmp.eq.s32.totalorder %v618_v23, %v440_v12  ;;  %vm619_vm6 = vcmp.eq.s32.totalorder %v615_v24, %v440_v12 }
  0x95   : > { %v622_v26 = vsel %vm620_vm5, 1.0, %v1031_v16  ;;  %v621_v27 = vsel %vm619_vm6, 1.0, %v1031_v16 }
  0x96   : > { %v623_v30 = vpack.c.bf16 %v622_v26, %v621_v27 }
  0x97   : > { %v434_v46 = vpop.f32.mrf.mxu0 }
  0x9f   : > { %955 = vmatmul.msk.bf16.vlgmr.msrb.gmra.mxu1 %vm419_vm0, %v567_v31  ;;  %957 = vmatmul.msk.bf16.vlgmr.msrb.gmra.mxu3 %vm419_vm0, %v623_v30 }
 0x10c   : > { %v470_v33 = vpop.f32.mrf.mxu1 }
 0x112   : > { %v524_v34 = vpop.f32.mrf.mxu3 }
 0x114   : > { %v472_v35 = vpop.f32.mrf.mxu1 }
 0x115   : > { %v475_v36 = vpack.c.bf16 %v472_v35, %v470_v33 }
 0x117   : > { %952 = vmatmul.msk.bf16.vlgmr.msra.gmra.mxu2 %vm419_vm0, %v475_v36 }
 0x11a   : > { %v526_v37 = vpop.f32.mrf.mxu3 }
 0x11b   : > { %v529_v38 = vpack.c.bf16 %v526_v37, %v524_v34 }
 0x11c   : > { %v580_v39 = vpop.f32.mrf.mxu1 }
 0x11d   : > { %954 = vmatmul.msk.bf16.vlgmr.msrb.gmra.mxu0 %vm419_vm0, %v529_v38 }
 0x122   : > { %v636_v40 = vpop.f32.mrf.mxu3 }
 0x124   : > { %v582_v41 = vpop.f32.mrf.mxu1 }
 0x125   : > { %v585_v42 = vpack.c.bf16 %v582_v41, %v580_v39 }
 0x127   : > { %956 = vmatmul.msk.bf16.vlgmr.msrb.gmra.mxu2 %vm419_vm0, %v585_v42 }
 0x12a   : > { %v638_v43 = vpop.f32.mrf.mxu3 }
 0x12b   : > { %v641_v44 = vpack.c.bf16 %v638_v43, %v636_v40 }
 0x12d   : > { %958 = vmatmul.msk.bf16.vlgmr.msra.gmra.mxu0 %vm419_vm0, %v641_v44 }
 0x19a   : > { %v494_v47 = vpop.f32.mrf.mxu2  ;;  %v542_v48 = vpop.f32.mrf.mxu0 }
 0x19b   : > { %v495_v51 = vadd.f32 %v494_v47, %v432_v45  ;;  %v543_v52 = vadd.f32 %v542_v48, %v432_v45 }
 0x19d   : > { %v547_v55 = vmax.f32 %v495_v51, %v543_v52  ;;  %v549_v56 = vmin.f32 %v495_v51, %v543_v52  ;;  %v499_v58 = vmul.f32 %v495_v51, %v495_v51  ;;  %v553_v59 = vmul.f32 %v543_v52, %v543_v52 }
 0x19e   : > { %v551_v1 = vadd.f32 %v543_v52, %v495_v51 }
 0x19f   : > { %v555_v5 = vadd.f32 %v553_v59, %v499_v58 }
 0x1a2   : > { %v496_v49 = vpop.f32.mrf.mxu2  ;;  %v544_v50 = vpop.f32.mrf.mxu0 }
 0x1a3   : > { %v497_v60 = vadd.f32 %v496_v49, %v434_v46  ;;  %v545_v61 = vadd.f32 %v544_v50, %v434_v46 }
 0x1a5   : > { %v500_v6 = vmul.f32 %v497_v60, %v497_v60  ;;  %v554_v7 = vmul.f32 %v545_v61, %v545_v61  ;;  %v548_v11 = vmax.f32 %v497_v60, %v545_v61  ;;  %v550_v15 = vmin.f32 %v497_v60, %v545_v61 }
 0x1a6   : > { %v552_v16 = vadd.f32 %v545_v61, %v497_v60 }
 0x1a7   : > { %v556_v19 = vadd.f32 %v554_v7, %v500_v6 }
 0x1aa   : > { %v598_v53 = vpop.f32.mrf.mxu2  ;;  %v654_v54 = vpop.f32.mrf.mxu0 }
 0x1ab   : > { %v599_v57 = vadd.f32 %v598_v53, %v432_v45  ;;  %v655_v0 = vadd.f32 %v654_v54, %v432_v45 }
 0x1ad   : > { %v603_v62 = vmax.f32 %v547_v55, %v599_v57  ;;  %v605_v63 = vmin.f32 %v549_v56, %v599_v57  ;;  %v609_v2 = vmul.f32 %v599_v57, %v599_v57  ;;  %v607_v8 = vadd.f32 %v599_v57, %v551_v1 }
 0x1ae   : > { %v665_v21 = vmul.f32 %v655_v0, %v655_v0 }
 0x1af   : > { %v659_v3 = vmax.f32 %v603_v62, %v655_v0  ;;  %v661_v4 = vmin.f32 %v605_v63, %v655_v0  ;;  %v611_v12 = vadd.f32 %v609_v2, %v555_v5  ;;  %v663_v20 = vadd.f32 %v655_v0, %v607_v8 }
 0x1b1   : > { %v669_v9 = vpack.c.bf16 %v659_v3, %v659_v3  ;;  %v674_v10 = vpack.c.bf16 %v661_v4, %v661_v4  ;;  %v667_v26 = vadd.f32 %v665_v21, %v611_v12  ;;  %v679_v32 = vsel %vm678_vm10, %v663_v20, 0.0 }
 0x1b2   : > { %v600_v13 = vpop.f32.mrf.mxu2  ;;  %v656_v14 = vpop.f32.mrf.mxu0 }
 0x1b3   : > { %672 = vst.msk [vmem:[%s1122_s19] sm:$0xf] %vm671_vm9, %v669_v9  ;;  %v601_v17 = vadd.f32 %v600_v13, %v434_v46  ;;  %v657_v18 = vadd.f32 %v656_v14, %v434_v46  ;;  %v690_v38 = vsel %vm678_vm10, %v667_v26, 0.0 }
 0x1b4   : > { %676 = vst.msk [vmem:[%s1128_s22] sm:$0xf] %vm671_vm9, %v674_v10 }
 0x1b5   : > { %v604_v22 = vmax.f32 %v548_v11, %v601_v17  ;;  %v606_v23 = vmin.f32 %v550_v15, %v601_v17  ;;  %v608_v24 = vadd.f32 %v601_v17, %v552_v16  ;;  %v610_v25 = vmul.f32 %v601_v17, %v601_v17 }
 0x1b6   : > { %v666_v27 = vmul.f32 %v657_v18, %v657_v18 }
 0x1b7   : > { %v612_v28 = vadd.f32 %v610_v25, %v556_v19  ;;  %v660_v29 = vmax.f32 %v604_v22, %v657_v18  ;;  %v662_v30 = vmin.f32 %v606_v23, %v657_v18  ;;  %v664_v31 = vadd.f32 %v657_v18, %v608_v24 }
 0x1b9   : > { %v668_v33 = vadd.f32 %v666_v27, %v612_v28  ;;  %v670_v34 = vpack.c.bf16 %v660_v29, %v660_v29  ;;  %v675_v35 = vpack.c.bf16 %v662_v30, %v662_v30  ;;  %v680_v36 = vsel %vm678_vm10, %v664_v31, 0.0 }
 0x1ba   : > { %v681_v37 = vadd.f32 %v680_v36, %v679_v32 }
 0x1bb   : > { %673 = vst.msk [vmem:[%s1122_s19 + $0x4] sm:$0xf] %vm671_vm9, %v670_v34  ;;  %v691_v39 = vsel %vm678_vm10, %v668_v33, 0.0 }
 0x1bc   : > { %677 = vst.msk [vmem:[%s1128_s22 + $0x4] sm:$0xf] %vm671_vm9, %v675_v35  ;;  %v682_v40 = vrot.slane %v681_v37, 4  ;;  %v692_v41 = vadd.f32 %v691_v39, %v690_v38 }
 0x1be   : > { %v683_v42 = vadd.f32 %v682_v40, %v681_v37  ;;  %v693_v43 = vrot.slane %v692_v41, 4 }
 0x1c0   : > { %v684_v44 = vrot.slane %v683_v42, 2  ;;  %v694_v45 = vadd.f32 %v693_v43, %v692_v41 }
 0x1c2   : > { %v685_v46 = vadd.f32 %v684_v44, %v683_v42  ;;  %v695_v47 = vrot.slane %v694_v45, 2 }
 0x1c4   : > { %v686_v48 = vrot.slane %v685_v46, 1  ;;  %v696_v49 = vadd.f32 %v695_v47, %v694_v45 }
 0x1c6   : > { %v687_v50 = vadd.f32 %v686_v48, %v685_v46  ;;  %v697_v51 = vrot.slane %v696_v49, 1 }
 0x1c8   : > { %689 = vst.msk [vmem:[%s387_s29] sm:$0x1] %vm688_vm11, %v687_v50  ;;  %v698_v52 = vadd.f32 %v697_v51, %v696_v49 }
 0x1ca   : > { %699 = vst.msk [vmem:[%s393_s9] sm:$0x1] %vm688_vm11, %v698_v52 }
 0x1cb PF: > { %s18_s26 = sadd.s32 1, %s1025_s26   ;;  %s1167_s24 = smov %s1021_s25 }
 0x1cc   : > { %p15_p5 = scmp.ge.s32.totalorder %s18_s26, 4   ;;  %s1168_s25 = smov %s1170_s27 }
 0x1ce   :  { %17 = sbr.rel (!%p15_p5) target bundleno = 2 (0x2), region = 106 }

// kernel: dgcnn_forward.29
= control target key start
LH: loop header
LB: loop body
LE: loop exit
PB: predicated region body
PF: predicated region fallthrough
CT: control target
= control target key end

     0   :  { %vm50_vm0 = vcmask 261120   ;;  %s118_s0 = inlined_call_operand.vmem [shape: bf16[32,32], index: 0, kind: input, shape index: {}]   ;;  %s119_s1 = inlined_call_operand.vmem [shape: f32[1,32], index: 1, kind: input, shape index: {}]   ;;  %s120_s2 = inlined_call_operand.vmem [shape: f32[1,32], index: 2, kind: input, shape index: {}]   ;;  %s121_s3 = inlined_call_operand.vmem [shape: f32[32,32], index: 3, kind: output, shape index: {}]  }
   0x1   :  { %v60_v0 = vld [vmem:[%s118_s0] sm:$0xff]   ;;  %v67_v5 = vld [vmem:[%s118_s0 + $0x8] sm:$0xff]  }
   0x2   :  { %v68_v1 = vld [vmem:[%s119_s1] ss:$0 sm:$0xff]  ;;  %v61_v2 = vunpack.c.l.bf16 %v60_v0  ;;  %v62_v4 = vunpack.c.h.bf16 %v60_v0  ;;  %v65_v6 = vunpack.c.l.bf16 %v67_v5  ;;  %v66_v7 = vunpack.c.h.bf16 %v67_v5 }
   0x3   :  { %v69_v3 = vld [vmem:[%s120_s2] ss:$0 sm:$0xff] }
   0x4   :  { %v26_v8 = vmul.f32 %v68_v1, %v61_v2  ;;  %v27_v9 = vmul.f32 %v68_v1, %v62_v4  ;;  %v28_v10 = vmul.f32 %v68_v1, %v65_v6  ;;  %v29_v11 = vmul.f32 %v68_v1, %v66_v7 }
   0x6   :  { %v34_v12 = vadd.f32 %v69_v3, %v26_v8  ;;  %v35_v13 = vadd.f32 %v69_v3, %v27_v9  ;;  %v36_v14 = vadd.f32 %v69_v3, %v28_v10  ;;  %v37_v15 = vadd.f32 %v69_v3, %v29_v11 }
   0x8   :  { %vm38_vm1 = vcmp.gt.f32.partialorder %v34_v12, 0.0  ;;  %v42_v16 = vmul.f32 0.2, %v34_v12  ;;  %vm39_vm2 = vcmp.gt.f32.partialorder %v35_v13, 0.0  ;;  %v43_v17 = vmul.f32 0.2, %v35_v13 }
   0x9   :  { %vm40_vm3 = vcmp.gt.f32.partialorder %v36_v14, 0.0  ;;  %v44_v18 = vmul.f32 0.2, %v36_v14  ;;  %vm41_vm4 = vcmp.gt.f32.partialorder %v37_v15, 0.0  ;;  %v45_v19 = vmul.f32 0.2, %v37_v15 }
   0xa   :  { %v46_v20 = vsel %vm38_vm1, %v34_v12, %v42_v16  ;;  %v47_v21 = vsel %vm39_vm2, %v35_v13, %v43_v17 }
   0xb   :  { %51 = vst.msk [vmem:[%s121_s3] sm:$0xff] %vm50_vm0, %v46_v20  ;;  %v48_v22 = vsel %vm40_vm3, %v36_v14, %v44_v18  ;;  %v49_v23 = vsel %vm41_vm4, %v37_v15, %v45_v19 }
   0xc   :  { %52 = vst.msk [vmem:[%s121_s3 + $0x8] sm:$0xff] %vm50_vm0, %v47_v21 }
   0xd   :  { %53 = vst.msk [vmem:[%s121_s3 + $0x10] sm:$0xff] %vm50_vm0, %v48_v22 }
   0xe   :  { %54 = vst.msk [vmem:[%s121_s3 + $0x18] sm:$0xff] %vm50_vm0, %v49_v23 }

// kernel: dgcnn_forward.28
= control target key start
LH: loop header
LB: loop body
LE: loop exit
PB: predicated region body
PF: predicated region fallthrough
CT: control target
= control target key end

     0   :  { %v353_v11 = vmov 0   ;;  %vm167_vm3 = vcmask 261120   ;;  %vm234_vm13 = vcmask 257024   ;;  %vm252_vm14 = vcmask 253952   ;;  %s531_s9 = inlined_call_operand.vmem [shape: bf16[32,32], index: 9, kind: input, shape index: {}]   ;;  %s532_s8 = inlined_call_operand.vmem [shape: bf16[32,32], index: 8, kind: input, shape index: {}]   ;;  %s533_s2 = inlined_call_operand.vmem [shape: bf16[32,32], index: 2, kind: input, shape index: {}]   ;;  %s534_s3 = inlined_call_operand.vmem [shape: bf16[32,32], index: 3, kind: input, shape index: {}]   ;;  %s535_s6 = inlined_call_operand.vmem [shape: f32[1,32], index: 6, kind: input, shape index: {}]   ;;  %s536_s7 = inlined_call_operand.vmem [shape: f32[1,32], index: 7, kind: input, shape index: {}]   ;;  %s537_s0 = inlined_call_operand.vmem [shape: bf16[32,32], index: 0, kind: input, shape index: {}]   ;;  %s538_s1 = inlined_call_operand.vmem [shape: bf16[32,32], index: 1, kind: input, shape index: {}]   ;;  %s539_s4 = inlined_call_operand.vmem [shape: f32[1,32], index: 4, kind: input, shape index: {}]   ;;  %s540_s5 = inlined_call_operand.vmem [shape: f32[1,32], index: 5, kind: input, shape index: {}]   ;;  %s541_s10 = inlined_call_operand.vmem [shape: bf16[32,32], index: 10, kind: output, shape index: {0}]   ;;  %s542_s11 = inlined_call_operand.vmem [shape: f32[1,1,32], index: 11, kind: output, shape index: {1}]   ;;  %s543_s12 = inlined_call_operand.vmem [shape: f32[1,1,32], index: 12, kind: output, shape index: {2}]  }
   0x1   :  { %v307_v0 = vld [vmem:[%s531_s9 + $0x8] sm:$0xff]  ;;  %v306_v2 = vld [vmem:[%s531_s9] sm:$0xff] }
   0x2   :  { %v305_v1 = vld [vmem:[%s532_s8 + $0x8] sm:$0xff]  ;;  %v91_v3 = vld [vmem:[%s535_s6] sm:$0x1]  ;;  %180 = vmatpush.bf16.msra.mxu0 %v307_v0  ;;  %344 = vmatpush.bf16.msra.mxu2 %v307_v0 }
   0x3   :  { %v325_v4 = vld [vmem:[%s533_s2] sm:$0xff]   ;;  %vm92_vm0 = vcmp.ge.f32.partialorder %v91_v3, 0.0  ;;  %217 = vmatpush.bf16.msra.mxu1 %v305_v1  ;;  %346 = vmatpush.bf16.msra.mxu3 %v305_v1  ;;  %v342_v14 = vld [vmem:[%s533_s2 + $0x8] sm:$0xff]  }
   0x4   :  { %v304_v5 = vld [vmem:[%s532_s8] sm:$0xff]  ;;  %v326_v6 = vunpack.c.l.bf16 %v325_v4  ;;  %v327_v8 = vunpack.c.h.bf16 %v325_v4  ;;  %v109_v12 = vsel %vm92_vm0, 1, %v353_v11  ;;  %v343_v15 = vld [vmem:[%s534_s3 + $0x8] sm:$0xff]   ;;  %v330_v17 = vunpack.c.l.bf16 %v342_v14 }
   0x5   :  { %v333_v7 = vld [vmem:[%s534_s3] sm:$0xff]   ;;  %v110_v16 = vperm.slane %v109_v12, 0  ;;  %v331_v18 = vunpack.c.h.bf16 %v342_v14  ;;  %v338_v19 = vunpack.c.l.bf16 %v343_v15  ;;  %v339_v23 = vunpack.c.h.bf16 %v343_v15  ;;  %v340_v31 = vld [vmem:[%s537_s0 + $0x8] sm:$0xff]  }
   0x6   :  { %v334_v9 = vunpack.c.l.bf16 %v333_v7  ;;  %v335_v10 = vunpack.c.h.bf16 %v333_v7  ;;  %v349_v13 = vld [vmem:[%s535_s6] ss:$0 sm:$0xff]  ;;  %181 = vmatpush.bf16.msra.mxu0 %v306_v2  ;;  %345 = vmatpush.bf16.msra.mxu2 %v306_v2  ;;  %v341_v41 = vld [vmem:[%s538_s1 + $0x8] sm:$0xff]   ;;  %v314_v44 = vunpack.c.l.bf16 %v340_v31  ;;  %v315_v45 = vunpack.c.h.bf16 %v340_v31 }
   0x7   :  { %v39_v20 = vld [vmem:[%s539_s4] sm:$0x1]  ;;  %vm458_vm2 = vcmp.eq.s32.totalorder %v110_v16, 1  ;;  %218 = vmatpush.bf16.msra.mxu1 %v304_v5  ;;  %347 = vmatpush.bf16.msra.mxu3 %v304_v5  ;;  %v322_v54 = vunpack.c.l.bf16 %v341_v41  ;;  %v323_v2 = vunpack.c.h.bf16 %v341_v41 }
   0x8   :  { %v309_v21 = vld [vmem:[%s537_s0] sm:$0xff]   ;;  %vm40_vm1 = vcmp.ge.f32.partialorder %v39_v20, 0.0  ;;  %v112_v32 = vsel %vm458_vm2, %v326_v6, %v334_v9  ;;  %v113_v33 = vsel %vm458_vm2, %v327_v8, %v335_v10  ;;  %v114_v34 = vsel %vm458_vm2, %v330_v17, %v338_v19 }
   0x9   :  { %v317_v22 = vld [vmem:[%s538_s1] sm:$0xff]   ;;  %v310_v24 = vunpack.c.l.bf16 %v309_v21  ;;  %v311_v25 = vunpack.c.h.bf16 %v309_v21  ;;  %v57_v30 = vsel %vm40_vm1, 1, %v353_v11  ;;  %v119_v37 = vmul.f32 %v349_v13, %v112_v32 }
   0xa   :  { %v350_v27 = vld [vmem:[%s536_s7] ss:$0 sm:$0xff]  ;;  %v318_v28 = vunpack.c.l.bf16 %v317_v22  ;;  %v319_v29 = vunpack.c.h.bf16 %v317_v22  ;;  %v58_v35 = vperm.slane %v57_v30, 0  ;;  %v120_v38 = vmul.f32 %v349_v13, %v113_v33 }
   0xb   :  { %v351_v36 = vld [vmem:[%s539_s4] ss:$0 sm:$0xff]  ;;  %v115_v39 = vsel %vm458_vm2, %v331_v18, %v339_v23  ;;  %v121_v40 = vmul.f32 %v349_v13, %v114_v34  ;;  %v127_v46 = vadd.f32 %v350_v27, %v119_v37 }
   0xc   :  { %v122_v42 = vmul.f32 %v349_v13, %v115_v39  ;;  %vm482_vm4 = vcmp.eq.s32.totalorder %v58_v35, 1  ;;  %v128_v47 = vadd.f32 %v350_v27, %v120_v38  ;;  %v352_v50 = vld [vmem:[%s540_s5] ss:$0 sm:$0xff] }
   0xd   :  { %v129_v48 = vadd.f32 %v350_v27, %v121_v40  ;;  %v60_v49 = vsel %vm482_vm4, %v310_v24, %v318_v28  ;;  %v61_v52 = vsel %vm482_vm4, %v311_v25, %v319_v29  ;;  %vm131_vm5 = vcmp.gt.f32.partialorder %v127_v46, 0.0 }
   0xe   :  { %v130_v51 = vadd.f32 %v350_v27, %v122_v42  ;;  %v67_v53 = vmul.f32 %v351_v36, %v60_v49  ;;  %vm132_vm6 = vcmp.gt.f32.partialorder %v128_v47, 0.0  ;;  %v135_v55 = vmul.f32 0.2, %v127_v46 }
   0xf   :  { %v136_v56 = vmul.f32 0.2, %v128_v47  ;;  %vm133_vm7 = vcmp.gt.f32.partialorder %v129_v48, 0.0  ;;  %v137_v57 = vmul.f32 0.2, %v129_v48  ;;  %v68_v61 = vmul.f32 %v351_v36, %v61_v52 }
  0x10   :  { %vm134_vm8 = vcmp.gt.f32.partialorder %v130_v51, 0.0  ;;  %v138_v58 = vmul.f32 0.2, %v130_v51  ;;  %v139_v59 = vsel %vm131_vm5, %v127_v46, %v135_v55  ;;  %v75_v62 = vadd.f32 %v352_v50, %v67_v53 }
  0x11   :  { %v140_v60 = vsel %vm132_vm6, %v128_v47, %v136_v56  ;;  %v141_v0 = vsel %vm133_vm7, %v129_v48, %v137_v57  ;;  %v76_v4 = vadd.f32 %v352_v50, %v68_v61  ;;  %v62_v6 = vsel %vm482_vm4, %v314_v44, %v322_v54 }
  0x12   :  { %v149_v63 = vpack.c.bf16 %v140_v60, %v139_v59  ;;  %v142_v1 = vsel %vm134_vm8, %v130_v51, %v138_v58  ;;  %vm79_vm9 = vcmp.gt.f32.partialorder %v75_v62, 0.0  ;;  %v83_v5 = vmul.f32 0.2, %v75_v62 }
  0x13   :  { %v150_v3 = vpack.c.bf16 %v142_v1, %v141_v0  ;;  %v63_v7 = vsel %vm482_vm4, %v315_v45, %v323_v2  ;;  %vm80_vm10 = vcmp.gt.f32.partialorder %v76_v4, 0.0  ;;  %v84_v8 = vmul.f32 0.2, %v76_v4 }
  0x14   :  { %292 = vmatmul.msk.bf16.vlgmr.msra.gmra.mxu0 %vm167_vm3, %v149_v63  ;;  %v87_v9 = vsel %vm79_vm9, %v75_v62, %v83_v5  ;;  %v69_v10 = vmul.f32 %v351_v36, %v62_v6  ;;  %v70_v11 = vmul.f32 %v351_v36, %v63_v7 }
  0x15   :  { %293 = vmatmul.msk.bf16.vlgmr.msra.gmra.mxu2 %vm167_vm3, %v150_v3  ;;  %v88_v12 = vsel %vm80_vm10, %v76_v4, %v84_v8 }
  0x16   :  { %v77_v13 = vadd.f32 %v352_v50, %v69_v10  ;;  %v143_v14 = vpack.c.bf16 %v88_v12, %v87_v9  ;;  %v78_v15 = vadd.f32 %v352_v50, %v70_v11 }
  0x18   :  { %vm81_vm11 = vcmp.gt.f32.partialorder %v77_v13, 0.0  ;;  %v85_v16 = vmul.f32 0.2, %v77_v13  ;;  %302 = vmatmul.msk.bf16.vlgmr.msra.gmra.mxu1 %vm167_vm3, %v143_v14  ;;  %vm82_vm12 = vcmp.gt.f32.partialorder %v78_v15, 0.0  ;;  %v86_v17 = vmul.f32 0.2, %v78_v15 }
  0x1a   :  { %v89_v18 = vsel %vm81_vm11, %v77_v13, %v85_v16  ;;  %v90_v19 = vsel %vm82_vm12, %v78_v15, %v86_v17 }
  0x1b   :  { %v144_v20 = vpack.c.bf16 %v90_v19, %v89_v18 }
  0x1d   :  { %303 = vmatmul.msk.bf16.vlgmr.msra.gmra.mxu3 %vm167_vm3, %v144_v20 }
  0x91   :  { %v183_v21 = vpop.f32.mrf.mxu0 }
  0x95   :  { %v220_v22 = vpop.f32.mrf.mxu1 }
  0x96   :  { %v221_v23 = vadd.f32 %v220_v22, %v183_v21 }
  0x98   :  { %v230_v24 = vpack.c.bf16 %v221_v23, %v221_v23  ;;  %v188_v26 = vpop.f32.mrf.mxu2  ;;  %v254_v33 = vmul.f32 %v221_v23, %v221_v23  ;;  %v239_v36 = vsel %vm167_vm3, %v221_v23, 0.0 }
  0x99   :  { %v185_v25 = vpop.f32.mrf.mxu0 }
  0x9a   :  { %235 = vst.msk [vmem:[%s541_s10] sm:$0xf] %vm234_vm13, %v230_v24  ;;  %v258_v40 = vsel %vm167_vm3, %v254_v33, 0.0 }
  0x9d   :  { %v222_v27 = vpop.f32.mrf.mxu1 }
  0x9e   :  { %v223_v28 = vadd.f32 %v222_v27, %v185_v25 }
  0xa0   :  { %v225_v29 = vpop.f32.mrf.mxu3  ;;  %v231_v30 = vpack.c.bf16 %v223_v28, %v223_v28  ;;  %v255_v32 = vmul.f32 %v223_v28, %v223_v28  ;;  %v240_v35 = vsel %vm167_vm3, %v223_v28, 0.0  ;;  %v190_v39 = vpop.f32.mrf.mxu2 }
  0xa1   :  { %v226_v31 = vadd.f32 %v225_v29, %v188_v26  ;;  %v241_v38 = vadd.f32 %v240_v35, %v239_v36 }
  0xa2   :  { %236 = vst.msk [vmem:[%s541_s10 + $0x4] sm:$0xf] %vm234_vm13, %v231_v30  ;;  %v259_v37 = vsel %vm167_vm3, %v255_v32, 0.0 }
  0xa3   :  { %v232_v34 = vpack.c.bf16 %v226_v31, %v226_v31  ;;  %v256_v41 = vmul.f32 %v226_v31, %v226_v31  ;;  %v260_v42 = vadd.f32 %v259_v37, %v258_v40  ;;  %v242_v44 = vsel %vm167_vm3, %v226_v31, 0.0 }
  0xa4   :  { %v243_v46 = vadd.f32 %v242_v44, %v241_v38 }
  0xa5   :  { %237 = vst.msk [vmem:[%s541_s10 + $0x8] sm:$0xf] %vm234_vm13, %v232_v34  ;;  %v261_v47 = vsel %vm167_vm3, %v256_v41, 0.0 }
  0xa6   :  { %v262_v52 = vadd.f32 %v261_v47, %v260_v42 }
  0xa8   :  { %v227_v43 = vpop.f32.mrf.mxu3 }
  0xa9   :  { %v228_v45 = vadd.f32 %v227_v43, %v190_v39 }
  0xab   :  { %v233_v48 = vpack.c.bf16 %v228_v45, %v228_v45  ;;  %v244_v49 = vsel %vm167_vm3, %v228_v45, 0.0  ;;  %v257_v50 = vmul.f32 %v228_v45, %v228_v45 }
  0xac   :  { %v245_v51 = vadd.f32 %v244_v49, %v243_v46 }
  0xad   :  { %238 = vst.msk [vmem:[%s541_s10 + $0xc] sm:$0xf] %vm234_vm13, %v233_v48  ;;  %v263_v53 = vsel %vm167_vm3, %v257_v50, 0.0 }
  0xae   :  { %v246_v54 = vrot.slane %v245_v51, 4  ;;  %v264_v55 = vadd.f32 %v263_v53, %v262_v52 }
  0xb0   :  { %v247_v56 = vadd.f32 %v246_v54, %v245_v51  ;;  %v265_v57 = vrot.slane %v264_v55, 4 }
  0xb2   :  { %v248_v58 = vrot.slane %v247_v56, 2  ;;  %v266_v59 = vadd.f32 %v265_v57, %v264_v55 }
  0xb4   :  { %v249_v60 = vadd.f32 %v248_v58, %v247_v56  ;;  %v267_v61 = vrot.slane %v266_v59, 2 }
  0xb6   :  { %v250_v62 = vrot.slane %v249_v60, 1  ;;  %v268_v63 = vadd.f32 %v267_v61, %v266_v59 }
  0xb8   :  { %v251_v0 = vadd.f32 %v250_v62, %v249_v60  ;;  %v269_v1 = vrot.slane %v268_v63, 1 }
  0xba   :  { %253 = vst.msk [vmem:[%s542_s11] sm:$0x1] %vm252_vm14, %v251_v0  ;;  %v270_v2 = vadd.f32 %v269_v1, %v268_v63 }
  0xbc   :  { %271 = vst.msk [vmem:[%s543_s12] sm:$0x1] %vm252_vm14, %v270_v2 }

</bundles_post_ra>
